<compile_context>
chip_gen: v7x
topology: tpu7x:2x2x1
jax: 0.10.0
libtpu: 0.0.40
codegen_flags: <defaults>
</compile_context>

<pallas_src>
import jax
import jax.numpy as jnp
from jax.experimental import pallas as pl
from jax.experimental.pallas import tpu as pltpu


def _round_up(x, m):
    return ((x + m - 1) // m) * m


# ---------------------------------------------------------------------------
# Pallas kernel: (bf16 x @ bf16 w) with f32 accumulation, * per-column scale
# ---------------------------------------------------------------------------
def _matmul_scale_kernel(x_ref, w_ref, s_ref, o_ref):
    acc = jnp.dot(x_ref[...], w_ref[...], preferred_element_type=jnp.float32)
    o_ref[...] = (acc * s_ref[...]).astype(o_ref.dtype)


def fused_matmul_scale(x, w, scale):
    """x:(M,K), w:(K,Nc), scale:(Nc,)  ->  f32 (M,Nc) = (x @ w) * scale."""
    M, K = x.shape
    K2, Nc = w.shape
    assert K == K2

    # Lane-dense output: pad column dim to a multiple of 128 (only last layer).
    Nc_p = _round_up(Nc, 128)
    if Nc_p != Nc:
        w = jnp.pad(w, ((0, 0), (0, Nc_p - Nc)))
        scale = jnp.pad(scale, (0, Nc_p - Nc))

    # Row tile: large, and dividing M exactly whenever possible (M = N*H*W is
    # a power-of-two multiple of 8 for every layer except the latent one).
    cap_m = 1024 if K <= 512 else 256   # keep tiles modest for v7x 64 MiB VMEM
    tm = min(M, cap_m) if M >= 8 else 8
    while tm > 8 and M % tm:
        tm //= 2
    M_p = _round_up(M, tm)
    if M_p != M:                        # only the tiny latent layer (M = batch)
        x = jnp.pad(x, ((0, M_p - M), (0, 0)))

    # Column tile: 512 gives >=2 grid steps on wide layers (megacore-friendly).
    tn = min(Nc_p, 512)
    while Nc_p % tn:
        tn -= 128

    x_bf = x.astype(jnp.bfloat16)
    w_bf = w.astype(jnp.bfloat16)
    s2 = scale.reshape(1, Nc_p).astype(jnp.float32)

    out = pl.pallas_call(
        _matmul_scale_kernel,
        out_shape=jax.ShapeDtypeStruct((M_p, Nc_p), jnp.float32),
        grid_spec=pltpu.PrefetchScalarGridSpec(
            num_scalar_prefetch=0,
            grid=(M_p // tm, Nc_p // tn),
            in_specs=[
                pl.BlockSpec((tm, K), lambda i, j: (i, 0)),   # activation rows
                pl.BlockSpec((K, tn), lambda i, j: (0, j)),   # weight columns
                pl.BlockSpec((1, tn), lambda i, j: (0, j)),   # folded BN scale
            ],
            out_specs=pl.BlockSpec((tm, tn), lambda i, j: (i, j)),
        ),
        compiler_params=pltpu.CompilerParams(
            dimension_semantics=("parallel", "parallel")),
    )(x_bf, w_bf, s2)

    if M_p != M or Nc_p != Nc:
        out = out[:M, :Nc]
    return out


# ---------------------------------------------------------------------------
# Layer wrappers (NHWC activations; scatter-form ConvTranspose2d)
# ---------------------------------------------------------------------------
def convT_first(z2d, w_t, scale_c, shift_c):
    """ConvTranspose2d(Cin, Cout, k=4, s=1, p=0) on 1x1 input + BN + ReLU.

    z2d: (N, Cin). Returns NHWC (N, 4, 4, Cout) f32.
    """
    N, Cin = z2d.shape
    Cout = w_t.shape[1]
    # columns ordered (kh, kw, co)
    w_mat = jnp.transpose(w_t, (0, 2, 3, 1)).reshape(Cin, 16 * Cout)
    scale = jnp.tile(scale_c, 16)
    y = fused_matmul_scale(z2d, w_mat, scale)            # (N, 16*Cout)
    y = y.reshape(N, 4, 4, Cout) + shift_c
    return jnp.maximum(y, 0.0)


def convT_scatter(x_nhwc, w_t, scale_c, shift_c, activation):
    """ConvTranspose2d(Cin, Cout, k=4, s=2, p=1) + BN affine + activation.

    x_nhwc: (N, H, W, Cin) f32.  w_t: PyTorch layout (Cin, Cout, 4, 4).
    Scatter form: one dense matmul over Cin, then a separable stride-2
    overlap-add (oh = 2*ih + kh - 1, ow = 2*iw + kw - 1).  Returns NHWC.
    """
    N, H, W, Cin = x_nhwc.shape
    Cout = w_t.shape[1]
    w_mat = jnp.transpose(w_t, (0, 2, 3, 1)).reshape(Cin, 16 * Cout)
    scale = jnp.tile(scale_c, 16)                        # per (kh,kw,co) column

    x2 = x_nhwc.reshape(N * H * W, Cin)
    y = fused_matmul_scale(x2, w_mat, scale)             # (N*H*W, 16*Cout) f32
    y = y.reshape(N, H, W, 4, 4, Cout)

    # rows: even oh=2r <- (kh=1, ih=r) + (kh=3, ih=r-1); odd oh=2r+1 <- (kh=2, r) + (kh=0, r+1)
    ye = y[:, :, :, 1].at[:, 1:].add(y[:, :-1, :, 3])
    yo = y[:, :, :, 2].at[:, :-1].add(y[:, 1:, :, 0])
    z = jnp.stack([ye, yo], axis=2).reshape(N, 2 * H, W, 4, Cout)
    # cols: same pattern on kw
    ze = z[:, :, :, 1].at[:, :, 1:].add(z[:, :, :-1, 3])
    zo = z[:, :, :, 2].at[:, :, :-1].add(z[:, :, 1:, 0])
    out = jnp.stack([ze, zo], axis=3).reshape(N, 2 * H, 2 * W, Cout)

    out = out + shift_c                                  # folded BN shift (NHWC)
    if activation == "relu":
        out = jnp.maximum(out, 0.0)
    elif activation == "tanh":
        out = jnp.tanh(out)
    return out


# ---------------------------------------------------------------------------
# Parameter init (deterministic, synthetic — shapes match netG.__init__)
# ---------------------------------------------------------------------------
def init_params(key, z_size=32, ngf=16, out_size=3):
    ks = jax.random.split(key, 32)
    ki = iter(range(32))

    def convw(cin, cout):
        return 0.02 * jax.random.normal(ks[next(ki)], (cin, cout, 4, 4),
                                        jnp.float32)

    def bn(c):
        gamma = 1.0 + 0.02 * jax.random.normal(ks[next(ki)], (c,), jnp.float32)
        beta = 0.01 * jax.random.normal(ks[next(ki)], (c,), jnp.float32)
        mean = 0.1 * jax.random.normal(ks[next(ki)], (c,), jnp.float32)
        var = jnp.abs(1.0 + 0.1 * jax.random.normal(ks[next(ki)], (c,),
                                                    jnp.float32))
        scale = gamma / jnp.sqrt(var + 1e-5)
        shift = beta - mean * scale
        return scale, shift

    return {
        "w1": convw(z_size, ngf * 8), "bn1": bn(ngf * 8),
        "w2": convw(ngf * 8, ngf * 4), "bn2": bn(ngf * 4),
        "w3": convw(ngf * 4, ngf * 2), "bn3": bn(ngf * 2),
        "w4": convw(ngf * 2, ngf), "bn4": bn(ngf),
        "w5": convw(ngf, out_size),
    }


def netG_forward(z, params):
    """z: (N, z_size, 1, 1) NCHW -> (N, out_size, 64, 64) NCHW (like PyTorch)."""
    N = z.shape[0]
    y = convT_first(z.reshape(N, -1), params["w1"], *params["bn1"])
    y = convT_scatter(y, params["w2"], *params["bn2"], activation="relu")
    y = convT_scatter(y, params["w3"], *params["bn3"], activation="relu")
    y = convT_scatter(y, params["w4"], *params["bn4"], activation="relu")
    cout = params["w5"].shape[1]
    y = convT_scatter(y, params["w5"], jnp.ones((cout,), jnp.float32),
                      jnp.zeros((cout,), jnp.float32), activation="tanh")
    return jnp.transpose(y, (0, 3, 1, 2))     # single NCHW transpose at the end


# ---------------------------------------------------------------------------
# Pure-JAX f32 reference (ConvTranspose2d == dilated direct conv) for checking
# ---------------------------------------------------------------------------
def _ref_convT(x_nchw, w_t, stride, padding):
    k = w_t.shape[2]
    rhs = jnp.transpose(w_t[:, :, ::-1, ::-1], (1, 0, 2, 3))   # (Cout,Cin,k,k)
    pad = k - 1 - padding
    return jax.lax.conv_general_dilated(
        x_nchw, rhs, window_strides=(1, 1),
        padding=((pad, pad), (pad, pad)), lhs_dilation=(stride, stride),
        dimension_numbers=("NCHW", "OIHW", "NCHW"))


def netG_forward_ref(z, params):
    def bn_act(x, scale, shift, act):
        y = x * scale[None, :, None, None] + shift[None, :, None, None]
        return jnp.maximum(y, 0.0) if act == "relu" else jnp.tanh(y)
    y = bn_act(_ref_convT(z, params["w1"], 1, 0), *params["bn1"], "relu")
    y = bn_act(_ref_convT(y, params["w2"], 2, 1), *params["bn2"], "relu")
    y = bn_act(_ref_convT(y, params["w3"], 2, 1), *params["bn3"], "relu")
    y = bn_act(_ref_convT(y, params["w4"], 2, 1), *params["bn4"], "relu")
    return jnp.tanh(_ref_convT(y, params["w5"], 2, 1))


# ---------------------------------------------------------------------------
if __name__ == "__main__":
    key = jax.random.PRNGKey(0)
    k_param, k_z = jax.random.split(key)

    Z_SIZE, NGF, OUT = 32, 16, 3
    BATCH = 2

    params = init_params(k_param, z_size=Z_SIZE, ngf=NGF, out_size=OUT)
    z = jax.random.normal(k_z, (BATCH, Z_SIZE, 1, 1), jnp.float32)

    fwd = jax.jit(netG_forward)
    out = jax.block_until_ready(fwd(z, params))

    assert out.shape == (BATCH, OUT, 64, 64), out.shape
    assert bool(jnp.all(jnp.isfinite(out)))
    assert bool(jnp.all(jnp.abs(out) <= 1.0 + 1e-6))       # tanh range

    ref = jax.block_until_ready(jax.jit(netG_forward_ref)(z, params))
    max_err = float(jnp.max(jnp.abs(out - ref)))
    assert max_err < 5e-2, f"mismatch vs reference: {max_err}"

    print("KERNEL_OK")
</pallas_src>

<mosaic_0001>
module attributes {stable_mosaic.version = 11 : i64} {
  func.func @_matmul_scale_kernel(%arg0: i32, %arg1: i32, %arg2: memref<32x128xbf16, #tpu.memory_space<vmem>>, %arg3: memref<128x512xbf16, #tpu.memory_space<vmem>>, %arg4: memref<1x512xf32, #tpu.memory_space<vmem>>, %arg5: memref<32x512xf32, #tpu.memory_space<vmem>>) attributes {dimension_semantics = [#tpu.dimension_semantics<parallel>, #tpu.dimension_semantics<parallel>], iteration_bounds = array<i64: 1, 2>, scalar_prefetch = 0 : i64, scratch_operands = 0 : i64, tpu.core_type = #tpu.core_type<tc>, window_params = [{transform_indices = @transform_0, window_bounds = array<i64: 32, 128>}, {transform_indices = @transform_1, window_bounds = array<i64: 128, 512>}, {transform_indices = @transform_2, window_bounds = array<i64: 1, 512>}, {transform_indices = @transform_3, window_bounds = array<i64: 32, 512>}]} {
    %c0 = arith.constant 0 : index
    %c0_0 = arith.constant 0 : index
    %0 = vector.load %arg2[%c0, %c0_0] : memref<32x128xbf16, #tpu.memory_space<vmem>>, vector<32x128xbf16>
    %c0_1 = arith.constant 0 : index
    %c0_2 = arith.constant 0 : index
    %1 = vector.load %arg3[%c0_1, %c0_2] : memref<128x512xbf16, #tpu.memory_space<vmem>>, vector<128x512xbf16>
    %cst = arith.constant dense<0.000000e+00> : vector<32x512xf32>
    %2 = tpu.matmul %0, %1, %cst {dimension_numbers = #tpu.dot_dimension_numbers<[1], [0], [0], [1], [0, 0, 1, 1], [], []>} : vector<32x128xbf16>, vector<128x512xbf16>, vector<32x512xf32> -> vector<32x512xf32>
    %c0_3 = arith.constant 0 : index
    %c0_4 = arith.constant 0 : index
    %3 = vector.load %arg4[%c0_3, %c0_4] : memref<1x512xf32, #tpu.memory_space<vmem>>, vector<1x512xf32>
    %4 = vector.broadcast %3 : vector<1x512xf32> to vector<32x512xf32>
    %5 = arith.mulf %2, %4 : vector<32x512xf32>
    %c0_5 = arith.constant 0 : index
    %c0_6 = arith.constant 0 : index
    %6 = vector.load %arg5[%c0_5, %c0_6] : memref<32x512xf32, #tpu.memory_space<vmem>>, vector<32x512xf32>
    tpu.vector_store %arg5[%c0_5, %c0_6], %5 {strides = array<i32>} : memref<32x512xf32, #tpu.memory_space<vmem>>, vector<32x512xf32>,
    return
  }
  func.func @transform_0(%arg0: i32, %arg1: i32) -> (i32, i32) {
    %c0_i32 = arith.constant 0 : i32
    %c0_i32_0 = arith.constant 0 : i32
    return %arg0, %c0_i32 : i32, i32
  }
  func.func @transform_1(%arg0: i32, %arg1: i32) -> (i32, i32) {
    %c0_i32 = arith.constant 0 : i32
    %c0_i32_0 = arith.constant 0 : i32
    return %c0_i32, %arg1 : i32, i32
  }
  func.func @transform_2(%arg0: i32, %arg1: i32) -> (i32, i32) {
    %c0_i32 = arith.constant 0 : i32
    %c0_i32_0 = arith.constant 0 : i32
    return %c0_i32, %arg1 : i32, i32
  }
  func.func @transform_3(%arg0: i32, %arg1: i32) -> (i32, i32) {
    %c0_i32 = arith.constant 0 : i32
    return %arg0, %arg1 : i32, i32
  }
}

module attributes {stable_mosaic.version = 11 : i64} {
  func.func @_matmul_scale_kernel(%arg0: i32, %arg1: i32, %arg2: memref<8x32xbf16, #tpu.memory_space<vmem>>, %arg3: memref<32x512xbf16, #tpu.memory_space<vmem>>, %arg4: memref<1x512xf32, #tpu.memory_space<vmem>>, %arg5: memref<8x512xf32, #tpu.memory_space<vmem>>) attributes {dimension_semantics = [#tpu.dimension_semantics<parallel>, #tpu.dimension_semantics<parallel>], iteration_bounds = array<i64: 1, 4>, scalar_prefetch = 0 : i64, scratch_operands = 0 : i64, tpu.core_type = #tpu.core_type<tc>, window_params = [{transform_indices = @transform_0, window_bounds = array<i64: 8, 32>}, {transform_indices = @transform_1, window_bounds = array<i64: 32, 512>}, {transform_indices = @transform_2, window_bounds = array<i64: 1, 512>}, {transform_indices = @transform_3, window_bounds = array<i64: 8, 512>}]} {
    %c0 = arith.constant 0 : index
    %c0_0 = arith.constant 0 : index
    %0 = vector.load %arg2[%c0, %c0_0] : memref<8x32xbf16, #tpu.memory_space<vmem>>, vector<8x32xbf16>
    %c0_1 = arith.constant 0 : index
    %c0_2 = arith.constant 0 : index
    %1 = vector.load %arg3[%c0_1, %c0_2] : memref<32x512xbf16, #tpu.memory_space<vmem>>, vector<32x512xbf16>
    %cst = arith.constant dense<0.000000e+00> : vector<8x512xf32>
    %2 = tpu.matmul %0, %1, %cst {dimension_numbers = #tpu.dot_dimension_numbers<[1], [0], [0], [1], [0, 0, 1, 1], [], []>} : vector<8x32xbf16>, vector<32x512xbf16>, vector<8x512xf32> -> vector<8x512xf32>
    %c0_3 = arith.constant 0 : index
    %c0_4 = arith.constant 0 : index
    %3 = vector.load %arg4[%c0_3, %c0_4] : memref<1x512xf32, #tpu.memory_space<vmem>>, vector<1x512xf32>
    %4 = vector.broadcast %3 : vector<1x512xf32> to vector<8x512xf32>
    %5 = arith.mulf %2, %4 : vector<8x512xf32>
    %c0_5 = arith.constant 0 : index
    %c0_6 = arith.constant 0 : index
    %6 = vector.load %arg5[%c0_5, %c0_6] : memref<8x512xf32, #tpu.memory_space<vmem>>, vector<8x512xf32>
    tpu.vector_store %arg5[%c0_5, %c0_6], %5 {strides = array<i32>} : memref<8x512xf32, #tpu.memory_space<vmem>>, vector<8x512xf32>,
    return
  }
  func.func @transform_0(%arg0: i32, %arg1: i32) -> (i32, i32) {
    %c0_i32 = arith.constant 0 : i32
    %c0_i32_0 = arith.constant 0 : i32
    return %arg0, %c0_i32 : i32, i32
  }
  func.func @transform_1(%arg0: i32, %arg1: i32) -> (i32, i32) {
    %c0_i32 = arith.constant 0 : i32
    %c0_i32_0 = arith.constant 0 : i32
    return %c0_i32, %arg1 : i32, i32
  }
  func.func @transform_2(%arg0: i32, %arg1: i32) -> (i32, i32) {
    %c0_i32 = arith.constant 0 : i32
    %c0_i32_0 = arith.constant 0 : i32
    return %c0_i32, %arg1 : i32, i32
  }
  func.func @transform_3(%arg0: i32, %arg1: i32) -> (i32, i32) {
    %c0_i32 = arith.constant 0 : i32
    return %arg0, %arg1 : i32, i32
  }
}

module attributes {stable_mosaic.version = 11 : i64} {
  func.func @_matmul_scale_kernel(%arg0: i32, %arg1: i32, %arg2: memref<128x64xbf16, #tpu.memory_space<vmem>>, %arg3: memref<64x512xbf16, #tpu.memory_space<vmem>>, %arg4: memref<1x512xf32, #tpu.memory_space<vmem>>, %arg5: memref<128x512xf32, #tpu.memory_space<vmem>>) attributes {dimension_semantics = [#tpu.dimension_semantics<parallel>, #tpu.dimension_semantics<parallel>], iteration_bounds = array<i64: 1, 1>, scalar_prefetch = 0 : i64, scratch_operands = 0 : i64, tpu.core_type = #tpu.core_type<tc>, window_params = [{transform_indices = @transform_0, window_bounds = array<i64: 128, 64>}, {transform_indices = @transform_1, window_bounds = array<i64: 64, 512>}, {transform_indices = @transform_2, window_bounds = array<i64: 1, 512>}, {transform_indices = @transform_3, window_bounds = array<i64: 128, 512>}]} {
    %c0 = arith.constant 0 : index
    %c0_0 = arith.constant 0 : index
    %0 = vector.load %arg2[%c0, %c0_0] : memref<128x64xbf16, #tpu.memory_space<vmem>>, vector<128x64xbf16>
    %c0_1 = arith.constant 0 : index
    %c0_2 = arith.constant 0 : index
    %1 = vector.load %arg3[%c0_1, %c0_2] : memref<64x512xbf16, #tpu.memory_space<vmem>>, vector<64x512xbf16>
    %cst = arith.constant dense<0.000000e+00> : vector<128x512xf32>
    %2 = tpu.matmul %0, %1, %cst {dimension_numbers = #tpu.dot_dimension_numbers<[1], [0], [0], [1], [0, 0, 1, 1], [], []>} : vector<128x64xbf16>, vector<64x512xbf16>, vector<128x512xf32> -> vector<128x512xf32>
    %c0_3 = arith.constant 0 : index
    %c0_4 = arith.constant 0 : index
    %3 = vector.load %arg4[%c0_3, %c0_4] : memref<1x512xf32, #tpu.memory_space<vmem>>, vector<1x512xf32>
    %4 = vector.broadcast %3 : vector<1x512xf32> to vector<128x512xf32>
    %5 = arith.mulf %2, %4 : vector<128x512xf32>
    %c0_5 = arith.constant 0 : index
    %c0_6 = arith.constant 0 : index
    %6 = vector.load %arg5[%c0_5, %c0_6] : memref<128x512xf32, #tpu.memory_space<vmem>>, vector<128x512xf32>
    tpu.vector_store %arg5[%c0_5, %c0_6], %5 {strides = array<i32>} : memref<128x512xf32, #tpu.memory_space<vmem>>, vector<128x512xf32>,
    return
  }
  func.func @transform_0(%arg0: i32, %arg1: i32) -> (i32, i32) {
    %c0_i32 = arith.constant 0 : i32
    %c0_i32_0 = arith.constant 0 : i32
    return %arg0, %c0_i32 : i32, i32
  }
  func.func @transform_1(%arg0: i32, %arg1: i32) -> (i32, i32) {
    %c0_i32 = arith.constant 0 : i32
    %c0_i32_0 = arith.constant 0 : i32
    return %c0_i32, %arg1 : i32, i32
  }
  func.func @transform_2(%arg0: i32, %arg1: i32) -> (i32, i32) {
    %c0_i32 = arith.constant 0 : i32
    %c0_i32_0 = arith.constant 0 : i32
    return %c0_i32, %arg1 : i32, i32
  }
  func.func @transform_3(%arg0: i32, %arg1: i32) -> (i32, i32) {
    %c0_i32 = arith.constant 0 : i32
    return %arg0, %arg1 : i32, i32
  }
}

module attributes {stable_mosaic.version = 11 : i64} {
  func.func @_matmul_scale_kernel(%arg0: i32, %arg1: i32, %arg2: memref<512x32xbf16, #tpu.memory_space<vmem>>, %arg3: memref<32x256xbf16, #tpu.memory_space<vmem>>, %arg4: memref<1x256xf32, #tpu.memory_space<vmem>>, %arg5: memref<512x256xf32, #tpu.memory_space<vmem>>) attributes {dimension_semantics = [#tpu.dimension_semantics<parallel>, #tpu.dimension_semantics<parallel>], iteration_bounds = array<i64: 1, 1>, scalar_prefetch = 0 : i64, scratch_operands = 0 : i64, tpu.core_type = #tpu.core_type<tc>, window_params = [{transform_indices = @transform_0, window_bounds = array<i64: 512, 32>}, {transform_indices = @transform_1, window_bounds = array<i64: 32, 256>}, {transform_indices = @transform_2, window_bounds = array<i64: 1, 256>}, {transform_indices = @transform_3, window_bounds = array<i64: 512, 256>}]} {
    %c0 = arith.constant 0 : index
    %c0_0 = arith.constant 0 : index
    %0 = vector.load %arg2[%c0, %c0_0] : memref<512x32xbf16, #tpu.memory_space<vmem>>, vector<512x32xbf16>
    %c0_1 = arith.constant 0 : index
    %c0_2 = arith.constant 0 : index
    %1 = vector.load %arg3[%c0_1, %c0_2] : memref<32x256xbf16, #tpu.memory_space<vmem>>, vector<32x256xbf16>
    %cst = arith.constant dense<0.000000e+00> : vector<512x256xf32>
    %2 = tpu.matmul %0, %1, %cst {dimension_numbers = #tpu.dot_dimension_numbers<[1], [0], [0], [1], [0, 0, 1, 1], [], []>} : vector<512x32xbf16>, vector<32x256xbf16>, vector<512x256xf32> -> vector<512x256xf32>
    %c0_3 = arith.constant 0 : index
    %c0_4 = arith.constant 0 : index
    %3 = vector.load %arg4[%c0_3, %c0_4] : memref<1x256xf32, #tpu.memory_space<vmem>>, vector<1x256xf32>
    %4 = vector.broadcast %3 : vector<1x256xf32> to vector<512x256xf32>
    %5 = arith.mulf %2, %4 : vector<512x256xf32>
    %c0_5 = arith.constant 0 : index
    %c0_6 = arith.constant 0 : index
    %6 = vector.load %arg5[%c0_5, %c0_6] : memref<512x256xf32, #tpu.memory_space<vmem>>, vector<512x256xf32>
    tpu.vector_store %arg5[%c0_5, %c0_6], %5 {strides = array<i32>} : memref<512x256xf32, #tpu.memory_space<vmem>>, vector<512x256xf32>,
    return
  }
  func.func @transform_0(%arg0: i32, %arg1: i32) -> (i32, i32) {
    %c0_i32 = arith.constant 0 : i32
    %c0_i32_0 = arith.constant 0 : i32
    return %arg0, %c0_i32 : i32, i32
  }
  func.func @transform_1(%arg0: i32, %arg1: i32) -> (i32, i32) {
    %c0_i32 = arith.constant 0 : i32
    %c0_i32_0 = arith.constant 0 : i32
    return %c0_i32, %arg1 : i32, i32
  }
  func.func @transform_2(%arg0: i32, %arg1: i32) -> (i32, i32) {
    %c0_i32 = arith.constant 0 : i32
    %c0_i32_0 = arith.constant 0 : i32
    return %c0_i32, %arg1 : i32, i32
  }
  func.func @transform_3(%arg0: i32, %arg1: i32) -> (i32, i32) {
    %c0_i32 = arith.constant 0 : i32
    return %arg0, %arg1 : i32, i32
  }
}

module attributes {stable_mosaic.version = 11 : i64} {
  func.func @_matmul_scale_kernel(%arg0: i32, %arg1: i32, %arg2: memref<1024x16xbf16, #tpu.memory_space<vmem>>, %arg3: memref<16x128xbf16, #tpu.memory_space<vmem>>, %arg4: memref<1x128xf32, #tpu.memory_space<vmem>>, %arg5: memref<1024x128xf32, #tpu.memory_space<vmem>>) attributes {dimension_semantics = [#tpu.dimension_semantics<parallel>, #tpu.dimension_semantics<parallel>], iteration_bounds = array<i64: 2, 1>, scalar_prefetch = 0 : i64, scratch_operands = 0 : i64, tpu.core_type = #tpu.core_type<tc>, window_params = [{transform_indices = @transform_0, window_bounds = array<i64: 1024, 16>}, {transform_indices = @transform_1, window_bounds = array<i64: 16, 128>}, {transform_indices = @transform_2, window_bounds = array<i64: 1, 128>}, {transform_indices = @transform_3, window_bounds = array<i64: 1024, 128>}]} {
    %c0 = arith.constant 0 : index
    %c0_0 = arith.constant 0 : index
    %0 = vector.load %arg2[%c0, %c0_0] : memref<1024x16xbf16, #tpu.memory_space<vmem>>, vector<1024x16xbf16>
    %c0_1 = arith.constant 0 : index
    %c0_2 = arith.constant 0 : index
    %1 = vector.load %arg3[%c0_1, %c0_2] : memref<16x128xbf16, #tpu.memory_space<vmem>>, vector<16x128xbf16>
    %cst = arith.constant dense<0.000000e+00> : vector<1024x128xf32>
    %2 = tpu.matmul %0, %1, %cst {dimension_numbers = #tpu.dot_dimension_numbers<[1], [0], [0], [1], [0, 0, 1, 1], [], []>} : vector<1024x16xbf16>, vector<16x128xbf16>, vector<1024x128xf32> -> vector<1024x128xf32>
    %c0_3 = arith.constant 0 : index
    %c0_4 = arith.constant 0 : index
    %3 = vector.load %arg4[%c0_3, %c0_4] : memref<1x128xf32, #tpu.memory_space<vmem>>, vector<1x128xf32>
    %4 = vector.broadcast %3 : vector<1x128xf32> to vector<1024x128xf32>
    %5 = arith.mulf %2, %4 : vector<1024x128xf32>
    %c0_5 = arith.constant 0 : index
    %c0_6 = arith.constant 0 : index
    %6 = vector.load %arg5[%c0_5, %c0_6] : memref<1024x128xf32, #tpu.memory_space<vmem>>, vector<1024x128xf32>
    tpu.vector_store %arg5[%c0_5, %c0_6], %5 {strides = array<i32>} : memref<1024x128xf32, #tpu.memory_space<vmem>>, vector<1024x128xf32>,
    return
  }
  func.func @transform_0(%arg0: i32, %arg1: i32) -> (i32, i32) {
    %c0_i32 = arith.constant 0 : i32
    %c0_i32_0 = arith.constant 0 : i32
    return %arg0, %c0_i32 : i32, i32
  }
  func.func @transform_1(%arg0: i32, %arg1: i32) -> (i32, i32) {
    %c0_i32 = arith.constant 0 : i32
    %c0_i32_0 = arith.constant 0 : i32
    return %c0_i32, %arg1 : i32, i32
  }
  func.func @transform_2(%arg0: i32, %arg1: i32) -> (i32, i32) {
    %c0_i32 = arith.constant 0 : i32
    %c0_i32_0 = arith.constant 0 : i32
    return %c0_i32, %arg1 : i32, i32
  }
  func.func @transform_3(%arg0: i32, %arg1: i32) -> (i32, i32) {
    %c0_i32 = arith.constant 0 : i32
    return %arg0, %arg1 : i32, i32
  }
}

</mosaic_0001>

<bundles_post_ra>
// kernel: tile.25
= control target key start
LH: loop header
LB: loop body
LE: loop exit
PB: predicated region body
PF: predicated region fallthrough
CT: control target
= control target key end

     0   :  { %2 = vsyncpa [#allocation1], 0  ;;  %s47_s6 = smov [#allocation0]   ;;  %s76_s0 = inlined_call_operand.hbm [shape: f32[128], index: 0, kind: input, shape index: {}]   ;;  %s77_s1 = inlined_call_operand.vmem [shape: f32[16,128], index: 1, kind: output, shape index: {}]  }
   0x1   :  { %s9_s7 = sshll.u32 %s47_s6, 4  ;;  %s23_s10 = scalar_lea.hbm %s76_s0, 16  ;;  %s10_s7 = int_to_ptr.vmem [resolvable:$true] %s9_s7 }
   0x2   :  { %p24_p0 = scmp.ne.s32.totalorder %s76_s0, %s23_s10  ;;  %p27_p1 = scmp.lt.u32.totalorder %s23_s10, %s76_s0 }
   0x4   :  { %p29_p2 = pnand %p27_p1, %p24_p0 }
   0x6   :  { %32 = shalt.err (!%p29_p2)
}
   0x7   :  { %s33_s15 = scalar_lea.vmem %s10_s7, 16  ;;  %s37_s16 = scalar_lea.vmem %s10_s7, 32 }
   0x8   :  { %p34_p3 = scmp.ne.s32.totalorder %s10_s7, %s33_s15  ;;  %p38_p4 = scmp.lt.s32.totalorder %s10_s7, %s10_s7 }
   0x9   :  { %p39_p5 = scmp.lt.s32.totalorder %s37_s16, %s33_s15 }
   0xb   :  { %p40_p6 = por %p39_p5, %p38_p4 }
   0xd   :  { %p41_p7 = pnand %p40_p6, %p34_p3 }
   0xf   :  { %44 = shalt.err (!%p41_p7)
}
  0x10   :  { %12 = dma.hbm_to_vmem [thread:$0]  %s76_s0, 16, %s10_s7, [#allocation1]  }
  0x11   :  { %45 = dma.done.wait [#allocation1], 16  }
  0x12   :  { %46 = vsyncadd [#allocation1], 4294967280  ;;  %v16_v0 = vld [vmem:[#allocation0] ss:$0 sm:$0xff] }
  0x13   :  { %17 = vst [vmem:[%s77_s1] sm:$0xff] %v16_v0  ;;  %21 = vst [vmem:[%s77_s1 + $0x8] sm:$0xff] %v16_v0 }
  0x14   :  { %20 = vsyncpa [#allocation1], 1 }

// kernel: tile.30
= control target key start
LH: loop header
LB: loop body
LE: loop exit
PB: predicated region body
PF: predicated region fallthrough
CT: control target
= control target key end

     0   :  { %s28_s0 = inlined_call_operand.vmem [shape: f32[64], index: 0, kind: input, shape index: {}]   ;;  %s29_s1 = inlined_call_operand.vmem [shape: f32[16,64], index: 1, kind: output, shape index: {}]  }
   0x1   :  { %v4_v0 = vld [vmem:[%s28_s0] ss:$0 sm:$0xff] }
   0x2   :  { %5 = vst [vmem:[%s29_s1] sm:$0xff] %v4_v0  ;;  %8 = vst [vmem:[%s29_s1 + $0x8] sm:$0xff] %v4_v0 }

// kernel: tile.31
= control target key start
LH: loop header
LB: loop body
LE: loop exit
PB: predicated region body
PF: predicated region fallthrough
CT: control target
= control target key end

     0   :  { %vm3_vm0 = vcmask 523264   ;;  %vm10_vm1 = vcmask 1048064   ;;  %s116_s0 = inlined_call_operand.vmem [shape: f32[16,64], index: 0, kind: input, shape index: {}]   ;;  %s117_s1 = inlined_call_operand.vmem [shape: f32[1,1024], index: 1, kind: output, shape index: {}]  }
   0x1   :  { %v66_v0 = vld [vmem:[%s116_s0 + $0x1] ss:$2 sm:$0xff]   ;;  %v2_v1 = vld [vmem:[%s116_s0] ss:$2 sm:$0xff]   ;;  %s75_s0 = smov 64  }
   0x2   :  { %8 = vrot.lane.b32.xlu0 %v66_v0, %s75_s0  ;;  %4 = vst.msk [vmem:[#allocation0] ss:$8 sm:$0xf] %vm3_vm0, %v2_v1   ;;  %5 = vst.msk [vmem:[#allocation0] ss:$8 sm:$0xf0] %vm3_vm0, %v2_v1  }
  0x74   :  { %v9_v2 = vpop.permute.xlu0 %8  }
  0x75   :  { %11 = vst.msk [vmem:[#allocation0] ss:$8 sm:$0xf] %vm10_vm1, %v9_v2   ;;  %12 = vst.msk [vmem:[#allocation0] ss:$8 sm:$0xf0] %vm10_vm1, %v9_v2  }
  0x7c   :  { %v16_v3 = vld [vmem:[#allocation0] sm:$0x1]  ;;  %v20_v4 = vld [vmem:[#allocation0 + $0x8] sm:$0x1]  ;;  %v25_v5 = vld [vmem:[#allocation0 + $0x10] sm:$0x1] }
  0x7d   :  { %18 = vst [vmem:[%s117_s1] sm:$0x1] %v16_v3  ;;  %67 = vst [vmem:[%s117_s1 + $0x1] sm:$0x1] %v20_v4  ;;  %v31_v6 = vld [vmem:[#allocation0 + $0x18] sm:$0x1] }
  0x7e   :  { %68 = vst [vmem:[%s117_s1 + $0x2] sm:$0x1] %v25_v5  ;;  %v37_v7 = vld [vmem:[#allocation0 + $0x20] sm:$0x1]  ;;  %v43_v8 = vld [vmem:[#allocation0 + $0x28] sm:$0x1] }
  0x7f   :  { %69 = vst [vmem:[%s117_s1 + $0x3] sm:$0x1] %v31_v6  ;;  %70 = vst [vmem:[%s117_s1 + $0x4] sm:$0x1] %v37_v7  ;;  %v49_v9 = vld [vmem:[#allocation0 + $0x30] sm:$0x1] }
  0x80   :  { %71 = vst [vmem:[%s117_s1 + $0x5] sm:$0x1] %v43_v8  ;;  %v55_v10 = vld [vmem:[#allocation0 + $0x38] sm:$0x1]  ;;  %72 = vst [vmem:[%s117_s1 + $0x6] sm:$0x1] %v49_v9 }
  0x81   :  { %73 = vst [vmem:[%s117_s1 + $0x7] sm:$0x1] %v55_v10 }

// kernel: netG_forward.6
= control target key start
LH: loop header
LB: loop body
LE: loop exit
PB: predicated region body
PF: predicated region fallthrough
CT: control target
= control target key end

     0   :  { %s1031_s12 = smov 0   ;;  %s1033_s13 = smov 0   ;;  %s1257_s0 = inlined_call_operand.vmem [shape: bf16[32,128], index: 0, kind: input, shape index: {}]   ;;  %s1258_s1 = inlined_call_operand.vmem [shape: bf16[128,1024], index: 1, kind: input, shape index: {}]   ;;  %s1259_s2 = inlined_call_operand.vmem [shape: f32[1,1024], index: 2, kind: input, shape index: {}]   ;;  %s1260_s3 = inlined_call_operand.vmem [shape: f32[32,1024], index: 3, kind: output, shape index: {}]  }
   0x1   :  { %s1035_s14 = smov 0   ;;  %s1037_s15 = smov 0  }
   0x2   :  { %s1039_s16 = smov 0  }
   0x3 LB: > { %s22_s17 = sadd.s32 1, %s1004_s15  ;;  %s826_s18 = sadd.s32 4294967295, %s1008_s16   ;;  %s1008_s16 = sphi %s1039_s16, %s13_s16   ;;  %s1004_s15 = sphi %s1037_s15, %s1265_s15   ;;  %s1000_s14 = sphi %s1035_s14, %s1264_s14   ;;  %s996_s13 = sphi %s1033_s13, %s1263_s13   ;;  %s992_s12 = sphi %s1031_s12, %s1262_s12  }
   0x4   : > { %p23_p0 = scmp.ge.s32.totalorder %s22_s17, 2  ;;  %p65_p1 = scmp.ne.s32.totalorder %s996_s13, %s992_s12 }
   0x5   : > { %p66_p2 = scmp.eq.s32.totalorder %s1008_s16, 0  ;;  %p123_p4 = scmp.eq.s32.totalorder %s826_s18, 1 }
   0x6   : > { %s1267_s17 = smov (%p23_p0, %s22_s17), 0  ;;  %s58_s20 = sadd.s32 1, %s996_s13 }
   0x7   : > { %p67_p3 = por %p66_p2, %p65_p1  ;;  %s55_s19 = ssub.s32 %s1004_s15, %s1267_s17 }
   0x8   : > { %p56_p5 = scmp.eq.s32.totalorder %s55_s19, 0  ;;  %p1066_p6 = por %p123_p4, %p65_p1 }
   0x9   : > { %p830_p7 = scmp.ge.s32.totalorder %s1008_s16, 2 }
   0xa   : > { %s1071_s22 = scalar_select %p56_p5, %s996_s13, %s58_s20  }
   0xb   : > { %154 = sbr.rel (%p830_p7) target bundleno = 38 (0x26), region = 20 }
  0x12   : > { %157 = sbr.rel (!%p67_p3) target bundleno = 38 (0x26), region = 24  ;;  %s159_s23 = sand.u32 (%p67_p3), 1, %s996_s13  }
  0x13   : > { %s877_s24 = sshll.u32 (%p67_p3), %s1004_s15, 4  ;;  %s831_s25 = sshll.u32 (%p67_p3), %s159_s23, 8 }
  0x14   : > { %s1079_s28 = scalar_lea.vmem (%p67_p3), %s1258_s1, %s877_s24  ;;  %s1084_s29 = scalar_lea.vmem (%p67_p3), [#allocation2], %s831_s25 }
  0x15   : > { %v177_v0 = vld [vmem:[%s1079_s28] sm:$0xff] (%p67_p3)  ;;  %v179_v1 = vld [vmem:[%s1079_s28 + $0x8] sm:$0xff] (%p67_p3) }
  0x16   : > { %v181_v2 = vld [vmem:[%s1079_s28 + $0x20] sm:$0xff] (%p67_p3)  ;;  %178 = vst [vmem:[%s1084_s29] sm:$0xff] (%p67_p3), %v177_v0  ;;  %180 = vst [vmem:[%s1084_s29 + $0x8] sm:$0xff] (%p67_p3), %v179_v1  ;;  %v183_v3 = vld [vmem:[%s1079_s28 + $0x28] sm:$0xff] (%p67_p3) }
  0x17   : > { %182 = vst [vmem:[%s1084_s29 + $0x10] sm:$0xff] (%p67_p3), %v181_v2  ;;  %v185_v4 = vld [vmem:[%s1079_s28 + $0x40] sm:$0xff] (%p67_p3)  ;;  %v187_v5 = vld [vmem:[%s1079_s28 + $0x48] sm:$0xff] (%p67_p3)  ;;  %184 = vst [vmem:[%s1084_s29 + $0x18] sm:$0xff] (%p67_p3), %v183_v3 }
  0x18   : > { %186 = vst [vmem:[%s1084_s29 + $0x20] sm:$0xff] (%p67_p3), %v185_v4  ;;  %188 = vst [vmem:[%s1084_s29 + $0x28] sm:$0xff] (%p67_p3), %v187_v5  ;;  %v189_v6 = vld [vmem:[%s1079_s28 + $0x60] sm:$0xff] (%p67_p3)  ;;  %v191_v7 = vld [vmem:[%s1079_s28 + $0x68] sm:$0xff] (%p67_p3) }
  0x19   : > { %v193_v8 = vld [vmem:[%s1079_s28 + $0x80] sm:$0xff]  ;;  %190 = vst [vmem:[%s1084_s29 + $0x30] sm:$0xff] %v189_v6  ;;  %192 = vst [vmem:[%s1084_s29 + $0x38] sm:$0xff] %v191_v7  ;;  %v195_v9 = vld [vmem:[%s1079_s28 + $0x88] sm:$0xff] }
  0x1a   : > { %194 = vst [vmem:[%s1084_s29 + $0x40] sm:$0xff] %v193_v8  ;;  %v197_v10 = vld [vmem:[%s1079_s28 + $0xa0] sm:$0xff]  ;;  %v199_v11 = vld [vmem:[%s1079_s28 + $0xa8] sm:$0xff]  ;;  %196 = vst [vmem:[%s1084_s29 + $0x48] sm:$0xff] %v195_v9 }
  0x1b   : > { %198 = vst [vmem:[%s1084_s29 + $0x50] sm:$0xff] %v197_v10  ;;  %200 = vst [vmem:[%s1084_s29 + $0x58] sm:$0xff] %v199_v11  ;;  %v201_v12 = vld [vmem:[%s1079_s28 + $0xc0] sm:$0xff]  ;;  %v203_v13 = vld [vmem:[%s1079_s28 + $0xc8] sm:$0xff] }
  0x1c   : > { %v205_v14 = vld [vmem:[%s1079_s28 + $0xe0] sm:$0xff]  ;;  %202 = vst [vmem:[%s1084_s29 + $0x60] sm:$0xff] %v201_v12  ;;  %204 = vst [vmem:[%s1084_s29 + $0x68] sm:$0xff] %v203_v13  ;;  %v207_v15 = vld [vmem:[%s1079_s28 + $0xe8] sm:$0xff] }
  0x1d   : > { %206 = vst [vmem:[%s1084_s29 + $0x70] sm:$0xff] %v205_v14  ;;  %v209_v16 = vld [vmem:[%s1079_s28 + $0x100] sm:$0xff]  ;;  %v211_v17 = vld [vmem:[%s1079_s28 + $0x108] sm:$0xff]  ;;  %208 = vst [vmem:[%s1084_s29 + $0x78] sm:$0xff] %v207_v15 }
  0x1e   : > { %210 = vst [vmem:[%s1084_s29 + $0x80] sm:$0xff] %v209_v16  ;;  %212 = vst [vmem:[%s1084_s29 + $0x88] sm:$0xff] %v211_v17  ;;  %v213_v18 = vld [vmem:[%s1079_s28 + $0x120] sm:$0xff]  ;;  %v215_v19 = vld [vmem:[%s1079_s28 + $0x128] sm:$0xff] }
  0x1f   : > { %v217_v20 = vld [vmem:[%s1079_s28 + $0x140] sm:$0xff]  ;;  %214 = vst [vmem:[%s1084_s29 + $0x90] sm:$0xff] %v213_v18  ;;  %216 = vst [vmem:[%s1084_s29 + $0x98] sm:$0xff] %v215_v19  ;;  %v219_v21 = vld [vmem:[%s1079_s28 + $0x148] sm:$0xff] }
  0x20   : > { %218 = vst [vmem:[%s1084_s29 + $0xa0] sm:$0xff] %v217_v20  ;;  %v221_v22 = vld [vmem:[%s1079_s28 + $0x160] sm:$0xff]  ;;  %v223_v23 = vld [vmem:[%s1079_s28 + $0x168] sm:$0xff]  ;;  %220 = vst [vmem:[%s1084_s29 + $0xa8] sm:$0xff] %v219_v21 }
  0x21   : > { %222 = vst [vmem:[%s1084_s29 + $0xb0] sm:$0xff] %v221_v22  ;;  %224 = vst [vmem:[%s1084_s29 + $0xb8] sm:$0xff] %v223_v23  ;;  %v225_v24 = vld [vmem:[%s1079_s28 + $0x180] sm:$0xff]  ;;  %v227_v25 = vld [vmem:[%s1079_s28 + $0x188] sm:$0xff] }
  0x22   : > { %v229_v26 = vld [vmem:[%s1079_s28 + $0x1a0] sm:$0xff]  ;;  %226 = vst [vmem:[%s1084_s29 + $0xc0] sm:$0xff] %v225_v24  ;;  %228 = vst [vmem:[%s1084_s29 + $0xc8] sm:$0xff] %v227_v25  ;;  %v231_v27 = vld [vmem:[%s1079_s28 + $0x1a8] sm:$0xff] }
  0x23   : > { %230 = vst [vmem:[%s1084_s29 + $0xd0] sm:$0xff] %v229_v26  ;;  %v233_v28 = vld [vmem:[%s1079_s28 + $0x1c0] sm:$0xff]  ;;  %v235_v29 = vld [vmem:[%s1079_s28 + $0x1c8] sm:$0xff]  ;;  %232 = vst [vmem:[%s1084_s29 + $0xd8] sm:$0xff] %v231_v27 }
  0x24   : > { %234 = vst [vmem:[%s1084_s29 + $0xe0] sm:$0xff] %v233_v28  ;;  %236 = vst [vmem:[%s1084_s29 + $0xe8] sm:$0xff] %v235_v29  ;;  %v237_v30 = vld [vmem:[%s1079_s28 + $0x1e0] sm:$0xff]  ;;  %v239_v31 = vld [vmem:[%s1079_s28 + $0x1e8] sm:$0xff] }
  0x25   : > { %238 = vst [vmem:[%s1084_s29 + $0xf0] sm:$0xff] %v237_v30  ;;  %240 = vst [vmem:[%s1084_s29 + $0xf8] sm:$0xff] %v239_v31 }
  0x26 PF: > { %p834_p8 = scmp.ge.s32.totalorder %s1008_s16, 1  ;;  %p253_p9 = scmp.lt.s32.totalorder %s1008_s16, 3 }
  0x28   : > { %p254_p10 = pnand %p834_p8, %p253_p9 }
  0x29   : > { %s260_s30 = sand.u32 (!%p254_p10), 1, %s992_s12   ;;  %v1010_v32 = vmov (!%p254_p10), 0   ;;  %v968_v1 = vld [vmem:[%s1257_s0] sm:$0xff] (!%p254_p10)   ;;  %v969_v2 = vld [vmem:[%s1257_s0 + $0x8] sm:$0xff] (!%p254_p10)   ;;  %s837_s10 = sshll.u32 (!%p254_p10), %s1000_s14, 2  ;;  %v622_v3 = vlaneseq (!%p254_p10) }
  0x2a   : > { %257 = sbr.rel (%p254_p10) target bundleno = 311 (0x137), region = 51  ;;  %s835_s4 = sshll.u32 (!%p254_p10), %s260_s30, 8  ;;  %546 = vmatprep.mubr.bf16.mxu0 (!%p254_p10), %v1010_v32  ;;  %599 = vmatprep.mubr.bf16.mxu1 (!%p254_p10), %v1010_v32 }
  0x2b   : > { %s1154_s5 = scalar_lea.vmem (!%p254_p10), [#allocation2], %s835_s4  ;;  %p299_p11 = scmp.lt.s32.totalorder (!%p254_p10), %s837_s10, 7  ;;  %v623_v4 = vshrl.u32 (!%p254_p10), %v622_v3, 7 }
  0x2c   : > { %v920_v33 = vld [vmem:[%s1154_s5 + $0x4] ss:$16 sps:$4 sm:$0xff] (!%p254_p10)   ;;  %v922_v34 = vld [vmem:[%s1154_s5 + $0xc] ss:$16 sps:$4 sm:$0xff] (!%p254_p10)   ;;  %v924_v35 = vld [vmem:[%s1154_s5] ss:$16 sps:$4 sm:$0xff] (!%p254_p10)  }
  0x2d   : > { %514 = vmatprep.subr.bf16.mxu0 (!%p254_p10), %v920_v33  ;;  %v925_v36 = vld [vmem:[%s1154_s5 + $0x8] ss:$16 sps:$4 sm:$0xff] (!%p254_p10)   ;;  %567 = vmatprep.subr.bf16.mxu1 (!%p254_p10), %v922_v34  ;;  %v926_v37 = vld [vmem:[%s1154_s5 + $0x24] ss:$16 sps:$4 sm:$0xff] (!%p254_p10)   ;;  %v928_v38 = vld [vmem:[%s1154_s5 + $0x2c] ss:$16 sps:$4 sm:$0xff] (!%p254_p10)  }
  0x2e   : > { %515 = vmatpush1.bf16.msra.mxu0 (!%p254_p10), %v924_v35  ;;  %568 = vmatpush1.bf16.msra.mxu1 (!%p254_p10), %v925_v36  ;;  %v930_v39 = vld [vmem:[%s1154_s5 + $0x20] ss:$16 sps:$4 sm:$0xff] (!%p254_p10)   ;;  %v931_v40 = vld [vmem:[%s1154_s5 + $0x28] ss:$16 sps:$4 sm:$0xff] (!%p254_p10)   ;;  %v932_v41 = vld [vmem:[%s1154_s5 + $0x44] ss:$16 sps:$4 sm:$0xff] (!%p254_p10)  }
  0x2f   : > { %516 = vmatprep.subr.bf16.mxu0 (!%p254_p10), %v926_v37  ;;  %569 = vmatprep.subr.bf16.mxu1 (!%p254_p10), %v928_v38  ;;  %v934_v42 = vld [vmem:[%s1154_s5 + $0x4c] ss:$16 sps:$4 sm:$0xff] (!%p254_p10)   ;;  %v936_v43 = vld [vmem:[%s1154_s5 + $0x40] ss:$16 sps:$4 sm:$0xff] (!%p254_p10)   ;;  %v937_v44 = vld [vmem:[%s1154_s5 + $0x48] ss:$16 sps:$4 sm:$0xff] (!%p254_p10)  }
  0x30   : > { %v938_v45 = vld [vmem:[%s1154_s5 + $0x64] ss:$16 sps:$4 sm:$0xff] (!%p254_p10)   ;;  %v940_v46 = vld [vmem:[%s1154_s5 + $0x6c] ss:$16 sps:$4 sm:$0xff] (!%p254_p10)   ;;  %v942_v47 = vld [vmem:[%s1154_s5 + $0x60] ss:$16 sps:$4 sm:$0xff] (!%p254_p10)  }
  0x31   : > { %v943_v48 = vld [vmem:[%s1154_s5 + $0x68] ss:$16 sps:$4 sm:$0xff]   ;;  %v944_v49 = vld [vmem:[%s1154_s5 + $0x84] ss:$16 sps:$4 sm:$0xff]   ;;  %v946_v50 = vld [vmem:[%s1154_s5 + $0x8c] ss:$16 sps:$4 sm:$0xff]  }
  0x32   : > { %517 = vmatpush1.bf16.msra.mxu0 %v930_v39  ;;  %570 = vmatpush1.bf16.msra.mxu1 %v931_v40  ;;  %v948_v51 = vld [vmem:[%s1154_s5 + $0x80] ss:$16 sps:$4 sm:$0xff]   ;;  %v949_v52 = vld [vmem:[%s1154_s5 + $0x88] ss:$16 sps:$4 sm:$0xff]   ;;  %v950_v53 = vld [vmem:[%s1154_s5 + $0xa4] ss:$16 sps:$4 sm:$0xff]  }
  0x33   : > { %518 = vmatprep.subr.bf16.mxu0 %v932_v41  ;;  %571 = vmatprep.subr.bf16.mxu1 %v934_v42  ;;  %v952_v54 = vld [vmem:[%s1154_s5 + $0xac] ss:$16 sps:$4 sm:$0xff]   ;;  %v954_v55 = vld [vmem:[%s1154_s5 + $0xa0] ss:$16 sps:$4 sm:$0xff]   ;;  %v955_v56 = vld [vmem:[%s1154_s5 + $0xa8] ss:$16 sps:$4 sm:$0xff]  }
  0x34   : > { %v956_v57 = vld [vmem:[%s1154_s5 + $0xc4] ss:$16 sps:$4 sm:$0xff]   ;;  %v958_v58 = vld [vmem:[%s1154_s5 + $0xcc] ss:$16 sps:$4 sm:$0xff]   ;;  %v960_v59 = vld [vmem:[%s1154_s5 + $0xc0] ss:$16 sps:$4 sm:$0xff]  }
  0x35   : > { %v961_v60 = vld [vmem:[%s1154_s5 + $0xc8] ss:$16 sps:$4 sm:$0xff]   ;;  %v962_v61 = vld [vmem:[%s1154_s5 + $0xe4] ss:$16 sps:$4 sm:$0xff]   ;;  %v964_v62 = vld [vmem:[%s1154_s5 + $0xec] ss:$16 sps:$4 sm:$0xff]  }
  0x36   : > { %519 = vmatpush1.bf16.msra.mxu0 %v936_v43  ;;  %572 = vmatpush1.bf16.msra.mxu1 %v937_v44  ;;  %v966_v63 = vld [vmem:[%s1154_s5 + $0xe0] ss:$16 sps:$4 sm:$0xff]   ;;  %v967_v0 = vld [vmem:[%s1154_s5 + $0xe8] ss:$16 sps:$4 sm:$0xff]   ;;  %s1269_s10 = smov (!%p299_p11, %s837_s10), 7  ;;  %v624_v5 = vsub.s32 0, %v623_v4 }
  0x37   : > { %520 = vmatprep.subr.bf16.mxu0 %v938_v45  ;;  %573 = vmatprep.subr.bf16.mxu1 %v940_v46  ;;  %s301_s19 = scalar_lea.vmem %s1259_s2, %s1269_s10  ;;  %v632_v6 = vsub.s32 2, %v623_v4  ;;  %v628_v8 = vsub.s32 1, %v623_v4  ;;  %v636_v9 = vsub.s32 3, %v623_v4  ;;  %s836_s20 = sshll.u32 %s260_s30, 7 }
  0x38   : > { %v620_v7 = vld [vmem:[%s301_s19] sm:$0xf]  ;;  %s1202_s23 = scalar_lea.vmem [#allocation3], %s836_s20  ;;  %s878_s12 = sshll.u32 (%p1066_p6), %s1000_s14, 5 }
  0x39   : > { %v625_v10 = vrot.slane %v620_v7, %v624_v5  ;;  %v633_v11 = vrot.slane %v620_v7, %v632_v6  ;;  %v629_v12 = vrot.slane %v620_v7, %v628_v8  ;;  %v637_v13 = vrot.slane %v620_v7, %v636_v9  ;;  %s686_s26 = scalar_lea.vmem (%p1066_p6), %s1260_s3, %s878_s12 }
  0x3a   : > { %521 = vmatpush1.bf16.msra.mxu0 %v942_v47  ;;  %574 = vmatpush1.bf16.msra.mxu1 %v943_v48 }
  0x3b   : > { %522 = vmatprep.subr.bf16.mxu0 %v944_v49  ;;  %575 = vmatprep.subr.bf16.mxu1 %v946_v50 }
  0x3e   : > { %523 = vmatpush1.bf16.msra.mxu0 %v948_v51  ;;  %576 = vmatpush1.bf16.msra.mxu1 %v949_v52 }
  0x3f   : > { %524 = vmatprep.subr.bf16.mxu0 %v950_v53  ;;  %577 = vmatprep.subr.bf16.mxu1 %v952_v54 }
  0x42   : > { %525 = vmatpush1.bf16.msra.mxu0 %v954_v55  ;;  %578 = vmatpush1.bf16.msra.mxu1 %v955_v56 }
  0x43   : > { %526 = vmatprep.subr.bf16.mxu0 %v956_v57  ;;  %579 = vmatprep.subr.bf16.mxu1 %v958_v58 }
  0x46   : > { %527 = vmatpush1.bf16.msra.mxu0 %v960_v59  ;;  %580 = vmatpush1.bf16.msra.mxu1 %v961_v60 }
  0x47   : > { %528 = vmatprep.subr.bf16.mxu0 %v962_v61  ;;  %581 = vmatprep.subr.bf16.mxu1 %v964_v62 }
  0x4a   : > { %529 = vmatpush1.bf16.msra.mxu0 %v966_v63  ;;  %582 = vmatpush1.bf16.msra.mxu1 %v967_v0 }
  0x4d   : > { %547 = vmatmul.mubr.bf16.vlgmr.msra.gmra.mrb[0].mxu0 %v968_v1  ;;  %600 = vmatmul.mubr.bf16.vlgmr.msra.gmra.mrb[0].mxu1 %v968_v1 }
  0x4e   : > { %556 = vmatprep.mubr.bf16.mxu0 %v1010_v32  ;;  %609 = vmatprep.mubr.bf16.mxu1 %v1010_v32 }
  0x55   : > { %557 = vmatmul.mubr.bf16.gmra.mrb[4].mxu0 %v969_v2  ;;  %610 = vmatmul.mubr.bf16.gmra.mrb[4].mxu1 %v969_v2 }
 0x120   : > { %v548_v14 = vpop.f32.mrb[0].mxu0  ;;  %v601_v15 = vpop.f32.mrb[0].mxu1 }
 0x121   : > { %v642_v16 = vmul.f32 %v625_v10, %v548_v14  ;;  %v644_v17 = vmul.f32 %v633_v11, %v601_v15  ;;  %v550_v18 = vpop.f32.mrb[1].mxu0  ;;  %v603_v19 = vpop.f32.mrb[1].mxu1 }
 0x122   : > { %v643_v20 = vmul.f32 %v629_v12, %v550_v18  ;;  %v645_v21 = vmul.f32 %v637_v13, %v603_v19  ;;  %v552_v22 = vpop.f32.mrb[2].mxu0  ;;  %v605_v23 = vpop.f32.mrb[2].mxu1 }
 0x123   : > { %658 = vst [vmem:[%s1202_s23] sm:$0xff] %v642_v16  ;;  %660 = vst [vmem:[%s1202_s23 + $0x10] sm:$0xff] %v644_v17  ;;  %v646_v24 = vmul.f32 %v625_v10, %v552_v22  ;;  %v648_v25 = vmul.f32 %v633_v11, %v605_v23  ;;  %v554_v26 = vpop.f32.mrb[3].mxu0  ;;  %v607_v27 = vpop.f32.mrb[3].mxu1 }
 0x124   : > { %659 = vst [vmem:[%s1202_s23 + $0x8] sm:$0xff] %v643_v20  ;;  %661 = vst [vmem:[%s1202_s23 + $0x18] sm:$0xff] %v645_v21  ;;  %v647_v28 = vmul.f32 %v629_v12, %v554_v26  ;;  %v649_v29 = vmul.f32 %v637_v13, %v607_v27 }
 0x125   : > { %662 = vst [vmem:[%s1202_s23 + $0x20] sm:$0xff] %v646_v24  ;;  %664 = vst [vmem:[%s1202_s23 + $0x30] sm:$0xff] %v648_v25 }
 0x126   : > { %663 = vst [vmem:[%s1202_s23 + $0x28] sm:$0xff] %v647_v28  ;;  %665 = vst [vmem:[%s1202_s23 + $0x38] sm:$0xff] %v649_v29 }
 0x128   : > { %v558_v30 = vpop.f32.mrb[4].mxu0  ;;  %v611_v31 = vpop.f32.mrb[4].mxu1  ;;  %680 = sbr.rel (!%p1066_p6) target bundleno = 311 (0x137), region = 59 }
 0x129   : > { %v650_v32 = vmul.f32 %v625_v10, %v558_v30  ;;  %v652_v33 = vmul.f32 %v633_v11, %v611_v31  ;;  %v560_v34 = vpop.f32.mrb[5].mxu0  ;;  %v613_v35 = vpop.f32.mrb[5].mxu1 }
 0x12a   : > { %v651_v36 = vmul.f32 %v629_v12, %v560_v34  ;;  %v653_v37 = vmul.f32 %v637_v13, %v613_v35  ;;  %v562_v38 = vpop.f32.mrb[6].mxu0  ;;  %v615_v39 = vpop.f32.mrb[6].mxu1  ;;  %v699_v46 = vld [vmem:[%s1202_s23] sm:$0xff] (%p1066_p6)  ;;  %v703_v48 = vld [vmem:[%s1202_s23 + $0x10] sm:$0xff] (%p1066_p6) }
 0x12b   : > { %666 = vst [vmem:[%s1202_s23 + $0x40] sm:$0xff] %v650_v32  ;;  %668 = vst [vmem:[%s1202_s23 + $0x50] sm:$0xff] %v652_v33  ;;  %v654_v40 = vmul.f32 %v625_v10, %v562_v38  ;;  %v656_v41 = vmul.f32 %v633_v11, %v615_v39  ;;  %v564_v42 = vpop.f32.mrb[7].mxu0  ;;  %v617_v43 = vpop.f32.mrb[7].mxu1  ;;  %v701_v47 = vld [vmem:[%s1202_s23 + $0x8] sm:$0xff] (%p1066_p6)  ;;  %v705_v49 = vld [vmem:[%s1202_s23 + $0x18] sm:$0xff] (%p1066_p6) }
 0x12c   : > { %667 = vst [vmem:[%s1202_s23 + $0x48] sm:$0xff] %v651_v36  ;;  %669 = vst [vmem:[%s1202_s23 + $0x58] sm:$0xff] %v653_v37  ;;  %v655_v44 = vmul.f32 %v629_v12, %v564_v42  ;;  %v657_v45 = vmul.f32 %v637_v13, %v617_v43  ;;  %v707_v50 = vld [vmem:[%s1202_s23 + $0x20] sm:$0xff] (%p1066_p6)  ;;  %v711_v52 = vld [vmem:[%s1202_s23 + $0x30] sm:$0xff] (%p1066_p6) }
 0x12d   : > { %670 = vst [vmem:[%s1202_s23 + $0x60] sm:$0xff] %v654_v40  ;;  %672 = vst [vmem:[%s1202_s23 + $0x70] sm:$0xff] %v656_v41  ;;  %v709_v51 = vld [vmem:[%s1202_s23 + $0x28] sm:$0xff] (%p1066_p6)  ;;  %v713_v53 = vld [vmem:[%s1202_s23 + $0x38] sm:$0xff] (%p1066_p6) }
 0x12e   : > { %671 = vst [vmem:[%s1202_s23 + $0x68] sm:$0xff] %v655_v44  ;;  %673 = vst [vmem:[%s1202_s23 + $0x78] sm:$0xff] %v657_v45 }
 0x12f   : > { %700 = vst [vmem:[%s686_s26] sm:$0xff] %v699_v46  ;;  %702 = vst [vmem:[%s686_s26 + $0x8] sm:$0xff] %v701_v47 }
 0x130   : > { %704 = vst [vmem:[%s686_s26 + $0x10] sm:$0xff] %v703_v48  ;;  %706 = vst [vmem:[%s686_s26 + $0x18] sm:$0xff] %v705_v49 }
 0x131   : > { %708 = vst [vmem:[%s686_s26 + $0x40] sm:$0xff] %v707_v50  ;;  %710 = vst [vmem:[%s686_s26 + $0x48] sm:$0xff] %v709_v51 }
 0x132   : > { %v715_v54 = vld [vmem:[%s1202_s23 + $0x40] sm:$0xff]  ;;  %712 = vst [vmem:[%s686_s26 + $0x50] sm:$0xff] %v711_v52  ;;  %714 = vst [vmem:[%s686_s26 + $0x58] sm:$0xff] %v713_v53  ;;  %v719_v56 = vld [vmem:[%s1202_s23 + $0x50] sm:$0xff] }
 0x133   : > { %716 = vst [vmem:[%s686_s26 + $0x80] sm:$0xff] %v715_v54  ;;  %v717_v55 = vld [vmem:[%s1202_s23 + $0x48] sm:$0xff]  ;;  %v721_v57 = vld [vmem:[%s1202_s23 + $0x58] sm:$0xff]  ;;  %720 = vst [vmem:[%s686_s26 + $0x90] sm:$0xff] %v719_v56 }
 0x134   : > { %718 = vst [vmem:[%s686_s26 + $0x88] sm:$0xff] %v717_v55  ;;  %722 = vst [vmem:[%s686_s26 + $0x98] sm:$0xff] %v721_v57  ;;  %v723_v58 = vld [vmem:[%s1202_s23 + $0x60] sm:$0xff]  ;;  %v727_v60 = vld [vmem:[%s1202_s23 + $0x70] sm:$0xff] }
 0x135   : > { %v725_v59 = vld [vmem:[%s1202_s23 + $0x68] sm:$0xff]  ;;  %724 = vst [vmem:[%s686_s26 + $0xc0] sm:$0xff] %v723_v58  ;;  %728 = vst [vmem:[%s686_s26 + $0xd0] sm:$0xff] %v727_v60  ;;  %v729_v61 = vld [vmem:[%s1202_s23 + $0x78] sm:$0xff] }
 0x136   : > { %726 = vst [vmem:[%s686_s26 + $0xc8] sm:$0xff] %v725_v59  ;;  %730 = vst [vmem:[%s686_s26 + $0xd8] sm:$0xff] %v729_v61 }
 0x137 PF: > { %s13_s16 = sadd.s32 1, %s1008_s16   ;;  %s1262_s12 = smov %s996_s13 }
 0x138   : > { %p10_p12 = scmp.ge.s32.totalorder %s13_s16, 4   ;;  %s1263_s13 = smov %s1071_s22 }
 0x139   : > { %s1264_s14 = smov %s1004_s15  ;;  %s1265_s15 = smov %s1267_s17 }
 0x13a   :  { %12 = sbr.rel (!%p10_p12) target bundleno = 3 (0x3), region = 119 }

// kernel: netG_forward.5
= control target key start
LH: loop header
LB: loop body
LE: loop exit
PB: predicated region body
PF: predicated region fallthrough
CT: control target
= control target key end

     0   :  { %s682_s12 = smov 0   ;;  %s684_s13 = smov 0   ;;  %s753_s0 = inlined_call_operand.vmem [shape: bf16[8,32], index: 0, kind: input, shape index: {}]   ;;  %s754_s1 = inlined_call_operand.vmem [shape: bf16[32,2048], index: 1, kind: input, shape index: {}]   ;;  %s755_s2 = inlined_call_operand.vmem [shape: f32[1,2048], index: 2, kind: input, shape index: {}]   ;;  %s756_s3 = inlined_call_operand.vmem [shape: f32[8,2048], index: 3, kind: output, shape index: {}]  }
   0x1   :  { %s686_s14 = smov 0   ;;  %s688_s15 = smov 0  }
   0x2   :  { %s690_s16 = smov 0  }
   0x3 LB: > { %s22_s17 = sadd.s32 1, %s655_s15  ;;  %p65_p1 = scmp.ne.s32.totalorder %s647_s13, %s643_s12  ;;  %s659_s16 = sphi %s690_s16, %s13_s16   ;;  %s655_s15 = sphi %s688_s15, %s760_s15   ;;  %s651_s14 = sphi %s686_s14, %s759_s14   ;;  %s647_s13 = sphi %s684_s13, %s758_s13   ;;  %s643_s12 = sphi %s682_s12, %s757_s12  }
   0x4   : > { %p23_p0 = scmp.ge.s32.totalorder %s22_s17, 4  ;;  %p66_p2 = scmp.eq.s32.totalorder %s659_s16, 0 }
   0x5   : > { %s58_s19 = sadd.s32 1, %s647_s13  ;;  %p546_p5 = scmp.ge.s32.totalorder %s659_s16, 4 }
   0x6   : > { %s762_s17 = smov (%p23_p0, %s22_s17), 0  ;;  %p67_p3 = por %p66_p2, %p65_p1 }
   0x7   : > { %s55_s18 = ssub.s32 %s655_s15, %s762_s17  ;;  %152 = sbr.rel (%p546_p5) target bundleno = 22 (0x16), region = 20 }
   0x8   : > { %p56_p4 = scmp.eq.s32.totalorder %s55_s18, 0 }
   0xa   : > { %s717_s20 = scalar_select %p56_p4, %s647_s13, %s58_s19  }
   0xe   : > { %155 = sbr.rel (!%p67_p3) target bundleno = 22 (0x16), region = 24  ;;  %s157_s21 = sand.u32 (%p67_p3), 1, %s647_s13  }
   0xf   : > { %s567_s22 = sshll.u32 (%p67_p3), %s655_s15, 4  ;;  %s547_s23 = sshll.u32 (%p67_p3), %s157_s21, 6 }
  0x10   : > { %s162_s26 = scalar_lea.vmem (%p67_p3), %s754_s1, %s567_s22  ;;  %s159_s27 = scalar_lea.vmem (%p67_p3), [#allocation2], %s547_s23 }
  0x11   : > { %v175_v0 = vld [vmem:[%s162_s26] sm:$0xff] (%p67_p3)  ;;  %v177_v1 = vld [vmem:[%s162_s26 + $0x8] sm:$0xff] (%p67_p3) }
  0x12   : > { %v179_v2 = vld [vmem:[%s162_s26 + $0x40] sm:$0xff] (%p67_p3)  ;;  %176 = vst [vmem:[%s159_s27] sm:$0xff] (%p67_p3), %v175_v0  ;;  %178 = vst [vmem:[%s159_s27 + $0x8] sm:$0xff] (%p67_p3), %v177_v1  ;;  %v181_v3 = vld [vmem:[%s162_s26 + $0x48] sm:$0xff] (%p67_p3) }
  0x13   : > { %180 = vst [vmem:[%s159_s27 + $0x10] sm:$0xff] (%p67_p3), %v179_v2  ;;  %v183_v4 = vld [vmem:[%s162_s26 + $0x80] sm:$0xff] (%p67_p3)  ;;  %v185_v5 = vld [vmem:[%s162_s26 + $0x88] sm:$0xff] (%p67_p3)  ;;  %182 = vst [vmem:[%s159_s27 + $0x18] sm:$0xff] (%p67_p3), %v181_v3 }
  0x14   : > { %184 = vst [vmem:[%s159_s27 + $0x20] sm:$0xff] (%p67_p3), %v183_v4  ;;  %186 = vst [vmem:[%s159_s27 + $0x28] sm:$0xff] (%p67_p3), %v185_v5  ;;  %v187_v6 = vld [vmem:[%s162_s26 + $0xc0] sm:$0xff] (%p67_p3)  ;;  %v189_v7 = vld [vmem:[%s162_s26 + $0xc8] sm:$0xff] (%p67_p3) }
  0x15   : > { %188 = vst [vmem:[%s159_s27 + $0x30] sm:$0xff] %v187_v6  ;;  %190 = vst [vmem:[%s159_s27 + $0x38] sm:$0xff] %v189_v7 }
  0x16 PF: > { %p550_p6 = scmp.ge.s32.totalorder %s659_s16, 1  ;;  %p203_p7 = scmp.lt.s32.totalorder %s659_s16, 5 }
  0x18   : > { %p204_p8 = pnand %p550_p6, %p203_p7 }
  0x19   : > { %s210_s28 = sand.u32 (!%p204_p8), 1, %s643_s12   ;;  %v661_v8 = vmov (!%p204_p8), 0   ;;  %v266_v17 = vld [vmem:[%s753_s0] sm:$0xf] (!%p204_p8)  ;;  %vm315_vm0 = vcmask (!%p204_p8), 261120   ;;  %s552_s6 = sshll.u32 (!%p204_p8), %s651_s14, 2  ;;  %v403_v18 = vlaneseq (!%p204_p8) }
  0x1a   : > { %207 = sbr.rel (%p204_p8) target bundleno = 253 (0xfd), region = 51  ;;  %s551_s29 = sshll.u32 (!%p204_p8), %s210_s28, 6  ;;  %351 = vmatprep.mubr.bf16.mxu0 (!%p204_p8), %v661_v8  ;;  %392 = vmatprep.mubr.bf16.mxu1 (!%p204_p8), %v661_v8 }
  0x1b   : > { %s212_s30 = scalar_lea.vmem (!%p204_p8), [#allocation2], %s551_s29  ;;  %p251_p9 = scmp.lt.s32.totalorder (!%p204_p8), %s552_s6, 15  ;;  %v404_v19 = vshrl.u32 (!%p204_p8), %v403_v18, 7 }
  0x1c   : > { %v609_v9 = vld [vmem:[%s212_s30 + $0x4] ss:$16 sps:$4 sm:$0xff] (!%p204_p8)   ;;  %v611_v10 = vld [vmem:[%s212_s30 + $0xc] ss:$16 sps:$4 sm:$0xff] (!%p204_p8)   ;;  %v613_v11 = vld [vmem:[%s212_s30] ss:$16 sps:$4 sm:$0xff] (!%p204_p8)  }
  0x1d   : > { %319 = vmatprep.subr.bf16.mxu0 (!%p204_p8), %v609_v9  ;;  %v614_v12 = vld [vmem:[%s212_s30 + $0x8] ss:$16 sps:$4 sm:$0xff] (!%p204_p8)   ;;  %360 = vmatprep.subr.bf16.mxu1 (!%p204_p8), %v611_v10  ;;  %v615_v13 = vld [vmem:[%s212_s30 + $0x24] ss:$16 sps:$4 sm:$0xff] (!%p204_p8)   ;;  %v617_v14 = vld [vmem:[%s212_s30 + $0x2c] ss:$16 sps:$4 sm:$0xff] (!%p204_p8)  }
  0x1e   : > { %320 = vmatpush1.bf16.msra.mxu0 (!%p204_p8), %v613_v11  ;;  %361 = vmatpush1.bf16.msra.mxu1 (!%p204_p8), %v614_v12  ;;  %v619_v15 = vld [vmem:[%s212_s30 + $0x20] ss:$16 sps:$4 sm:$0xff] (!%p204_p8)   ;;  %v620_v16 = vld [vmem:[%s212_s30 + $0x28] ss:$16 sps:$4 sm:$0xff] (!%p204_p8)   ;;  %v405_v20 = vsub.s32 (!%p204_p8), 0, %v404_v19  ;;  %v413_v21 = vsub.s32 (!%p204_p8), 2, %v404_v19 }
  0x1f   : > { %321 = vmatprep.subr.bf16.mxu0 (!%p204_p8), %v615_v13  ;;  %362 = vmatprep.subr.bf16.mxu1 (!%p204_p8), %v617_v14  ;;  %v409_v23 = vsub.s32 (!%p204_p8), 1, %v404_v19  ;;  %v417_v24 = vsub.s32 (!%p204_p8), 3, %v404_v19 }
  0x21   : > { %s764_s6 = smov (!%p251_p9, %s552_s6), 15 }
  0x22   : > { %322 = vmatpush1.bf16.msra.mxu0 %v619_v15  ;;  %363 = vmatpush1.bf16.msra.mxu1 %v620_v16  ;;  %s253_s9 = scalar_lea.vmem %s755_s2, %s764_s6  ;;  %s554_s10 = sshll.u32 %s764_s6, 3 }
  0x23   : > { %v401_v22 = vld [vmem:[%s253_s9] sm:$0xf]  ;;  %s263_s14 = scalar_lea.vmem %s756_s3, %s554_s10 }
  0x24   : > { %v406_v25 = vrot.slane %v401_v22, %v405_v20  ;;  %v414_v26 = vrot.slane %v401_v22, %v413_v21  ;;  %v410_v27 = vrot.slane %v401_v22, %v409_v23  ;;  %v418_v28 = vrot.slane %v401_v22, %v417_v24 }
  0x25   : > { %563 = vmatmul.mubr.msk.bf16.vlgmr.msra.gmra.mrb[0].mxu0 %vm315_vm0, %v266_v17  ;;  %564 = vmatmul.mubr.msk.bf16.vlgmr.msra.gmra.mrb[0].mxu1 %vm315_vm0, %v266_v17 }
  0xf8   : > { %v353_v29 = vpop.f32.mrb[0].mxu0  ;;  %v394_v30 = vpop.f32.mrb[0].mxu1 }
  0xf9   : > { %v423_v31 = vmul.f32 %v406_v25, %v353_v29  ;;  %v425_v32 = vmul.f32 %v414_v26, %v394_v30  ;;  %v355_v33 = vpop.f32.mrb[1].mxu0  ;;  %v396_v34 = vpop.f32.mrb[1].mxu1 }
  0xfa   : > { %v424_v35 = vmul.f32 %v410_v27, %v355_v33  ;;  %v426_v36 = vmul.f32 %v418_v28, %v396_v34  ;;  %v357_v37 = vpop.f32.mrb[2].mxu0  ;;  %v398_v38 = vpop.f32.mrb[2].mxu1 }
  0xfb   : > { %427 = vst [vmem:[%s263_s14] sm:$0xff] %v423_v31  ;;  %429 = vst [vmem:[%s263_s14 + $0x10] sm:$0xff] %v425_v32  ;;  %v358_v39 = vpop.f32.mrb[3].mxu0  ;;  %v399_v40 = vpop.f32.mrb[3].mxu1 }
  0xfc   : > { %428 = vst [vmem:[%s263_s14 + $0x8] sm:$0xff] %v424_v35  ;;  %430 = vst [vmem:[%s263_s14 + $0x18] sm:$0xff] %v426_v36 }
  0xfd PF: > { %s13_s16 = sadd.s32 1, %s659_s16   ;;  %s757_s12 = smov %s647_s13 }
  0xfe   : > { %p10_p10 = scmp.ge.s32.totalorder %s13_s16, 6   ;;  %s758_s13 = smov %s717_s20 }
  0xff   : > { %s759_s14 = smov %s655_s15  ;;  %s760_s15 = smov %s762_s17 }
 0x100   :  { %12 = sbr.rel (!%p10_p10) target bundleno = 3 (0x3), region = 96 }

// kernel: tile.35
= control target key start
LH: loop header
LB: loop body
LE: loop exit
PB: predicated region body
PF: predicated region fallthrough
CT: control target
= control target key end

     0   :  { %s28_s0 = inlined_call_operand.vmem [shape: f32[32], index: 0, kind: input, shape index: {}]   ;;  %s29_s1 = inlined_call_operand.vmem [shape: f32[16,32], index: 1, kind: output, shape index: {}]  }
   0x1   :  { %v4_v0 = vld [vmem:[%s28_s0] ss:$0 sm:$0xff] }
   0x2   :  { %5 = vst [vmem:[%s29_s1] sm:$0xff] %v4_v0  ;;  %8 = vst [vmem:[%s29_s1 + $0x8] sm:$0xff] %v4_v0 }

// kernel: tile.36
= control target key start
LH: loop header
LB: loop body
LE: loop exit
PB: predicated region body
PF: predicated region fallthrough
CT: control target
= control target key end

     0   :  { %s57_s8 = smov 96   ;;  %vm3_vm0 = vcmask 261120   ;;  %s59_s15 = smov 64   ;;  %vm9_vm1 = vcmask 1048320   ;;  %vm15_vm2 = vcmask 785920   ;;  %vm21_vm3 = vcmask 523520   ;;  %s94_s0 = inlined_call_operand.vmem [shape: f32[16,32], index: 0, kind: input, shape index: {}]   ;;  %s95_s1 = inlined_call_operand.vmem [shape: f32[1,512], index: 1, kind: output, shape index: {}]  }
   0x1   :  { %v48_v0 = vld [vmem:[%s94_s0 + $0x3] ss:$4 sm:$0xf]   ;;  %v49_v1 = vld [vmem:[%s94_s0 + $0x2] ss:$4 sm:$0xf]  }
   0x2   :  { %7 = vrot.lane.b32.xlu0 %v48_v0, %s57_s8  ;;  %v50_v2 = vld [vmem:[%s94_s0 + $0x1] ss:$4 sm:$0xf]   ;;  %v2_v3 = vld [vmem:[%s94_s0] ss:$4 sm:$0xf]  }
   0x3   :  { %s58_s0 = smov 32   ;;  %4 = vst.msk [vmem:[#allocation0] ss:$8 sm:$0xf] %vm3_vm0, %v2_v3  }
   0x4   :  { %19 = vrot.lane.b32.xlu1 %v50_v2, %s58_s0 }
   0x6   :  { %13 = vrot.lane.b32.xlu0 %v49_v1, %s59_s15 }
  0x74   :  { %v8_v4 = vpop.permute.xlu0 %7  }
  0x75   :  { %10 = vst.msk [vmem:[#allocation0] ss:$8 sm:$0xf] %vm9_vm1, %v8_v4  }
  0x76   :  { %v20_v5 = vpop.permute.xlu1 %19  }
  0x78   :  { %v14_v6 = vpop.permute.xlu0 %13  }
  0x79   :  { %16 = vst.msk [vmem:[#allocation0] ss:$8 sm:$0xf] %vm15_vm2, %v14_v6  }
  0x7a   :  { %22 = vst.msk [vmem:[#allocation0] ss:$8 sm:$0xf] %vm21_vm3, %v20_v5  }
  0x81   :  { %v26_v7 = vld [vmem:[#allocation0] sm:$0x1]  ;;  %v30_v8 = vld [vmem:[#allocation0 + $0x8] sm:$0x1]  ;;  %v35_v9 = vld [vmem:[#allocation0 + $0x10] sm:$0x1] }
  0x82   :  { %28 = vst [vmem:[%s95_s1] sm:$0x1] %v26_v7  ;;  %51 = vst [vmem:[%s95_s1 + $0x1] sm:$0x1] %v30_v8  ;;  %v41_v10 = vld [vmem:[#allocation0 + $0x18] sm:$0x1] }
  0x83   :  { %52 = vst [vmem:[%s95_s1 + $0x2] sm:$0x1] %v35_v9  ;;  %53 = vst [vmem:[%s95_s1 + $0x3] sm:$0x1] %v41_v10 }

// kernel: netG_forward.7
= control target key start
LH: loop header
LB: loop body
LE: loop exit
PB: predicated region body
PF: predicated region fallthrough
CT: control target
= control target key end

     0   :  { %v645_v1 = vmov 0   ;;  %vm167_vm0 = vcmask 523264   ;;  %v420_v25 = vlaneseq  ;;  %s1037_s1 = inlined_call_operand.vmem [shape: bf16[64,512], index: 1, kind: input, shape index: {}]   ;;  %s1038_s0 = inlined_call_operand.vmem [shape: bf16[128,64], index: 0, kind: input, shape index: {}]   ;;  %s1039_s2 = inlined_call_operand.vmem [shape: f32[1,512], index: 2, kind: input, shape index: {}]   ;;  %s1040_s3 = inlined_call_operand.vmem [shape: f32[128,512], index: 3, kind: output, shape index: {}]  }
   0x1   :  { %v613_v0 = vld [vmem:[%s1037_s1 + $0x4] ss:$16 sps:$4 sm:$0xff]   ;;  %224 = vmatprep.mubr.bf16.mxu0 %v645_v1  ;;  %337 = vmatprep.mubr.bf16.mxu1 %v645_v1  ;;  %v615_v2 = vld [vmem:[%s1037_s1 + $0xc] ss:$16 sps:$4 sm:$0xff]   ;;  %v617_v3 = vld [vmem:[%s1037_s1] ss:$16 sps:$4 sm:$0xff]  }
   0x2   :  { %192 = vmatprep.subr.bf16.mxu0 %v613_v0  ;;  %v618_v4 = vld [vmem:[%s1037_s1 + $0x8] ss:$16 sps:$4 sm:$0xff]   ;;  %305 = vmatprep.subr.bf16.mxu1 %v615_v2  ;;  %v619_v5 = vld [vmem:[%s1037_s1 + $0x24] ss:$16 sps:$4 sm:$0xff]   ;;  %v621_v6 = vld [vmem:[%s1037_s1 + $0x2c] ss:$16 sps:$4 sm:$0xff]  }
   0x3   :  { %193 = vmatpush1.bf16.msra.mxu0 %v617_v3  ;;  %306 = vmatpush1.bf16.msra.mxu1 %v618_v4  ;;  %v623_v7 = vld [vmem:[%s1037_s1 + $0x20] ss:$16 sps:$4 sm:$0xff]   ;;  %v624_v8 = vld [vmem:[%s1037_s1 + $0x28] ss:$16 sps:$4 sm:$0xff]   ;;  %v625_v9 = vld [vmem:[%s1037_s1 + $0x44] ss:$16 sps:$4 sm:$0xff]  }
   0x4   :  { %194 = vmatprep.subr.bf16.mxu0 %v619_v5  ;;  %307 = vmatprep.subr.bf16.mxu1 %v621_v6  ;;  %v627_v10 = vld [vmem:[%s1037_s1 + $0x4c] ss:$16 sps:$4 sm:$0xff]   ;;  %v629_v11 = vld [vmem:[%s1037_s1 + $0x40] ss:$16 sps:$4 sm:$0xff]   ;;  %v630_v12 = vld [vmem:[%s1037_s1 + $0x48] ss:$16 sps:$4 sm:$0xff]  }
   0x5   :  { %v631_v13 = vld [vmem:[%s1037_s1 + $0x64] ss:$16 sps:$4 sm:$0xff]   ;;  %v633_v14 = vld [vmem:[%s1037_s1 + $0x6c] ss:$16 sps:$4 sm:$0xff]   ;;  %v635_v15 = vld [vmem:[%s1037_s1 + $0x60] ss:$16 sps:$4 sm:$0xff]  }
   0x6   :  { %v636_v16 = vld [vmem:[%s1037_s1 + $0x68] ss:$16 sps:$4 sm:$0xff]   ;;  %v637_v17 = vld [vmem:[%s1038_s0] sm:$0xff]   ;;  %v639_v19 = vld [vmem:[%s1038_s0 + $0x10] sm:$0xff]   ;;  %v421_v26 = vshrl.u32 %v420_v25, 7 }
   0x7   :  { %195 = vmatpush1.bf16.msra.mxu0 %v623_v7  ;;  %308 = vmatpush1.bf16.msra.mxu1 %v624_v8  ;;  %v638_v18 = vld [vmem:[%s1038_s0 + $0x8] sm:$0xff]   ;;  %v640_v20 = vld [vmem:[%s1038_s0 + $0x18] sm:$0xff]   ;;  %v641_v21 = vld [vmem:[%s1038_s0 + $0x20] sm:$0xff]  }
   0x8   :  { %196 = vmatprep.subr.bf16.mxu0 %v625_v9  ;;  %309 = vmatprep.subr.bf16.mxu1 %v627_v10  ;;  %v642_v22 = vld [vmem:[%s1038_s0 + $0x28] sm:$0xff]   ;;  %v643_v23 = vld [vmem:[%s1038_s0 + $0x30] sm:$0xff]   ;;  %v644_v24 = vld [vmem:[%s1038_s0 + $0x38] sm:$0xff]   ;;  %v422_v27 = vsub.s32 0, %v421_v26  ;;  %v430_v28 = vsub.s32 2, %v421_v26  ;;  %v426_v30 = vsub.s32 1, %v421_v26 }
   0x9   :  { %v418_v29 = vld [vmem:[%s1039_s2] sm:$0xf]  ;;  %v434_v31 = vsub.s32 3, %v421_v26 }
   0xa   :  { %v773_v32 = vrot.slane %v418_v29, %v422_v27  ;;  %v775_v33 = vrot.slane %v418_v29, %v430_v28  ;;  %v777_v34 = vrot.slane %v418_v29, %v426_v30 }
   0xb   :  { %197 = vmatpush1.bf16.msra.mxu0 %v629_v11  ;;  %310 = vmatpush1.bf16.msra.mxu1 %v630_v12  ;;  %v779_v35 = vrot.slane %v418_v29, %v434_v31 }
   0xc   :  { %198 = vmatprep.subr.bf16.mxu0 %v631_v13  ;;  %311 = vmatprep.subr.bf16.mxu1 %v633_v14 }
   0xf   :  { %199 = vmatpush1.bf16.msra.mxu0 %v635_v15  ;;  %312 = vmatpush1.bf16.msra.mxu1 %v636_v16 }
  0x12   :  { %596 = vmatmul.mubr.msk.bf16.vlgmr.msra.gmra.mrb[0].mxu0 %vm167_vm0, %v637_v17  ;;  %604 = vmatmul.mubr.msk.bf16.vlgmr.msra.gmra.mrb[0].mxu1 %vm167_vm0, %v637_v17 }
  0x13   :  { %234 = vmatprep.mubr.bf16.mxu0 %v645_v1  ;;  %347 = vmatprep.mubr.bf16.mxu1 %v645_v1 }
  0x1a   :  { %597 = vmatmul.mubr.msk.bf16.gmra.mrb[4].mxu0 %vm167_vm0, %v638_v18  ;;  %605 = vmatmul.mubr.msk.bf16.gmra.mrb[4].mxu1 %vm167_vm0, %v638_v18 }
  0x1b   :  { %244 = vmatprep.mubr.bf16.mxu0 %v645_v1  ;;  %357 = vmatprep.mubr.bf16.mxu1 %v645_v1 }
  0x22   :  { %598 = vmatmul.mubr.msk.bf16.gmra.mrb[8].mxu0 %vm167_vm0, %v639_v19  ;;  %606 = vmatmul.mubr.msk.bf16.gmra.mrb[8].mxu1 %vm167_vm0, %v639_v19 }
  0x23   :  { %254 = vmatprep.mubr.bf16.mxu0 %v645_v1  ;;  %367 = vmatprep.mubr.bf16.mxu1 %v645_v1 }
  0x2a   :  { %599 = vmatmul.mubr.msk.bf16.gmra.mrb[12].mxu0 %vm167_vm0, %v640_v20  ;;  %607 = vmatmul.mubr.msk.bf16.gmra.mrb[12].mxu1 %vm167_vm0, %v640_v20 }
  0x2b   :  { %264 = vmatprep.mubr.bf16.mxu0 %v645_v1  ;;  %377 = vmatprep.mubr.bf16.mxu1 %v645_v1 }
  0x32   :  { %600 = vmatmul.mubr.msk.bf16.gmra.mrb[16].mxu0 %vm167_vm0, %v641_v21  ;;  %608 = vmatmul.mubr.msk.bf16.gmra.mrb[16].mxu1 %vm167_vm0, %v641_v21 }
  0x33   :  { %274 = vmatprep.mubr.bf16.mxu0 %v645_v1  ;;  %387 = vmatprep.mubr.bf16.mxu1 %v645_v1 }
  0x3a   :  { %601 = vmatmul.mubr.msk.bf16.gmra.mrb[20].mxu0 %vm167_vm0, %v642_v22  ;;  %609 = vmatmul.mubr.msk.bf16.gmra.mrb[20].mxu1 %vm167_vm0, %v642_v22 }
  0x3b   :  { %284 = vmatprep.mubr.bf16.mxu0 %v645_v1  ;;  %397 = vmatprep.mubr.bf16.mxu1 %v645_v1 }
  0x42   :  { %602 = vmatmul.mubr.msk.bf16.gmra.mrb[24].mxu0 %vm167_vm0, %v643_v23  ;;  %610 = vmatmul.mubr.msk.bf16.gmra.mrb[24].mxu1 %vm167_vm0, %v643_v23 }
  0x43   :  { %294 = vmatprep.mubr.bf16.mxu0 %v645_v1  ;;  %407 = vmatprep.mubr.bf16.mxu1 %v645_v1 }
  0x4a   :  { %603 = vmatmul.mubr.msk.bf16.gmra.mrb[28].mxu0 %vm167_vm0, %v644_v24  ;;  %611 = vmatmul.mubr.msk.bf16.gmra.mrb[28].mxu1 %vm167_vm0, %v644_v24 }
  0xe5   :  { %v226_v36 = vpop.f32.mrb[0].mxu0  ;;  %v339_v37 = vpop.f32.mrb[0].mxu1 }
  0xe6   :  { %v440_v38 = vmul.f32 %v773_v32, %v226_v36  ;;  %v442_v39 = vmul.f32 %v775_v33, %v339_v37  ;;  %v228_v40 = vpop.f32.mrb[1].mxu0  ;;  %v341_v41 = vpop.f32.mrb[1].mxu1 }
  0xe7   :  { %v441_v42 = vmul.f32 %v777_v34, %v228_v40  ;;  %v443_v43 = vmul.f32 %v779_v35, %v341_v41  ;;  %v230_v44 = vpop.f32.mrb[2].mxu0  ;;  %v343_v45 = vpop.f32.mrb[2].mxu1 }
  0xe8   :  { %504 = vst [vmem:[%s1040_s3] sm:$0xff] %v440_v38  ;;  %506 = vst [vmem:[%s1040_s3 + $0x10] sm:$0xff] %v442_v39  ;;  %v444_v46 = vmul.f32 %v773_v32, %v230_v44  ;;  %v446_v47 = vmul.f32 %v775_v33, %v343_v45  ;;  %v232_v48 = vpop.f32.mrb[3].mxu0  ;;  %v345_v49 = vpop.f32.mrb[3].mxu1 }
  0xe9   :  { %505 = vst [vmem:[%s1040_s3 + $0x8] sm:$0xff] %v441_v42  ;;  %507 = vst [vmem:[%s1040_s3 + $0x18] sm:$0xff] %v443_v43  ;;  %v445_v50 = vmul.f32 %v777_v34, %v232_v48  ;;  %v447_v51 = vmul.f32 %v779_v35, %v345_v49 }
  0xea   :  { %508 = vst [vmem:[%s1040_s3 + $0x20] sm:$0xff] %v444_v46  ;;  %510 = vst [vmem:[%s1040_s3 + $0x30] sm:$0xff] %v446_v47 }
  0xeb   :  { %509 = vst [vmem:[%s1040_s3 + $0x28] sm:$0xff] %v445_v50  ;;  %511 = vst [vmem:[%s1040_s3 + $0x38] sm:$0xff] %v447_v51 }
  0xed   :  { %v236_v52 = vpop.f32.mrb[4].mxu0  ;;  %v349_v53 = vpop.f32.mrb[4].mxu1 }
  0xee   :  { %v448_v54 = vmul.f32 %v773_v32, %v236_v52  ;;  %v450_v55 = vmul.f32 %v775_v33, %v349_v53  ;;  %v238_v56 = vpop.f32.mrb[5].mxu0  ;;  %v351_v57 = vpop.f32.mrb[5].mxu1 }
  0xef   :  { %v449_v58 = vmul.f32 %v777_v34, %v238_v56  ;;  %v451_v59 = vmul.f32 %v779_v35, %v351_v57  ;;  %v240_v60 = vpop.f32.mrb[6].mxu0  ;;  %v353_v61 = vpop.f32.mrb[6].mxu1 }
  0xf0   :  { %512 = vst [vmem:[%s1040_s3 + $0x40] sm:$0xff] %v448_v54  ;;  %514 = vst [vmem:[%s1040_s3 + $0x50] sm:$0xff] %v450_v55  ;;  %v452_v62 = vmul.f32 %v773_v32, %v240_v60  ;;  %v454_v63 = vmul.f32 %v775_v33, %v353_v61  ;;  %v242_v0 = vpop.f32.mrb[7].mxu0  ;;  %v355_v1 = vpop.f32.mrb[7].mxu1 }
  0xf1   :  { %513 = vst [vmem:[%s1040_s3 + $0x48] sm:$0xff] %v449_v58  ;;  %515 = vst [vmem:[%s1040_s3 + $0x58] sm:$0xff] %v451_v59  ;;  %v453_v2 = vmul.f32 %v777_v34, %v242_v0  ;;  %v455_v3 = vmul.f32 %v779_v35, %v355_v1 }
  0xf2   :  { %516 = vst [vmem:[%s1040_s3 + $0x60] sm:$0xff] %v452_v62  ;;  %518 = vst [vmem:[%s1040_s3 + $0x70] sm:$0xff] %v454_v63 }
  0xf3   :  { %517 = vst [vmem:[%s1040_s3 + $0x68] sm:$0xff] %v453_v2  ;;  %519 = vst [vmem:[%s1040_s3 + $0x78] sm:$0xff] %v455_v3 }
  0xf5   :  { %v246_v4 = vpop.f32.mrb[8].mxu0  ;;  %v359_v5 = vpop.f32.mrb[8].mxu1 }
  0xf6   :  { %v456_v6 = vmul.f32 %v773_v32, %v246_v4  ;;  %v458_v7 = vmul.f32 %v775_v33, %v359_v5  ;;  %v248_v8 = vpop.f32.mrb[9].mxu0  ;;  %v361_v9 = vpop.f32.mrb[9].mxu1 }
  0xf7   :  { %v457_v10 = vmul.f32 %v777_v34, %v248_v8  ;;  %v459_v11 = vmul.f32 %v779_v35, %v361_v9  ;;  %v250_v12 = vpop.f32.mrb[10].mxu0  ;;  %v363_v13 = vpop.f32.mrb[10].mxu1 }
  0xf8   :  { %520 = vst [vmem:[%s1040_s3 + $0x80] sm:$0xff] %v456_v6  ;;  %522 = vst [vmem:[%s1040_s3 + $0x90] sm:$0xff] %v458_v7  ;;  %v460_v14 = vmul.f32 %v773_v32, %v250_v12  ;;  %v462_v15 = vmul.f32 %v775_v33, %v363_v13  ;;  %v252_v16 = vpop.f32.mrb[11].mxu0  ;;  %v365_v17 = vpop.f32.mrb[11].mxu1 }
  0xf9   :  { %521 = vst [vmem:[%s1040_s3 + $0x88] sm:$0xff] %v457_v10  ;;  %523 = vst [vmem:[%s1040_s3 + $0x98] sm:$0xff] %v459_v11  ;;  %v461_v18 = vmul.f32 %v777_v34, %v252_v16  ;;  %v463_v19 = vmul.f32 %v779_v35, %v365_v17 }
  0xfa   :  { %524 = vst [vmem:[%s1040_s3 + $0xa0] sm:$0xff] %v460_v14  ;;  %526 = vst [vmem:[%s1040_s3 + $0xb0] sm:$0xff] %v462_v15 }
  0xfb   :  { %525 = vst [vmem:[%s1040_s3 + $0xa8] sm:$0xff] %v461_v18  ;;  %527 = vst [vmem:[%s1040_s3 + $0xb8] sm:$0xff] %v463_v19 }
  0xfd   :  { %v256_v20 = vpop.f32.mrb[12].mxu0  ;;  %v369_v21 = vpop.f32.mrb[12].mxu1 }
  0xfe   :  { %v464_v22 = vmul.f32 %v773_v32, %v256_v20  ;;  %v466_v23 = vmul.f32 %v775_v33, %v369_v21  ;;  %v258_v24 = vpop.f32.mrb[13].mxu0  ;;  %v371_v25 = vpop.f32.mrb[13].mxu1 }
  0xff   :  { %v465_v26 = vmul.f32 %v777_v34, %v258_v24  ;;  %v467_v27 = vmul.f32 %v779_v35, %v371_v25  ;;  %v260_v28 = vpop.f32.mrb[14].mxu0  ;;  %v373_v29 = vpop.f32.mrb[14].mxu1 }
 0x100   :  { %528 = vst [vmem:[%s1040_s3 + $0xc0] sm:$0xff] %v464_v22  ;;  %530 = vst [vmem:[%s1040_s3 + $0xd0] sm:$0xff] %v466_v23  ;;  %v468_v30 = vmul.f32 %v773_v32, %v260_v28  ;;  %v470_v31 = vmul.f32 %v775_v33, %v373_v29  ;;  %v262_v36 = vpop.f32.mrb[15].mxu0  ;;  %v375_v37 = vpop.f32.mrb[15].mxu1 }
 0x101   :  { %529 = vst [vmem:[%s1040_s3 + $0xc8] sm:$0xff] %v465_v26  ;;  %531 = vst [vmem:[%s1040_s3 + $0xd8] sm:$0xff] %v467_v27  ;;  %v469_v38 = vmul.f32 %v777_v34, %v262_v36  ;;  %v471_v39 = vmul.f32 %v779_v35, %v375_v37 }
 0x102   :  { %532 = vst [vmem:[%s1040_s3 + $0xe0] sm:$0xff] %v468_v30  ;;  %534 = vst [vmem:[%s1040_s3 + $0xf0] sm:$0xff] %v470_v31 }
 0x103   :  { %533 = vst [vmem:[%s1040_s3 + $0xe8] sm:$0xff] %v469_v38  ;;  %535 = vst [vmem:[%s1040_s3 + $0xf8] sm:$0xff] %v471_v39 }
 0x105   :  { %v266_v40 = vpop.f32.mrb[16].mxu0  ;;  %v379_v41 = vpop.f32.mrb[16].mxu1 }
 0x106   :  { %v472_v42 = vmul.f32 %v773_v32, %v266_v40  ;;  %v474_v43 = vmul.f32 %v775_v33, %v379_v41  ;;  %v268_v44 = vpop.f32.mrb[17].mxu0  ;;  %v381_v45 = vpop.f32.mrb[17].mxu1 }
 0x107   :  { %v473_v46 = vmul.f32 %v777_v34, %v268_v44  ;;  %v475_v47 = vmul.f32 %v779_v35, %v381_v45  ;;  %v270_v48 = vpop.f32.mrb[18].mxu0  ;;  %v383_v49 = vpop.f32.mrb[18].mxu1 }
 0x108   :  { %536 = vst [vmem:[%s1040_s3 + $0x100] sm:$0xff] %v472_v42  ;;  %538 = vst [vmem:[%s1040_s3 + $0x110] sm:$0xff] %v474_v43  ;;  %v476_v50 = vmul.f32 %v773_v32, %v270_v48  ;;  %v478_v51 = vmul.f32 %v775_v33, %v383_v49  ;;  %v272_v52 = vpop.f32.mrb[19].mxu0  ;;  %v385_v53 = vpop.f32.mrb[19].mxu1 }
 0x109   :  { %537 = vst [vmem:[%s1040_s3 + $0x108] sm:$0xff] %v473_v46  ;;  %539 = vst [vmem:[%s1040_s3 + $0x118] sm:$0xff] %v475_v47  ;;  %v477_v54 = vmul.f32 %v777_v34, %v272_v52  ;;  %v479_v55 = vmul.f32 %v779_v35, %v385_v53 }
 0x10a   :  { %540 = vst [vmem:[%s1040_s3 + $0x120] sm:$0xff] %v476_v50  ;;  %542 = vst [vmem:[%s1040_s3 + $0x130] sm:$0xff] %v478_v51 }
 0x10b   :  { %541 = vst [vmem:[%s1040_s3 + $0x128] sm:$0xff] %v477_v54  ;;  %543 = vst [vmem:[%s1040_s3 + $0x138] sm:$0xff] %v479_v55 }
 0x10d   :  { %v276_v56 = vpop.f32.mrb[20].mxu0  ;;  %v389_v57 = vpop.f32.mrb[20].mxu1 }
 0x10e   :  { %v480_v58 = vmul.f32 %v773_v32, %v276_v56  ;;  %v482_v59 = vmul.f32 %v775_v33, %v389_v57  ;;  %v278_v60 = vpop.f32.mrb[21].mxu0  ;;  %v391_v61 = vpop.f32.mrb[21].mxu1 }
 0x10f   :  { %v481_v62 = vmul.f32 %v777_v34, %v278_v60  ;;  %v483_v63 = vmul.f32 %v779_v35, %v391_v61  ;;  %v280_v0 = vpop.f32.mrb[22].mxu0  ;;  %v393_v1 = vpop.f32.mrb[22].mxu1 }
 0x110   :  { %544 = vst [vmem:[%s1040_s3 + $0x140] sm:$0xff] %v480_v58  ;;  %546 = vst [vmem:[%s1040_s3 + $0x150] sm:$0xff] %v482_v59  ;;  %v484_v2 = vmul.f32 %v773_v32, %v280_v0  ;;  %v486_v3 = vmul.f32 %v775_v33, %v393_v1  ;;  %v282_v4 = vpop.f32.mrb[23].mxu0  ;;  %v395_v5 = vpop.f32.mrb[23].mxu1 }
 0x111   :  { %545 = vst [vmem:[%s1040_s3 + $0x148] sm:$0xff] %v481_v62  ;;  %547 = vst [vmem:[%s1040_s3 + $0x158] sm:$0xff] %v483_v63  ;;  %v485_v6 = vmul.f32 %v777_v34, %v282_v4  ;;  %v487_v7 = vmul.f32 %v779_v35, %v395_v5 }
 0x112   :  { %548 = vst [vmem:[%s1040_s3 + $0x160] sm:$0xff] %v484_v2  ;;  %550 = vst [vmem:[%s1040_s3 + $0x170] sm:$0xff] %v486_v3 }
 0x113   :  { %549 = vst [vmem:[%s1040_s3 + $0x168] sm:$0xff] %v485_v6  ;;  %551 = vst [vmem:[%s1040_s3 + $0x178] sm:$0xff] %v487_v7 }
 0x115   :  { %v286_v8 = vpop.f32.mrb[24].mxu0  ;;  %v399_v9 = vpop.f32.mrb[24].mxu1 }
 0x116   :  { %v488_v10 = vmul.f32 %v773_v32, %v286_v8  ;;  %v490_v11 = vmul.f32 %v775_v33, %v399_v9  ;;  %v288_v12 = vpop.f32.mrb[25].mxu0  ;;  %v401_v13 = vpop.f32.mrb[25].mxu1 }
 0x117   :  { %v489_v14 = vmul.f32 %v777_v34, %v288_v12  ;;  %v491_v15 = vmul.f32 %v779_v35, %v401_v13  ;;  %v290_v16 = vpop.f32.mrb[26].mxu0  ;;  %v403_v17 = vpop.f32.mrb[26].mxu1 }
 0x118   :  { %552 = vst [vmem:[%s1040_s3 + $0x180] sm:$0xff] %v488_v10  ;;  %554 = vst [vmem:[%s1040_s3 + $0x190] sm:$0xff] %v490_v11  ;;  %v492_v18 = vmul.f32 %v773_v32, %v290_v16  ;;  %v494_v19 = vmul.f32 %v775_v33, %v403_v17  ;;  %v292_v20 = vpop.f32.mrb[27].mxu0  ;;  %v405_v21 = vpop.f32.mrb[27].mxu1 }
 0x119   :  { %553 = vst [vmem:[%s1040_s3 + $0x188] sm:$0xff] %v489_v14  ;;  %555 = vst [vmem:[%s1040_s3 + $0x198] sm:$0xff] %v491_v15  ;;  %v493_v22 = vmul.f32 %v777_v34, %v292_v20  ;;  %v495_v23 = vmul.f32 %v779_v35, %v405_v21 }
 0x11a   :  { %556 = vst [vmem:[%s1040_s3 + $0x1a0] sm:$0xff] %v492_v18  ;;  %558 = vst [vmem:[%s1040_s3 + $0x1b0] sm:$0xff] %v494_v19 }
 0x11b   :  { %557 = vst [vmem:[%s1040_s3 + $0x1a8] sm:$0xff] %v493_v22  ;;  %559 = vst [vmem:[%s1040_s3 + $0x1b8] sm:$0xff] %v495_v23 }
 0x11d   :  { %v296_v24 = vpop.f32.mrb[28].mxu0  ;;  %v409_v25 = vpop.f32.mrb[28].mxu1 }
 0x11e   :  { %v496_v26 = vmul.f32 %v773_v32, %v296_v24  ;;  %v498_v27 = vmul.f32 %v775_v33, %v409_v25  ;;  %v298_v28 = vpop.f32.mrb[29].mxu0  ;;  %v411_v29 = vpop.f32.mrb[29].mxu1 }
 0x11f   :  { %v497_v30 = vmul.f32 %v777_v34, %v298_v28  ;;  %v499_v31 = vmul.f32 %v779_v35, %v411_v29  ;;  %v300_v36 = vpop.f32.mrb[30].mxu0  ;;  %v413_v37 = vpop.f32.mrb[30].mxu1 }
 0x120   :  { %560 = vst [vmem:[%s1040_s3 + $0x1c0] sm:$0xff] %v496_v26  ;;  %562 = vst [vmem:[%s1040_s3 + $0x1d0] sm:$0xff] %v498_v27  ;;  %v500_v38 = vmul.f32 %v773_v32, %v300_v36  ;;  %v502_v39 = vmul.f32 %v775_v33, %v413_v37  ;;  %v302_v40 = vpop.f32.mrb[31].mxu0  ;;  %v415_v41 = vpop.f32.mrb[31].mxu1 }
 0x121   :  { %561 = vst [vmem:[%s1040_s3 + $0x1c8] sm:$0xff] %v497_v30  ;;  %563 = vst [vmem:[%s1040_s3 + $0x1d8] sm:$0xff] %v499_v31  ;;  %v501_v42 = vmul.f32 %v777_v34, %v302_v40  ;;  %v503_v43 = vmul.f32 %v779_v35, %v415_v41 }
 0x122   :  { %564 = vst [vmem:[%s1040_s3 + $0x1e0] sm:$0xff] %v500_v38  ;;  %566 = vst [vmem:[%s1040_s3 + $0x1f0] sm:$0xff] %v502_v39 }
 0x123   :  { %565 = vst [vmem:[%s1040_s3 + $0x1e8] sm:$0xff] %v501_v42  ;;  %567 = vst [vmem:[%s1040_s3 + $0x1f8] sm:$0xff] %v503_v43 }

// kernel: tile.40
= control target key start
LH: loop header
LB: loop body
LE: loop exit
PB: predicated region body
PF: predicated region fallthrough
CT: control target
= control target key end

     0   :  { %s28_s0 = inlined_call_operand.vmem [shape: f32[16], index: 0, kind: input, shape index: {}]   ;;  %s29_s1 = inlined_call_operand.vmem [shape: f32[16,16], index: 1, kind: output, shape index: {}]  }
   0x1   :  { %v4_v0 = vld [vmem:[%s28_s0] ss:$0 sm:$0xff] }
   0x2   :  { %5 = vst [vmem:[%s29_s1] sm:$0xff] %v4_v0  ;;  %8 = vst [vmem:[%s29_s1 + $0x8] sm:$0xff] %v4_v0 }

// kernel: tile.41
= control target key start
LH: loop header
LB: loop body
LE: loop exit
PB: predicated region body
PF: predicated region fallthrough
CT: control target
= control target key end

     0   :  { %s7_s6 = smov 3  ;;  %s21_s9 = smov 3  ;;  %vm4_vm0 = vcmask 130048   ;;  %vm11_vm1 = vcmask 1048448   ;;  %vm18_vm2 = vcmask 917248   ;;  %vm25_vm3 = vcmask 786048   ;;  %s128_s0 = inlined_call_operand.vmem [shape: f32[16,16], index: 0, kind: input, shape index: {}]   ;;  %s129_s1 = inlined_call_operand.vmem [shape: f32[1,256], index: 1, kind: output, shape index: {}]  }
   0x1   :  { %v66_v0 = vld [vmem:[%s128_s0 + $0x7] ss:$8 sm:%s7_s6]   ;;  %s81_s10 = smov 112   ;;  %v68_v1 = vld [vmem:[%s128_s0 + $0x5] ss:$8 sm:%s21_s9]   ;;  %s14_s13 = smov 3 }
   0x2   :  { %9 = vrot.lane.b32.xlu0 %v66_v0, %s81_s10  ;;  %s82_s14 = smov 80   ;;  %v67_v2 = vld [vmem:[%s128_s0 + $0x6] ss:$8 sm:%s14_s13]   ;;  %s28_s17 = smov 3  ;;  %vm32_vm4 = vcmask 654848   ;;  %vm39_vm5 = vcmask 523648  }
   0x3   :  { %23 = vrot.lane.b32.xlu1 %v68_v1, %s82_s14  ;;  %v69_v3 = vld [vmem:[%s128_s0 + $0x4] ss:$8 sm:%s28_s17]   ;;  %s35_s20 = smov 3  ;;  %s42_s21 = smov 3  ;;  %vm46_vm6 = vcmask 392448   ;;  %vm53_vm7 = vcmask 261248  }
   0x4   :  { %s83_s22 = smov 96   ;;  %s84_s23 = smov 64   ;;  %v70_v4 = vld [vmem:[%s128_s0 + $0x3] ss:$8 sm:%s35_s20]   ;;  %v71_v5 = vld [vmem:[%s128_s0 + $0x2] ss:$8 sm:%s42_s21]  }
   0x5   :  { %s2_s26 = smov 3  ;;  %s49_s29 = smov 3 }
   0x6   :  { %16 = vrot.lane.b32.xlu0 %v67_v2, %s83_s22  ;;  %v3_v6 = vld [vmem:[%s128_s0] ss:$8 sm:%s2_s26]   ;;  %s85_s3 = smov 48   ;;  %s86_s4 = smov 32  }
   0x7   :  { %30 = vrot.lane.b32.xlu1 %v69_v3, %s84_s23  ;;  %5 = vst.msk [vmem:[#allocation0] ss:$8 sm:$0x3] %vm4_vm0, %v3_v6   ;;  %v72_v7 = vld [vmem:[%s128_s0 + $0x1] ss:$8 sm:%s49_s29]   ;;  %s87_s0 = smov 16  }
   0xa   :  { %37 = vrot.lane.b32.xlu0 %v70_v4, %s85_s3 }
   0xb   :  { %44 = vrot.lane.b32.xlu1 %v71_v5, %s86_s4 }
   0xe   :  { %51 = vrot.lane.b32.xlu0 %v72_v7, %s87_s0 }
  0x74   :  { %v10_v8 = vpop.permute.xlu0 %9  }
  0x75   :  { %12 = vst.msk [vmem:[#allocation0] ss:$8 sm:$0x3] %vm11_vm1, %v10_v8   ;;  %v24_v9 = vpop.permute.xlu1 %23  }
  0x78   :  { %v17_v10 = vpop.permute.xlu0 %16  }
  0x79   :  { %19 = vst.msk [vmem:[#allocation0] ss:$8 sm:$0x3] %vm18_vm2, %v17_v10   ;;  %v31_v11 = vpop.permute.xlu1 %30  }
  0x7a   :  { %26 = vst.msk [vmem:[#allocation0] ss:$8 sm:$0x3] %vm25_vm3, %v24_v9  }
  0x7b   :  { %33 = vst.msk [vmem:[#allocation0] ss:$8 sm:$0x3] %vm32_vm4, %v31_v11  }
  0x7c   :  { %v38_v12 = vpop.permute.xlu0 %37  }
  0x7d   :  { %40 = vst.msk [vmem:[#allocation0] ss:$8 sm:$0x3] %vm39_vm5, %v38_v12   ;;  %v45_v13 = vpop.permute.xlu1 %44  }
  0x7e   :  { %47 = vst.msk [vmem:[#allocation0] ss:$8 sm:$0x3] %vm46_vm6, %v45_v13  }
  0x80   :  { %v52_v14 = vpop.permute.xlu0 %51  }
  0x81   :  { %54 = vst.msk [vmem:[#allocation0] ss:$8 sm:$0x3] %vm53_vm7, %v52_v14  }
  0x88   :  { %v58_v15 = vld [vmem:[#allocation0] sm:$0x1]  ;;  %v62_v16 = vld [vmem:[#allocation0 + $0x8] sm:$0x1] }
  0x89   :  { %60 = vst [vmem:[%s129_s1] sm:$0x1] %v58_v15  ;;  %73 = vst [vmem:[%s129_s1 + $0x1] sm:$0x1] %v62_v16 }

// kernel: netG_forward.8
= control target key start
LH: loop header
LB: loop body
LE: loop exit
PB: predicated region body
PF: predicated region fallthrough
CT: control target
= control target key end

     0   :  { %v1096_v1 = vmov 0   ;;  %vm263_vm0 = vcmask 261120   ;;  %v715_v37 = vlaneseq  ;;  %s1808_s1 = inlined_call_operand.vmem [shape: bf16[32,256], index: 1, kind: input, shape index: {}]   ;;  %s1809_s0 = inlined_call_operand.vmem [shape: bf16[512,32], index: 0, kind: input, shape index: {}]   ;;  %s1810_s2 = inlined_call_operand.vmem [shape: f32[1,256], index: 2, kind: input, shape index: {}]   ;;  %s1811_s3 = inlined_call_operand.vmem [shape: f32[512,256], index: 3, kind: output, shape index: {}]  }
   0x1   :  { %v1058_v0 = vld [vmem:[%s1808_s1 + $0x4] ss:$8 sps:$4 sm:$0xff]   ;;  %392 = vmatprep.mubr.bf16.mxu0 %v1096_v1  ;;  %552 = vmatprep.mubr.bf16.mxu1 %v1096_v1  ;;  %v1060_v2 = vld [vmem:[%s1808_s1] ss:$8 sps:$4 sm:$0xff]   ;;  %v1061_v3 = vld [vmem:[%s1808_s1 + $0x14] ss:$8 sps:$4 sm:$0xff]  }
   0x2   :  { %360 = vmatprep.subr.bf16.mxu0 %v1058_v0  ;;  %1053 = vmatprep.subr.bf16.mxu1 %v1058_v0  ;;  %v1063_v4 = vld [vmem:[%s1808_s1 + $0x10] ss:$8 sps:$4 sm:$0xff]   ;;  %v1064_v5 = vld [vmem:[%s1809_s0] sm:$0xff]   ;;  %v1066_v7 = vld [vmem:[%s1809_s0 + $0x8] sm:$0xff]   ;;  %v716_v38 = vshrl.u32 %v715_v37, 7 }
   0x3   :  { %361 = vmatpush1.bf16.msra.mxu0 %v1060_v2  ;;  %1055 = vmatpush1.bf16.msra.mxu1 %v1060_v2  ;;  %v1065_v6 = vld [vmem:[%s1809_s0 + $0x80] sm:$0xff]   ;;  %v1067_v8 = vld [vmem:[%s1809_s0 + $0x88] sm:$0xff]   ;;  %v1068_v9 = vld [vmem:[%s1809_s0 + $0x10] sm:$0xff]  }
   0x4   :  { %362 = vmatprep.subr.bf16.mxu0 %v1061_v3  ;;  %1054 = vmatprep.subr.bf16.mxu1 %v1061_v3  ;;  %v1069_v10 = vld [vmem:[%s1809_s0 + $0x90] sm:$0xff]   ;;  %v1070_v11 = vld [vmem:[%s1809_s0 + $0x18] sm:$0xff]   ;;  %v1072_v13 = vld [vmem:[%s1809_s0 + $0x20] sm:$0xff]   ;;  %v717_v39 = vsub.s32 0, %v716_v38  ;;  %v721_v41 = vsub.s32 1, %v716_v38 }
   0x5   :  { %v1071_v12 = vld [vmem:[%s1809_s0 + $0x98] sm:$0xff]   ;;  %v1073_v14 = vld [vmem:[%s1809_s0 + $0xa0] sm:$0xff]   ;;  %v1074_v15 = vld [vmem:[%s1809_s0 + $0x28] sm:$0xff]  }
   0x6   :  { %v1075_v16 = vld [vmem:[%s1809_s0 + $0xa8] sm:$0xff]   ;;  %v1076_v17 = vld [vmem:[%s1809_s0 + $0x30] sm:$0xff]   ;;  %v1078_v19 = vld [vmem:[%s1809_s0 + $0x38] sm:$0xff]  }
   0x7   :  { %363 = vmatpush1.bf16.msra.mxu0 %v1063_v4  ;;  %1056 = vmatpush1.bf16.msra.mxu1 %v1063_v4  ;;  %v1077_v18 = vld [vmem:[%s1809_s0 + $0xb0] sm:$0xff]   ;;  %v1079_v20 = vld [vmem:[%s1809_s0 + $0xb8] sm:$0xff]   ;;  %v1080_v21 = vld [vmem:[%s1809_s0 + $0x40] sm:$0xff]  }
   0x8   :  { %v1081_v22 = vld [vmem:[%s1809_s0 + $0xc0] sm:$0xff]   ;;  %v1082_v23 = vld [vmem:[%s1809_s0 + $0x48] sm:$0xff]   ;;  %v1084_v25 = vld [vmem:[%s1809_s0 + $0x50] sm:$0xff]  }
   0x9   :  { %v1083_v24 = vld [vmem:[%s1809_s0 + $0xc8] sm:$0xff]   ;;  %v1085_v26 = vld [vmem:[%s1809_s0 + $0xd0] sm:$0xff]   ;;  %v1086_v27 = vld [vmem:[%s1809_s0 + $0x58] sm:$0xff]  }
   0xa   :  { %1021 = vmatmul.mubr.msk.bf16.vlgmr.msra.gmra.mrb[0].mxu0 %vm263_vm0, %v1064_v5  ;;  %1037 = vmatmul.mubr.msk.bf16.vlgmr.msra.gmra.mrb[0].mxu1 %vm263_vm0, %v1065_v6  ;;  %v1087_v28 = vld [vmem:[%s1809_s0 + $0xd8] sm:$0xff]   ;;  %v1088_v29 = vld [vmem:[%s1809_s0 + $0x60] sm:$0xff]   ;;  %v1090_v31 = vld [vmem:[%s1809_s0 + $0x68] sm:$0xff]  }
   0xb   :  { %402 = vmatprep.mubr.bf16.mxu0 %v1096_v1  ;;  %562 = vmatprep.mubr.bf16.mxu1 %v1096_v1  ;;  %v1089_v30 = vld [vmem:[%s1809_s0 + $0xe0] sm:$0xff]   ;;  %v1091_v32 = vld [vmem:[%s1809_s0 + $0xe8] sm:$0xff]   ;;  %v1092_v33 = vld [vmem:[%s1809_s0 + $0x70] sm:$0xff]  }
   0xc   :  { %v1093_v34 = vld [vmem:[%s1809_s0 + $0xf0] sm:$0xff]   ;;  %v1094_v35 = vld [vmem:[%s1809_s0 + $0x78] sm:$0xff]   ;;  %v713_v40 = vld [vmem:[%s1810_s2] sm:$0x3] }
   0xd   :  { %v1095_v36 = vld [vmem:[%s1809_s0 + $0xf8] sm:$0xff]   ;;  %v1292_v42 = vrot.slane %v713_v40, %v717_v39  ;;  %v1294_v43 = vrot.slane %v713_v40, %v721_v41 }
  0x12   :  { %1022 = vmatmul.mubr.msk.bf16.gmra.mrb[4].mxu0 %vm263_vm0, %v1066_v7  ;;  %1038 = vmatmul.mubr.msk.bf16.gmra.mrb[4].mxu1 %vm263_vm0, %v1067_v8 }
  0x13   :  { %412 = vmatprep.mubr.bf16.mxu0 %v1096_v1  ;;  %572 = vmatprep.mubr.bf16.mxu1 %v1096_v1 }
  0x1a   :  { %1023 = vmatmul.mubr.msk.bf16.gmra.mrb[8].mxu0 %vm263_vm0, %v1068_v9  ;;  %1039 = vmatmul.mubr.msk.bf16.gmra.mrb[8].mxu1 %vm263_vm0, %v1069_v10 }
  0x1b   :  { %422 = vmatprep.mubr.bf16.mxu0 %v1096_v1  ;;  %582 = vmatprep.mubr.bf16.mxu1 %v1096_v1 }
  0x22   :  { %1024 = vmatmul.mubr.msk.bf16.gmra.mrb[12].mxu0 %vm263_vm0, %v1070_v11  ;;  %1040 = vmatmul.mubr.msk.bf16.gmra.mrb[12].mxu1 %vm263_vm0, %v1071_v12 }
  0x23   :  { %432 = vmatprep.mubr.bf16.mxu0 %v1096_v1  ;;  %592 = vmatprep.mubr.bf16.mxu1 %v1096_v1 }
  0x2a   :  { %1025 = vmatmul.mubr.msk.bf16.gmra.mrb[16].mxu0 %vm263_vm0, %v1072_v13  ;;  %1041 = vmatmul.mubr.msk.bf16.gmra.mrb[16].mxu1 %vm263_vm0, %v1073_v14 }
  0x2b   :  { %442 = vmatprep.mubr.bf16.mxu0 %v1096_v1  ;;  %602 = vmatprep.mubr.bf16.mxu1 %v1096_v1 }
  0x32   :  { %1026 = vmatmul.mubr.msk.bf16.gmra.mrb[20].mxu0 %vm263_vm0, %v1074_v15  ;;  %1042 = vmatmul.mubr.msk.bf16.gmra.mrb[20].mxu1 %vm263_vm0, %v1075_v16 }
  0x33   :  { %452 = vmatprep.mubr.bf16.mxu0 %v1096_v1  ;;  %612 = vmatprep.mubr.bf16.mxu1 %v1096_v1 }
  0x3a   :  { %1027 = vmatmul.mubr.msk.bf16.gmra.mrb[24].mxu0 %vm263_vm0, %v1076_v17  ;;  %1043 = vmatmul.mubr.msk.bf16.gmra.mrb[24].mxu1 %vm263_vm0, %v1077_v18 }
  0x3b   :  { %462 = vmatprep.mubr.bf16.mxu0 %v1096_v1  ;;  %622 = vmatprep.mubr.bf16.mxu1 %v1096_v1 }
  0x42   :  { %1028 = vmatmul.mubr.msk.bf16.gmra.mrb[28].mxu0 %vm263_vm0, %v1078_v19  ;;  %1044 = vmatmul.mubr.msk.bf16.gmra.mrb[28].mxu1 %vm263_vm0, %v1079_v20 }
  0x43   :  { %472 = vmatprep.mubr.bf16.mxu0 %v1096_v1  ;;  %632 = vmatprep.mubr.bf16.mxu1 %v1096_v1 }
  0x4a   :  { %1029 = vmatmul.mubr.msk.bf16.gmra.mrb[32].mxu0 %vm263_vm0, %v1080_v21  ;;  %1045 = vmatmul.mubr.msk.bf16.gmra.mrb[32].mxu1 %vm263_vm0, %v1081_v22 }
  0x4b   :  { %482 = vmatprep.mubr.bf16.mxu0 %v1096_v1  ;;  %642 = vmatprep.mubr.bf16.mxu1 %v1096_v1 }
  0x52   :  { %1030 = vmatmul.mubr.msk.bf16.gmra.mrb[36].mxu0 %vm263_vm0, %v1082_v23  ;;  %1046 = vmatmul.mubr.msk.bf16.gmra.mrb[36].mxu1 %vm263_vm0, %v1083_v24 }
  0x53   :  { %492 = vmatprep.mubr.bf16.mxu0 %v1096_v1  ;;  %652 = vmatprep.mubr.bf16.mxu1 %v1096_v1 }
  0x5a   :  { %1031 = vmatmul.mubr.msk.bf16.gmra.mrb[40].mxu0 %vm263_vm0, %v1084_v25  ;;  %1047 = vmatmul.mubr.msk.bf16.gmra.mrb[40].mxu1 %vm263_vm0, %v1085_v26 }
  0x5b   :  { %502 = vmatprep.mubr.bf16.mxu0 %v1096_v1  ;;  %662 = vmatprep.mubr.bf16.mxu1 %v1096_v1 }
  0x62   :  { %1032 = vmatmul.mubr.msk.bf16.gmra.mrb[44].mxu0 %vm263_vm0, %v1086_v27  ;;  %1048 = vmatmul.mubr.msk.bf16.gmra.mrb[44].mxu1 %vm263_vm0, %v1087_v28 }
  0x63   :  { %512 = vmatprep.mubr.bf16.mxu0 %v1096_v1  ;;  %672 = vmatprep.mubr.bf16.mxu1 %v1096_v1 }
  0x6a   :  { %1033 = vmatmul.mubr.msk.bf16.gmra.mrb[48].mxu0 %vm263_vm0, %v1088_v29  ;;  %1049 = vmatmul.mubr.msk.bf16.gmra.mrb[48].mxu1 %vm263_vm0, %v1089_v30 }
  0x6b   :  { %522 = vmatprep.mubr.bf16.mxu0 %v1096_v1  ;;  %682 = vmatprep.mubr.bf16.mxu1 %v1096_v1 }
  0x72   :  { %1034 = vmatmul.mubr.msk.bf16.gmra.mrb[52].mxu0 %vm263_vm0, %v1090_v31  ;;  %1050 = vmatmul.mubr.msk.bf16.gmra.mrb[52].mxu1 %vm263_vm0, %v1091_v32 }
  0x73   :  { %532 = vmatprep.mubr.bf16.mxu0 %v1096_v1  ;;  %692 = vmatprep.mubr.bf16.mxu1 %v1096_v1 }
  0x7a   :  { %1035 = vmatmul.mubr.msk.bf16.gmra.mrb[56].mxu0 %vm263_vm0, %v1092_v33  ;;  %1051 = vmatmul.mubr.msk.bf16.gmra.mrb[56].mxu1 %vm263_vm0, %v1093_v34 }
  0x7b   :  { %542 = vmatprep.mubr.bf16.mxu0 %v1096_v1  ;;  %702 = vmatprep.mubr.bf16.mxu1 %v1096_v1 }
  0x82   :  { %1036 = vmatmul.mubr.msk.bf16.gmra.mrb[60].mxu0 %vm263_vm0, %v1094_v35  ;;  %1052 = vmatmul.mubr.msk.bf16.gmra.mrb[60].mxu1 %vm263_vm0, %v1095_v36 }
  0xdd   :  { %v394_v44 = vpop.f32.mrb[0].mxu0  ;;  %v554_v45 = vpop.f32.mrb[0].mxu1 }
  0xde   :  { %v725_v46 = vmul.f32 %v1292_v42, %v394_v44  ;;  %v789_v47 = vmul.f32 %v1292_v42, %v554_v45  ;;  %v396_v48 = vpop.f32.mrb[1].mxu0  ;;  %v556_v49 = vpop.f32.mrb[1].mxu1 }
  0xdf   :  { %v726_v50 = vmul.f32 %v1294_v43, %v396_v48  ;;  %v790_v51 = vmul.f32 %v1294_v43, %v556_v49  ;;  %v398_v52 = vpop.f32.mrb[2].mxu0  ;;  %v558_v53 = vpop.f32.mrb[2].mxu1 }
  0xe0   :  { %853 = vst [vmem:[%s1811_s3] sm:$0xff] %v725_v46  ;;  %917 = vst [vmem:[%s1811_s3 + $0x200] sm:$0xff] %v789_v47  ;;  %v727_v54 = vmul.f32 %v1292_v42, %v398_v52  ;;  %v791_v55 = vmul.f32 %v1292_v42, %v558_v53  ;;  %v400_v56 = vpop.f32.mrb[3].mxu0  ;;  %v560_v57 = vpop.f32.mrb[3].mxu1 }
  0xe1   :  { %854 = vst [vmem:[%s1811_s3 + $0x8] sm:$0xff] %v726_v50  ;;  %918 = vst [vmem:[%s1811_s3 + $0x208] sm:$0xff] %v790_v51  ;;  %v728_v58 = vmul.f32 %v1294_v43, %v400_v56  ;;  %v792_v59 = vmul.f32 %v1294_v43, %v560_v57 }
  0xe2   :  { %855 = vst [vmem:[%s1811_s3 + $0x10] sm:$0xff] %v727_v54  ;;  %919 = vst [vmem:[%s1811_s3 + $0x210] sm:$0xff] %v791_v55 }
  0xe3   :  { %856 = vst [vmem:[%s1811_s3 + $0x18] sm:$0xff] %v728_v58  ;;  %920 = vst [vmem:[%s1811_s3 + $0x218] sm:$0xff] %v792_v59 }
  0xe5   :  { %v404_v60 = vpop.f32.mrb[4].mxu0  ;;  %v564_v61 = vpop.f32.mrb[4].mxu1 }
  0xe6   :  { %v729_v62 = vmul.f32 %v1292_v42, %v404_v60  ;;  %v793_v63 = vmul.f32 %v1292_v42, %v564_v61  ;;  %v406_v0 = vpop.f32.mrb[5].mxu0  ;;  %v566_v1 = vpop.f32.mrb[5].mxu1 }
  0xe7   :  { %v730_v2 = vmul.f32 %v1294_v43, %v406_v0  ;;  %v794_v3 = vmul.f32 %v1294_v43, %v566_v1  ;;  %v408_v4 = vpop.f32.mrb[6].mxu0  ;;  %v568_v5 = vpop.f32.mrb[6].mxu1 }
  0xe8   :  { %857 = vst [vmem:[%s1811_s3 + $0x20] sm:$0xff] %v729_v62  ;;  %921 = vst [vmem:[%s1811_s3 + $0x220] sm:$0xff] %v793_v63  ;;  %v731_v6 = vmul.f32 %v1292_v42, %v408_v4  ;;  %v795_v7 = vmul.f32 %v1292_v42, %v568_v5  ;;  %v410_v8 = vpop.f32.mrb[7].mxu0  ;;  %v570_v9 = vpop.f32.mrb[7].mxu1 }
  0xe9   :  { %858 = vst [vmem:[%s1811_s3 + $0x28] sm:$0xff] %v730_v2  ;;  %922 = vst [vmem:[%s1811_s3 + $0x228] sm:$0xff] %v794_v3  ;;  %v732_v10 = vmul.f32 %v1294_v43, %v410_v8  ;;  %v796_v11 = vmul.f32 %v1294_v43, %v570_v9 }
  0xea   :  { %859 = vst [vmem:[%s1811_s3 + $0x30] sm:$0xff] %v731_v6  ;;  %923 = vst [vmem:[%s1811_s3 + $0x230] sm:$0xff] %v795_v7 }
  0xeb   :  { %860 = vst [vmem:[%s1811_s3 + $0x38] sm:$0xff] %v732_v10  ;;  %924 = vst [vmem:[%s1811_s3 + $0x238] sm:$0xff] %v796_v11 }
  0xed   :  { %v414_v12 = vpop.f32.mrb[8].mxu0  ;;  %v574_v13 = vpop.f32.mrb[8].mxu1 }
  0xee   :  { %v733_v14 = vmul.f32 %v1292_v42, %v414_v12  ;;  %v797_v15 = vmul.f32 %v1292_v42, %v574_v13  ;;  %v416_v16 = vpop.f32.mrb[9].mxu0  ;;  %v576_v17 = vpop.f32.mrb[9].mxu1 }
  0xef   :  { %v734_v18 = vmul.f32 %v1294_v43, %v416_v16  ;;  %v798_v19 = vmul.f32 %v1294_v43, %v576_v17  ;;  %v418_v20 = vpop.f32.mrb[10].mxu0  ;;  %v578_v21 = vpop.f32.mrb[10].mxu1 }
  0xf0   :  { %861 = vst [vmem:[%s1811_s3 + $0x40] sm:$0xff] %v733_v14  ;;  %925 = vst [vmem:[%s1811_s3 + $0x240] sm:$0xff] %v797_v15  ;;  %v735_v22 = vmul.f32 %v1292_v42, %v418_v20  ;;  %v799_v23 = vmul.f32 %v1292_v42, %v578_v21  ;;  %v420_v24 = vpop.f32.mrb[11].mxu0  ;;  %v580_v25 = vpop.f32.mrb[11].mxu1 }
  0xf1   :  { %862 = vst [vmem:[%s1811_s3 + $0x48] sm:$0xff] %v734_v18  ;;  %926 = vst [vmem:[%s1811_s3 + $0x248] sm:$0xff] %v798_v19  ;;  %v736_v26 = vmul.f32 %v1294_v43, %v420_v24  ;;  %v800_v27 = vmul.f32 %v1294_v43, %v580_v25 }
  0xf2   :  { %863 = vst [vmem:[%s1811_s3 + $0x50] sm:$0xff] %v735_v22  ;;  %927 = vst [vmem:[%s1811_s3 + $0x250] sm:$0xff] %v799_v23 }
  0xf3   :  { %864 = vst [vmem:[%s1811_s3 + $0x58] sm:$0xff] %v736_v26  ;;  %928 = vst [vmem:[%s1811_s3 + $0x258] sm:$0xff] %v800_v27 }
  0xf5   :  { %v424_v28 = vpop.f32.mrb[12].mxu0  ;;  %v584_v29 = vpop.f32.mrb[12].mxu1 }
  0xf6   :  { %v737_v30 = vmul.f32 %v1292_v42, %v424_v28  ;;  %v801_v31 = vmul.f32 %v1292_v42, %v584_v29  ;;  %v426_v32 = vpop.f32.mrb[13].mxu0  ;;  %v586_v33 = vpop.f32.mrb[13].mxu1 }
  0xf7   :  { %v738_v34 = vmul.f32 %v1294_v43, %v426_v32  ;;  %v802_v35 = vmul.f32 %v1294_v43, %v586_v33  ;;  %v428_v36 = vpop.f32.mrb[14].mxu0  ;;  %v588_v37 = vpop.f32.mrb[14].mxu1 }
  0xf8   :  { %865 = vst [vmem:[%s1811_s3 + $0x60] sm:$0xff] %v737_v30  ;;  %929 = vst [vmem:[%s1811_s3 + $0x260] sm:$0xff] %v801_v31  ;;  %v739_v38 = vmul.f32 %v1292_v42, %v428_v36  ;;  %v803_v39 = vmul.f32 %v1292_v42, %v588_v37  ;;  %v430_v40 = vpop.f32.mrb[15].mxu0  ;;  %v590_v41 = vpop.f32.mrb[15].mxu1 }
  0xf9   :  { %866 = vst [vmem:[%s1811_s3 + $0x68] sm:$0xff] %v738_v34  ;;  %930 = vst [vmem:[%s1811_s3 + $0x268] sm:$0xff] %v802_v35  ;;  %v740_v44 = vmul.f32 %v1294_v43, %v430_v40  ;;  %v804_v45 = vmul.f32 %v1294_v43, %v590_v41 }
  0xfa   :  { %867 = vst [vmem:[%s1811_s3 + $0x70] sm:$0xff] %v739_v38  ;;  %931 = vst [vmem:[%s1811_s3 + $0x270] sm:$0xff] %v803_v39 }
  0xfb   :  { %868 = vst [vmem:[%s1811_s3 + $0x78] sm:$0xff] %v740_v44  ;;  %932 = vst [vmem:[%s1811_s3 + $0x278] sm:$0xff] %v804_v45 }
  0xfd   :  { %v434_v46 = vpop.f32.mrb[16].mxu0  ;;  %v594_v47 = vpop.f32.mrb[16].mxu1 }
  0xfe   :  { %v741_v48 = vmul.f32 %v1292_v42, %v434_v46  ;;  %v805_v49 = vmul.f32 %v1292_v42, %v594_v47  ;;  %v436_v50 = vpop.f32.mrb[17].mxu0  ;;  %v596_v51 = vpop.f32.mrb[17].mxu1 }
  0xff   :  { %v742_v52 = vmul.f32 %v1294_v43, %v436_v50  ;;  %v806_v53 = vmul.f32 %v1294_v43, %v596_v51  ;;  %v438_v54 = vpop.f32.mrb[18].mxu0  ;;  %v598_v55 = vpop.f32.mrb[18].mxu1 }
 0x100   :  { %869 = vst [vmem:[%s1811_s3 + $0x80] sm:$0xff] %v741_v48  ;;  %933 = vst [vmem:[%s1811_s3 + $0x280] sm:$0xff] %v805_v49  ;;  %v743_v56 = vmul.f32 %v1292_v42, %v438_v54  ;;  %v807_v57 = vmul.f32 %v1292_v42, %v598_v55  ;;  %v440_v58 = vpop.f32.mrb[19].mxu0  ;;  %v600_v59 = vpop.f32.mrb[19].mxu1 }
 0x101   :  { %870 = vst [vmem:[%s1811_s3 + $0x88] sm:$0xff] %v742_v52  ;;  %934 = vst [vmem:[%s1811_s3 + $0x288] sm:$0xff] %v806_v53  ;;  %v744_v60 = vmul.f32 %v1294_v43, %v440_v58  ;;  %v808_v61 = vmul.f32 %v1294_v43, %v600_v59 }
 0x102   :  { %871 = vst [vmem:[%s1811_s3 + $0x90] sm:$0xff] %v743_v56  ;;  %935 = vst [vmem:[%s1811_s3 + $0x290] sm:$0xff] %v807_v57 }
 0x103   :  { %872 = vst [vmem:[%s1811_s3 + $0x98] sm:$0xff] %v744_v60  ;;  %936 = vst [vmem:[%s1811_s3 + $0x298] sm:$0xff] %v808_v61 }
 0x105   :  { %v444_v62 = vpop.f32.mrb[20].mxu0  ;;  %v604_v63 = vpop.f32.mrb[20].mxu1 }
 0x106   :  { %v745_v0 = vmul.f32 %v1292_v42, %v444_v62  ;;  %v809_v1 = vmul.f32 %v1292_v42, %v604_v63  ;;  %v446_v2 = vpop.f32.mrb[21].mxu0  ;;  %v606_v3 = vpop.f32.mrb[21].mxu1 }
 0x107   :  { %v746_v4 = vmul.f32 %v1294_v43, %v446_v2  ;;  %v810_v5 = vmul.f32 %v1294_v43, %v606_v3  ;;  %v448_v6 = vpop.f32.mrb[22].mxu0  ;;  %v608_v7 = vpop.f32.mrb[22].mxu1 }
 0x108   :  { %873 = vst [vmem:[%s1811_s3 + $0xa0] sm:$0xff] %v745_v0  ;;  %937 = vst [vmem:[%s1811_s3 + $0x2a0] sm:$0xff] %v809_v1  ;;  %v747_v8 = vmul.f32 %v1292_v42, %v448_v6  ;;  %v811_v9 = vmul.f32 %v1292_v42, %v608_v7  ;;  %v450_v10 = vpop.f32.mrb[23].mxu0  ;;  %v610_v11 = vpop.f32.mrb[23].mxu1 }
 0x109   :  { %874 = vst [vmem:[%s1811_s3 + $0xa8] sm:$0xff] %v746_v4  ;;  %938 = vst [vmem:[%s1811_s3 + $0x2a8] sm:$0xff] %v810_v5  ;;  %v748_v12 = vmul.f32 %v1294_v43, %v450_v10  ;;  %v812_v13 = vmul.f32 %v1294_v43, %v610_v11 }
 0x10a   :  { %875 = vst [vmem:[%s1811_s3 + $0xb0] sm:$0xff] %v747_v8  ;;  %939 = vst [vmem:[%s1811_s3 + $0x2b0] sm:$0xff] %v811_v9 }
 0x10b   :  { %876 = vst [vmem:[%s1811_s3 + $0xb8] sm:$0xff] %v748_v12  ;;  %940 = vst [vmem:[%s1811_s3 + $0x2b8] sm:$0xff] %v812_v13 }
 0x10d   :  { %v454_v14 = vpop.f32.mrb[24].mxu0  ;;  %v614_v15 = vpop.f32.mrb[24].mxu1 }
 0x10e   :  { %v749_v16 = vmul.f32 %v1292_v42, %v454_v14  ;;  %v813_v17 = vmul.f32 %v1292_v42, %v614_v15  ;;  %v456_v18 = vpop.f32.mrb[25].mxu0  ;;  %v616_v19 = vpop.f32.mrb[25].mxu1 }
 0x10f   :  { %v750_v20 = vmul.f32 %v1294_v43, %v456_v18  ;;  %v814_v21 = vmul.f32 %v1294_v43, %v616_v19  ;;  %v458_v22 = vpop.f32.mrb[26].mxu0  ;;  %v618_v23 = vpop.f32.mrb[26].mxu1 }
 0x110   :  { %877 = vst [vmem:[%s1811_s3 + $0xc0] sm:$0xff] %v749_v16  ;;  %941 = vst [vmem:[%s1811_s3 + $0x2c0] sm:$0xff] %v813_v17  ;;  %v751_v24 = vmul.f32 %v1292_v42, %v458_v22  ;;  %v815_v25 = vmul.f32 %v1292_v42, %v618_v23  ;;  %v460_v26 = vpop.f32.mrb[27].mxu0  ;;  %v620_v27 = vpop.f32.mrb[27].mxu1 }
 0x111   :  { %878 = vst [vmem:[%s1811_s3 + $0xc8] sm:$0xff] %v750_v20  ;;  %942 = vst [vmem:[%s1811_s3 + $0x2c8] sm:$0xff] %v814_v21  ;;  %v752_v28 = vmul.f32 %v1294_v43, %v460_v26  ;;  %v816_v29 = vmul.f32 %v1294_v43, %v620_v27 }
 0x112   :  { %879 = vst [vmem:[%s1811_s3 + $0xd0] sm:$0xff] %v751_v24  ;;  %943 = vst [vmem:[%s1811_s3 + $0x2d0] sm:$0xff] %v815_v25 }
 0x113   :  { %880 = vst [vmem:[%s1811_s3 + $0xd8] sm:$0xff] %v752_v28  ;;  %944 = vst [vmem:[%s1811_s3 + $0x2d8] sm:$0xff] %v816_v29 }
 0x115   :  { %v464_v30 = vpop.f32.mrb[28].mxu0  ;;  %v624_v31 = vpop.f32.mrb[28].mxu1 }
 0x116   :  { %v753_v32 = vmul.f32 %v1292_v42, %v464_v30  ;;  %v817_v33 = vmul.f32 %v1292_v42, %v624_v31  ;;  %v466_v34 = vpop.f32.mrb[29].mxu0  ;;  %v626_v35 = vpop.f32.mrb[29].mxu1 }
 0x117   :  { %v754_v36 = vmul.f32 %v1294_v43, %v466_v34  ;;  %v818_v37 = vmul.f32 %v1294_v43, %v626_v35  ;;  %v468_v38 = vpop.f32.mrb[30].mxu0  ;;  %v628_v39 = vpop.f32.mrb[30].mxu1 }
 0x118   :  { %881 = vst [vmem:[%s1811_s3 + $0xe0] sm:$0xff] %v753_v32  ;;  %945 = vst [vmem:[%s1811_s3 + $0x2e0] sm:$0xff] %v817_v33  ;;  %v755_v40 = vmul.f32 %v1292_v42, %v468_v38  ;;  %v819_v41 = vmul.f32 %v1292_v42, %v628_v39  ;;  %v470_v44 = vpop.f32.mrb[31].mxu0  ;;  %v630_v45 = vpop.f32.mrb[31].mxu1 }
 0x119   :  { %882 = vst [vmem:[%s1811_s3 + $0xe8] sm:$0xff] %v754_v36  ;;  %946 = vst [vmem:[%s1811_s3 + $0x2e8] sm:$0xff] %v818_v37  ;;  %v756_v46 = vmul.f32 %v1294_v43, %v470_v44  ;;  %v820_v47 = vmul.f32 %v1294_v43, %v630_v45 }
 0x11a   :  { %883 = vst [vmem:[%s1811_s3 + $0xf0] sm:$0xff] %v755_v40  ;;  %947 = vst [vmem:[%s1811_s3 + $0x2f0] sm:$0xff] %v819_v41 }
 0x11b   :  { %884 = vst [vmem:[%s1811_s3 + $0xf8] sm:$0xff] %v756_v46  ;;  %948 = vst [vmem:[%s1811_s3 + $0x2f8] sm:$0xff] %v820_v47 }
 0x11d   :  { %v474_v48 = vpop.f32.mrb[32].mxu0  ;;  %v634_v49 = vpop.f32.mrb[32].mxu1 }
 0x11e   :  { %v757_v50 = vmul.f32 %v1292_v42, %v474_v48  ;;  %v821_v51 = vmul.f32 %v1292_v42, %v634_v49  ;;  %v476_v52 = vpop.f32.mrb[33].mxu0  ;;  %v636_v53 = vpop.f32.mrb[33].mxu1 }
 0x11f   :  { %v758_v54 = vmul.f32 %v1294_v43, %v476_v52  ;;  %v822_v55 = vmul.f32 %v1294_v43, %v636_v53  ;;  %v478_v56 = vpop.f32.mrb[34].mxu0  ;;  %v638_v57 = vpop.f32.mrb[34].mxu1 }
 0x120   :  { %885 = vst [vmem:[%s1811_s3 + $0x100] sm:$0xff] %v757_v50  ;;  %949 = vst [vmem:[%s1811_s3 + $0x300] sm:$0xff] %v821_v51  ;;  %v759_v58 = vmul.f32 %v1292_v42, %v478_v56  ;;  %v823_v59 = vmul.f32 %v1292_v42, %v638_v57  ;;  %v480_v60 = vpop.f32.mrb[35].mxu0  ;;  %v640_v61 = vpop.f32.mrb[35].mxu1 }
 0x121   :  { %886 = vst [vmem:[%s1811_s3 + $0x108] sm:$0xff] %v758_v54  ;;  %950 = vst [vmem:[%s1811_s3 + $0x308] sm:$0xff] %v822_v55  ;;  %v760_v62 = vmul.f32 %v1294_v43, %v480_v60  ;;  %v824_v63 = vmul.f32 %v1294_v43, %v640_v61 }
 0x122   :  { %887 = vst [vmem:[%s1811_s3 + $0x110] sm:$0xff] %v759_v58  ;;  %951 = vst [vmem:[%s1811_s3 + $0x310] sm:$0xff] %v823_v59 }
 0x123   :  { %888 = vst [vmem:[%s1811_s3 + $0x118] sm:$0xff] %v760_v62  ;;  %952 = vst [vmem:[%s1811_s3 + $0x318] sm:$0xff] %v824_v63 }
 0x125   :  { %v484_v0 = vpop.f32.mrb[36].mxu0  ;;  %v644_v1 = vpop.f32.mrb[36].mxu1 }
 0x126   :  { %v761_v2 = vmul.f32 %v1292_v42, %v484_v0  ;;  %v825_v3 = vmul.f32 %v1292_v42, %v644_v1  ;;  %v486_v4 = vpop.f32.mrb[37].mxu0  ;;  %v646_v5 = vpop.f32.mrb[37].mxu1 }
 0x127   :  { %v762_v6 = vmul.f32 %v1294_v43, %v486_v4  ;;  %v826_v7 = vmul.f32 %v1294_v43, %v646_v5  ;;  %v488_v8 = vpop.f32.mrb[38].mxu0  ;;  %v648_v9 = vpop.f32.mrb[38].mxu1 }
 0x128   :  { %889 = vst [vmem:[%s1811_s3 + $0x120] sm:$0xff] %v761_v2  ;;  %953 = vst [vmem:[%s1811_s3 + $0x320] sm:$0xff] %v825_v3  ;;  %v763_v10 = vmul.f32 %v1292_v42, %v488_v8  ;;  %v827_v11 = vmul.f32 %v1292_v42, %v648_v9  ;;  %v490_v12 = vpop.f32.mrb[39].mxu0  ;;  %v650_v13 = vpop.f32.mrb[39].mxu1 }
 0x129   :  { %890 = vst [vmem:[%s1811_s3 + $0x128] sm:$0xff] %v762_v6  ;;  %954 = vst [vmem:[%s1811_s3 + $0x328] sm:$0xff] %v826_v7  ;;  %v764_v14 = vmul.f32 %v1294_v43, %v490_v12  ;;  %v828_v15 = vmul.f32 %v1294_v43, %v650_v13 }
 0x12a   :  { %891 = vst [vmem:[%s1811_s3 + $0x130] sm:$0xff] %v763_v10  ;;  %955 = vst [vmem:[%s1811_s3 + $0x330] sm:$0xff] %v827_v11 }
 0x12b   :  { %892 = vst [vmem:[%s1811_s3 + $0x138] sm:$0xff] %v764_v14  ;;  %956 = vst [vmem:[%s1811_s3 + $0x338] sm:$0xff] %v828_v15 }
 0x12d   :  { %v494_v16 = vpop.f32.mrb[40].mxu0  ;;  %v654_v17 = vpop.f32.mrb[40].mxu1 }
 0x12e   :  { %v765_v18 = vmul.f32 %v1292_v42, %v494_v16  ;;  %v829_v19 = vmul.f32 %v1292_v42, %v654_v17  ;;  %v496_v20 = vpop.f32.mrb[41].mxu0  ;;  %v656_v21 = vpop.f32.mrb[41].mxu1 }
 0x12f   :  { %v766_v22 = vmul.f32 %v1294_v43, %v496_v20  ;;  %v830_v23 = vmul.f32 %v1294_v43, %v656_v21  ;;  %v498_v24 = vpop.f32.mrb[42].mxu0  ;;  %v658_v25 = vpop.f32.mrb[42].mxu1 }
 0x130   :  { %893 = vst [vmem:[%s1811_s3 + $0x140] sm:$0xff] %v765_v18  ;;  %957 = vst [vmem:[%s1811_s3 + $0x340] sm:$0xff] %v829_v19  ;;  %v767_v26 = vmul.f32 %v1292_v42, %v498_v24  ;;  %v831_v27 = vmul.f32 %v1292_v42, %v658_v25  ;;  %v500_v28 = vpop.f32.mrb[43].mxu0  ;;  %v660_v29 = vpop.f32.mrb[43].mxu1 }
 0x131   :  { %894 = vst [vmem:[%s1811_s3 + $0x148] sm:$0xff] %v766_v22  ;;  %958 = vst [vmem:[%s1811_s3 + $0x348] sm:$0xff] %v830_v23  ;;  %v768_v30 = vmul.f32 %v1294_v43, %v500_v28  ;;  %v832_v31 = vmul.f32 %v1294_v43, %v660_v29 }
 0x132   :  { %895 = vst [vmem:[%s1811_s3 + $0x150] sm:$0xff] %v767_v26  ;;  %959 = vst [vmem:[%s1811_s3 + $0x350] sm:$0xff] %v831_v27 }
 0x133   :  { %896 = vst [vmem:[%s1811_s3 + $0x158] sm:$0xff] %v768_v30  ;;  %960 = vst [vmem:[%s1811_s3 + $0x358] sm:$0xff] %v832_v31 }
 0x135   :  { %v504_v32 = vpop.f32.mrb[44].mxu0  ;;  %v664_v33 = vpop.f32.mrb[44].mxu1 }
 0x136   :  { %v769_v34 = vmul.f32 %v1292_v42, %v504_v32  ;;  %v833_v35 = vmul.f32 %v1292_v42, %v664_v33  ;;  %v506_v36 = vpop.f32.mrb[45].mxu0  ;;  %v666_v37 = vpop.f32.mrb[45].mxu1 }
 0x137   :  { %v770_v38 = vmul.f32 %v1294_v43, %v506_v36  ;;  %v834_v39 = vmul.f32 %v1294_v43, %v666_v37  ;;  %v508_v40 = vpop.f32.mrb[46].mxu0  ;;  %v668_v41 = vpop.f32.mrb[46].mxu1 }
 0x138   :  { %897 = vst [vmem:[%s1811_s3 + $0x160] sm:$0xff] %v769_v34  ;;  %961 = vst [vmem:[%s1811_s3 + $0x360] sm:$0xff] %v833_v35  ;;  %v771_v44 = vmul.f32 %v1292_v42, %v508_v40  ;;  %v835_v45 = vmul.f32 %v1292_v42, %v668_v41  ;;  %v510_v46 = vpop.f32.mrb[47].mxu0  ;;  %v670_v47 = vpop.f32.mrb[47].mxu1 }
 0x139   :  { %898 = vst [vmem:[%s1811_s3 + $0x168] sm:$0xff] %v770_v38  ;;  %962 = vst [vmem:[%s1811_s3 + $0x368] sm:$0xff] %v834_v39  ;;  %v772_v48 = vmul.f32 %v1294_v43, %v510_v46  ;;  %v836_v49 = vmul.f32 %v1294_v43, %v670_v47 }
 0x13a   :  { %899 = vst [vmem:[%s1811_s3 + $0x170] sm:$0xff] %v771_v44  ;;  %963 = vst [vmem:[%s1811_s3 + $0x370] sm:$0xff] %v835_v45 }
 0x13b   :  { %900 = vst [vmem:[%s1811_s3 + $0x178] sm:$0xff] %v772_v48  ;;  %964 = vst [vmem:[%s1811_s3 + $0x378] sm:$0xff] %v836_v49 }
 0x13d   :  { %v514_v50 = vpop.f32.mrb[48].mxu0  ;;  %v674_v51 = vpop.f32.mrb[48].mxu1 }
 0x13e   :  { %v773_v52 = vmul.f32 %v1292_v42, %v514_v50  ;;  %v837_v53 = vmul.f32 %v1292_v42, %v674_v51  ;;  %v516_v54 = vpop.f32.mrb[49].mxu0  ;;  %v676_v55 = vpop.f32.mrb[49].mxu1 }
 0x13f   :  { %v774_v56 = vmul.f32 %v1294_v43, %v516_v54  ;;  %v838_v57 = vmul.f32 %v1294_v43, %v676_v55  ;;  %v518_v58 = vpop.f32.mrb[50].mxu0  ;;  %v678_v59 = vpop.f32.mrb[50].mxu1 }
 0x140   :  { %901 = vst [vmem:[%s1811_s3 + $0x180] sm:$0xff] %v773_v52  ;;  %965 = vst [vmem:[%s1811_s3 + $0x380] sm:$0xff] %v837_v53  ;;  %v775_v60 = vmul.f32 %v1292_v42, %v518_v58  ;;  %v839_v61 = vmul.f32 %v1292_v42, %v678_v59  ;;  %v520_v62 = vpop.f32.mrb[51].mxu0  ;;  %v680_v63 = vpop.f32.mrb[51].mxu1 }
 0x141   :  { %902 = vst [vmem:[%s1811_s3 + $0x188] sm:$0xff] %v774_v56  ;;  %966 = vst [vmem:[%s1811_s3 + $0x388] sm:$0xff] %v838_v57  ;;  %v776_v0 = vmul.f32 %v1294_v43, %v520_v62  ;;  %v840_v1 = vmul.f32 %v1294_v43, %v680_v63 }
 0x142   :  { %903 = vst [vmem:[%s1811_s3 + $0x190] sm:$0xff] %v775_v60  ;;  %967 = vst [vmem:[%s1811_s3 + $0x390] sm:$0xff] %v839_v61 }
 0x143   :  { %904 = vst [vmem:[%s1811_s3 + $0x198] sm:$0xff] %v776_v0  ;;  %968 = vst [vmem:[%s1811_s3 + $0x398] sm:$0xff] %v840_v1 }
 0x145   :  { %v524_v2 = vpop.f32.mrb[52].mxu0  ;;  %v684_v3 = vpop.f32.mrb[52].mxu1 }
 0x146   :  { %v777_v4 = vmul.f32 %v1292_v42, %v524_v2  ;;  %v841_v5 = vmul.f32 %v1292_v42, %v684_v3  ;;  %v526_v6 = vpop.f32.mrb[53].mxu0  ;;  %v686_v7 = vpop.f32.mrb[53].mxu1 }
 0x147   :  { %v778_v8 = vmul.f32 %v1294_v43, %v526_v6  ;;  %v842_v9 = vmul.f32 %v1294_v43, %v686_v7  ;;  %v528_v10 = vpop.f32.mrb[54].mxu0  ;;  %v688_v11 = vpop.f32.mrb[54].mxu1 }
 0x148   :  { %905 = vst [vmem:[%s1811_s3 + $0x1a0] sm:$0xff] %v777_v4  ;;  %969 = vst [vmem:[%s1811_s3 + $0x3a0] sm:$0xff] %v841_v5  ;;  %v779_v12 = vmul.f32 %v1292_v42, %v528_v10  ;;  %v843_v13 = vmul.f32 %v1292_v42, %v688_v11  ;;  %v530_v14 = vpop.f32.mrb[55].mxu0  ;;  %v690_v15 = vpop.f32.mrb[55].mxu1 }
 0x149   :  { %906 = vst [vmem:[%s1811_s3 + $0x1a8] sm:$0xff] %v778_v8  ;;  %970 = vst [vmem:[%s1811_s3 + $0x3a8] sm:$0xff] %v842_v9  ;;  %v780_v16 = vmul.f32 %v1294_v43, %v530_v14  ;;  %v844_v17 = vmul.f32 %v1294_v43, %v690_v15 }
 0x14a   :  { %907 = vst [vmem:[%s1811_s3 + $0x1b0] sm:$0xff] %v779_v12  ;;  %971 = vst [vmem:[%s1811_s3 + $0x3b0] sm:$0xff] %v843_v13 }
 0x14b   :  { %908 = vst [vmem:[%s1811_s3 + $0x1b8] sm:$0xff] %v780_v16  ;;  %972 = vst [vmem:[%s1811_s3 + $0x3b8] sm:$0xff] %v844_v17 }
 0x14d   :  { %v534_v18 = vpop.f32.mrb[56].mxu0  ;;  %v694_v19 = vpop.f32.mrb[56].mxu1 }
 0x14e   :  { %v781_v20 = vmul.f32 %v1292_v42, %v534_v18  ;;  %v845_v21 = vmul.f32 %v1292_v42, %v694_v19  ;;  %v536_v22 = vpop.f32.mrb[57].mxu0  ;;  %v696_v23 = vpop.f32.mrb[57].mxu1 }
 0x14f   :  { %v782_v24 = vmul.f32 %v1294_v43, %v536_v22  ;;  %v846_v25 = vmul.f32 %v1294_v43, %v696_v23  ;;  %v538_v26 = vpop.f32.mrb[58].mxu0  ;;  %v698_v27 = vpop.f32.mrb[58].mxu1 }
 0x150   :  { %909 = vst [vmem:[%s1811_s3 + $0x1c0] sm:$0xff] %v781_v20  ;;  %973 = vst [vmem:[%s1811_s3 + $0x3c0] sm:$0xff] %v845_v21  ;;  %v783_v28 = vmul.f32 %v1292_v42, %v538_v26  ;;  %v847_v29 = vmul.f32 %v1292_v42, %v698_v27  ;;  %v540_v30 = vpop.f32.mrb[59].mxu0  ;;  %v700_v31 = vpop.f32.mrb[59].mxu1 }
 0x151   :  { %910 = vst [vmem:[%s1811_s3 + $0x1c8] sm:$0xff] %v782_v24  ;;  %974 = vst [vmem:[%s1811_s3 + $0x3c8] sm:$0xff] %v846_v25  ;;  %v784_v32 = vmul.f32 %v1294_v43, %v540_v30  ;;  %v848_v33 = vmul.f32 %v1294_v43, %v700_v31 }
 0x152   :  { %911 = vst [vmem:[%s1811_s3 + $0x1d0] sm:$0xff] %v783_v28  ;;  %975 = vst [vmem:[%s1811_s3 + $0x3d0] sm:$0xff] %v847_v29 }
 0x153   :  { %912 = vst [vmem:[%s1811_s3 + $0x1d8] sm:$0xff] %v784_v32  ;;  %976 = vst [vmem:[%s1811_s3 + $0x3d8] sm:$0xff] %v848_v33 }
 0x155   :  { %v544_v34 = vpop.f32.mrb[60].mxu0  ;;  %v704_v35 = vpop.f32.mrb[60].mxu1 }
 0x156   :  { %v785_v36 = vmul.f32 %v1292_v42, %v544_v34  ;;  %v849_v37 = vmul.f32 %v1292_v42, %v704_v35  ;;  %v546_v38 = vpop.f32.mrb[61].mxu0  ;;  %v706_v39 = vpop.f32.mrb[61].mxu1 }
 0x157   :  { %v786_v40 = vmul.f32 %v1294_v43, %v546_v38  ;;  %v850_v41 = vmul.f32 %v1294_v43, %v706_v39  ;;  %v548_v44 = vpop.f32.mrb[62].mxu0  ;;  %v708_v45 = vpop.f32.mrb[62].mxu1 }
 0x158   :  { %913 = vst [vmem:[%s1811_s3 + $0x1e0] sm:$0xff] %v785_v36  ;;  %977 = vst [vmem:[%s1811_s3 + $0x3e0] sm:$0xff] %v849_v37  ;;  %v787_v46 = vmul.f32 %v1292_v42, %v548_v44  ;;  %v851_v47 = vmul.f32 %v1292_v42, %v708_v45  ;;  %v550_v48 = vpop.f32.mrb[63].mxu0  ;;  %v710_v49 = vpop.f32.mrb[63].mxu1 }
 0x159   :  { %914 = vst [vmem:[%s1811_s3 + $0x1e8] sm:$0xff] %v786_v40  ;;  %978 = vst [vmem:[%s1811_s3 + $0x3e8] sm:$0xff] %v850_v41  ;;  %v788_v50 = vmul.f32 %v1294_v43, %v550_v48  ;;  %v852_v51 = vmul.f32 %v1294_v43, %v710_v49 }
 0x15a   :  { %915 = vst [vmem:[%s1811_s3 + $0x1f0] sm:$0xff] %v787_v46  ;;  %979 = vst [vmem:[%s1811_s3 + $0x3f0] sm:$0xff] %v851_v47 }
 0x15b   :  { %916 = vst [vmem:[%s1811_s3 + $0x1f8] sm:$0xff] %v788_v50  ;;  %980 = vst [vmem:[%s1811_s3 + $0x3f8] sm:$0xff] %v852_v51 }

// kernel: tile.21
= control target key start
LH: loop header
LB: loop body
LE: loop exit
PB: predicated region body
PF: predicated region fallthrough
CT: control target
= control target key end

     0   :  { %s20_s0 = inlined_call_operand.<no memory space> [shape: f32[], index: 0, kind: input, shape index: {}]   ;;  %s21_s1 = inlined_call_operand.vmem [shape: f32[48], index: 1, kind: output, shape index: {}]  }
   0x1   :  { %v2_v0 = vstv %s20_s0 }
   0x2   :  { %3 = vst [vmem:[%s21_s1] sm:$0x1] %v2_v0 }

// kernel: netG_forward.9
= control target key start
LH: loop header
LB: loop body
LE: loop exit
PB: predicated region body
PF: predicated region fallthrough
CT: control target
= control target key end

     0   :  { %s2258_s12 = smov 0   ;;  %s2260_s13 = smov 0   ;;  %s2691_s0 = inlined_call_operand.vmem [shape: bf16[2048,16], index: 0, kind: input, shape index: {}]   ;;  %s2692_s1 = inlined_call_operand.vmem [shape: bf16[16,128], index: 1, kind: input, shape index: {}]   ;;  %s2693_s2 = inlined_call_operand.vmem [shape: f32[1,128], index: 2, kind: input, shape index: {}]   ;;  %s2694_s3 = inlined_call_operand.vmem [shape: f32[2048,128], index: 3, kind: output, shape index: {}]  }
   0x1   :  { %s2262_s14 = smov 0  }
   0x2 LB: > { %s25_s15 = sadd.s32 1, %s2232_s13  ;;  %p1791_p0 = scmp.ge.s32.totalorder %s2236_s14, 1  ;;  %s2236_s14 = sphi %s2262_s14, %s13_s14   ;;  %s2232_s13 = sphi %s2260_s13, %s2696_s13   ;;  %s2228_s12 = sphi %s2258_s12, %s2695_s12  }
   0x3   : > { %p27_p1 = scmp.ge.s32.totalorder %s25_s15, 2  ;;  %p169_p2 = scmp.lt.s32.totalorder %s2236_s14, 3 }
   0x5   : > { %s2698_s15 = smov (%p27_p1, %s25_s15), 0  ;;  %p170_p3 = pnand %p1791_p0, %p169_p2 }
   0x6   : > { %v2149_v0 = vld [vmem:[%s2692_s1] sm:$0xff] (!%p170_p3)   ;;  %s1792_s18 = sshll.u32 (!%p170_p3), %s2228_s12, 7  ;;  %vm682_vm0 = vcmask (!%p170_p3), 130048  }
   0x7   : > { %173 = sbr.rel (%p170_p3) target bundleno = 358 (0x166), region = 32  ;;  %p204_p4 = scmp.lt.s32.totalorder (!%p170_p3), %s1792_s18, 255  ;;  %1993 = vmatprep.subr.bf16.mxu0 (!%p170_p3), %v2149_v0  ;;  %2123 = vmatprep.subr.bf16.mxu1 (!%p170_p3), %v2149_v0 }
   0x8   : > { %1994 = vmatpush3.bf16.msra.mxu0 (!%p170_p3), %v2149_v0  ;;  %2124 = vmatpush3.bf16.msra.mxu1 (!%p170_p3), %v2149_v0 }
   0xe   : > { %s2700_s18 = smov (!%p204_p4, %s1792_s18), 255 }
   0xf   : > { %s1793_s19 = sshll.u32 %s2700_s18, 2  ;;  %s1795_s23 = sshll.u32 %s2700_s18, 3 }
  0x10   : > { %s2285_s22 = scalar_lea.vmem %s2691_s0, %s1793_s19  ;;  %s2424_s28 = scalar_lea.vmem %s2694_s3, %s1795_s23 }
  0x11   : > { %v2150_v1 = vld [vmem:[%s2285_s22] sm:$0xff]   ;;  %v2152_v3 = vld [vmem:[%s2285_s22 + $0x8] sm:$0xff]   ;;  %v2154_v5 = vld [vmem:[%s2285_s22 + $0x10] sm:$0xff]  }
  0x12   : > { %v2151_v2 = vld [vmem:[%s2285_s22 + $0x100] sm:$0xff]   ;;  %1995 = vmatprep.mubr.msk.bf16.mxu0 %vm682_vm0, %v2150_v1  ;;  %v2153_v4 = vld [vmem:[%s2285_s22 + $0x108] sm:$0xff]   ;;  %v2155_v6 = vld [vmem:[%s2285_s22 + $0x110] sm:$0xff]  }
  0x13   : > { %2059 = vmatprep.mubr.msk.bf16.mxu1 %vm682_vm0, %v2151_v2  ;;  %1996 = vmatmul.mubr.msk.bf16.vlgmr.msra.gmra.mrb[0].mxu0 %vm682_vm0, %v2152_v3  ;;  %v2156_v7 = vld [vmem:[%s2285_s22 + $0x18] sm:$0xff]   ;;  %v2158_v9 = vld [vmem:[%s2285_s22 + $0x20] sm:$0xff]   ;;  %v2160_v11 = vld [vmem:[%s2285_s22 + $0x28] sm:$0xff]  }
  0x14   : > { %2060 = vmatmul.mubr.msk.bf16.vlgmr.msra.gmra.mrb[0].mxu1 %vm682_vm0, %v2153_v4  ;;  %1999 = vmatprep.mubr.msk.bf16.mxu0 %vm682_vm0, %v2154_v5  ;;  %v2157_v8 = vld [vmem:[%s2285_s22 + $0x118] sm:$0xff]   ;;  %v2159_v10 = vld [vmem:[%s2285_s22 + $0x120] sm:$0xff]   ;;  %v2161_v12 = vld [vmem:[%s2285_s22 + $0x128] sm:$0xff]  }
  0x15   : > { %2063 = vmatprep.mubr.msk.bf16.mxu1 %vm682_vm0, %v2155_v6  ;;  %v2162_v13 = vld [vmem:[%s2285_s22 + $0x30] sm:$0xff]   ;;  %v2164_v15 = vld [vmem:[%s2285_s22 + $0x38] sm:$0xff]   ;;  %v2166_v17 = vld [vmem:[%s2285_s22 + $0x40] sm:$0xff]  }
  0x16   : > { %v2163_v14 = vld [vmem:[%s2285_s22 + $0x130] sm:$0xff]   ;;  %v2165_v16 = vld [vmem:[%s2285_s22 + $0x138] sm:$0xff]   ;;  %v2167_v18 = vld [vmem:[%s2285_s22 + $0x140] sm:$0xff]  }
  0x17   : > { %v2168_v19 = vld [vmem:[%s2285_s22 + $0x48] sm:$0xff]   ;;  %v2170_v21 = vld [vmem:[%s2285_s22 + $0x50] sm:$0xff]   ;;  %v2172_v23 = vld [vmem:[%s2285_s22 + $0x58] sm:$0xff]  }
  0x18   : > { %v2169_v20 = vld [vmem:[%s2285_s22 + $0x148] sm:$0xff]   ;;  %v2171_v22 = vld [vmem:[%s2285_s22 + $0x150] sm:$0xff]   ;;  %v2173_v24 = vld [vmem:[%s2285_s22 + $0x158] sm:$0xff]  }
  0x19   : > { %v2174_v25 = vld [vmem:[%s2285_s22 + $0x60] sm:$0xff]   ;;  %v2176_v27 = vld [vmem:[%s2285_s22 + $0x68] sm:$0xff]   ;;  %v2178_v29 = vld [vmem:[%s2285_s22 + $0x70] sm:$0xff]  }
  0x1a   : > { %v2175_v26 = vld [vmem:[%s2285_s22 + $0x160] sm:$0xff]   ;;  %v2177_v28 = vld [vmem:[%s2285_s22 + $0x168] sm:$0xff]   ;;  %v2179_v30 = vld [vmem:[%s2285_s22 + $0x170] sm:$0xff]  }
  0x1b   : > { %2000 = vmatmul.mubr.msk.bf16.gmra.mrb[4].mxu0 %vm682_vm0, %v2156_v7  ;;  %v2180_v31 = vld [vmem:[%s2285_s22 + $0x78] sm:$0xff]   ;;  %v2182_v33 = vld [vmem:[%s2285_s22 + $0x80] sm:$0xff]   ;;  %v2184_v35 = vld [vmem:[%s2285_s22 + $0x88] sm:$0xff]  }
  0x1c   : > { %2064 = vmatmul.mubr.msk.bf16.gmra.mrb[4].mxu1 %vm682_vm0, %v2157_v8  ;;  %2003 = vmatprep.mubr.msk.bf16.mxu0 %vm682_vm0, %v2158_v9  ;;  %v2181_v32 = vld [vmem:[%s2285_s22 + $0x178] sm:$0xff]   ;;  %v2183_v34 = vld [vmem:[%s2285_s22 + $0x180] sm:$0xff]   ;;  %v2185_v36 = vld [vmem:[%s2285_s22 + $0x188] sm:$0xff]  }
  0x1d   : > { %2067 = vmatprep.mubr.msk.bf16.mxu1 %vm682_vm0, %v2159_v10  ;;  %v2186_v37 = vld [vmem:[%s2285_s22 + $0x90] sm:$0xff]   ;;  %v2188_v39 = vld [vmem:[%s2285_s22 + $0x98] sm:$0xff]   ;;  %v2190_v41 = vld [vmem:[%s2285_s22 + $0xa0] sm:$0xff]  }
  0x1e   : > { %v2187_v38 = vld [vmem:[%s2285_s22 + $0x190] sm:$0xff]   ;;  %v2189_v40 = vld [vmem:[%s2285_s22 + $0x198] sm:$0xff]   ;;  %v2191_v42 = vld [vmem:[%s2285_s22 + $0x1a0] sm:$0xff]  }
  0x1f   : > { %v2192_v43 = vld [vmem:[%s2285_s22 + $0xa8] sm:$0xff]   ;;  %v2194_v45 = vld [vmem:[%s2285_s22 + $0xb0] sm:$0xff]   ;;  %v2196_v47 = vld [vmem:[%s2285_s22 + $0xb8] sm:$0xff]  }
  0x20   : > { %v2193_v44 = vld [vmem:[%s2285_s22 + $0x1a8] sm:$0xff]   ;;  %v2195_v46 = vld [vmem:[%s2285_s22 + $0x1b0] sm:$0xff]   ;;  %v2197_v48 = vld [vmem:[%s2285_s22 + $0x1b8] sm:$0xff]  }
  0x21   : > { %v2198_v49 = vld [vmem:[%s2285_s22 + $0xc0] sm:$0xff]   ;;  %v2200_v51 = vld [vmem:[%s2285_s22 + $0xc8] sm:$0xff]   ;;  %v2202_v53 = vld [vmem:[%s2285_s22 + $0xd0] sm:$0xff]  }
  0x22   : > { %v2199_v50 = vld [vmem:[%s2285_s22 + $0x1c0] sm:$0xff]   ;;  %v2201_v52 = vld [vmem:[%s2285_s22 + $0x1c8] sm:$0xff]   ;;  %v2203_v54 = vld [vmem:[%s2285_s22 + $0x1d0] sm:$0xff]  }
  0x23   : > { %2004 = vmatmul.mubr.msk.bf16.gmra.mrb[8].mxu0 %vm682_vm0, %v2160_v11  ;;  %v2204_v55 = vld [vmem:[%s2285_s22 + $0xd8] sm:$0xff]   ;;  %v2206_v57 = vld [vmem:[%s2285_s22 + $0xe0] sm:$0xff]   ;;  %v2208_v59 = vld [vmem:[%s2285_s22 + $0xe8] sm:$0xff]  }
  0x24   : > { %2068 = vmatmul.mubr.msk.bf16.gmra.mrb[8].mxu1 %vm682_vm0, %v2161_v12  ;;  %2007 = vmatprep.mubr.msk.bf16.mxu0 %vm682_vm0, %v2162_v13  ;;  %v2205_v56 = vld [vmem:[%s2285_s22 + $0x1d8] sm:$0xff]   ;;  %v2207_v58 = vld [vmem:[%s2285_s22 + $0x1e0] sm:$0xff]   ;;  %v2209_v60 = vld [vmem:[%s2285_s22 + $0x1e8] sm:$0xff]  }
  0x25   : > { %2071 = vmatprep.mubr.msk.bf16.mxu1 %vm682_vm0, %v2163_v14  ;;  %v2210_v61 = vld [vmem:[%s2285_s22 + $0xf0] sm:$0xff]   ;;  %v2212_v63 = vld [vmem:[%s2285_s22 + $0xf8] sm:$0xff]   ;;  %v2419_v1 = vld [vmem:[%s2693_s2] ss:$0 sm:$0xff] }
  0x26   : > { %v2211_v62 = vld [vmem:[%s2285_s22 + $0x1f0] sm:$0xff]   ;;  %v2213_v0 = vld [vmem:[%s2285_s22 + $0x1f8] sm:$0xff]  }
  0x2b   : > { %2008 = vmatmul.mubr.msk.bf16.gmra.mrb[12].mxu0 %vm682_vm0, %v2164_v15 }
  0x2c   : > { %2072 = vmatmul.mubr.msk.bf16.gmra.mrb[12].mxu1 %vm682_vm0, %v2165_v16  ;;  %2011 = vmatprep.mubr.msk.bf16.mxu0 %vm682_vm0, %v2166_v17 }
  0x2d   : > { %2075 = vmatprep.mubr.msk.bf16.mxu1 %vm682_vm0, %v2167_v18 }
  0x33   : > { %2012 = vmatmul.mubr.msk.bf16.gmra.mrb[16].mxu0 %vm682_vm0, %v2168_v19 }
  0x34   : > { %2076 = vmatmul.mubr.msk.bf16.gmra.mrb[16].mxu1 %vm682_vm0, %v2169_v20  ;;  %2015 = vmatprep.mubr.msk.bf16.mxu0 %vm682_vm0, %v2170_v21 }
  0x35   : > { %2079 = vmatprep.mubr.msk.bf16.mxu1 %vm682_vm0, %v2171_v22 }
  0x3b   : > { %2016 = vmatmul.mubr.msk.bf16.gmra.mrb[20].mxu0 %vm682_vm0, %v2172_v23 }
  0x3c   : > { %2080 = vmatmul.mubr.msk.bf16.gmra.mrb[20].mxu1 %vm682_vm0, %v2173_v24  ;;  %2019 = vmatprep.mubr.msk.bf16.mxu0 %vm682_vm0, %v2174_v25 }
  0x3d   : > { %2083 = vmatprep.mubr.msk.bf16.mxu1 %vm682_vm0, %v2175_v26 }
  0x43   : > { %2020 = vmatmul.mubr.msk.bf16.gmra.mrb[24].mxu0 %vm682_vm0, %v2176_v27 }
  0x44   : > { %2084 = vmatmul.mubr.msk.bf16.gmra.mrb[24].mxu1 %vm682_vm0, %v2177_v28  ;;  %2023 = vmatprep.mubr.msk.bf16.mxu0 %vm682_vm0, %v2178_v29 }
  0x45   : > { %2087 = vmatprep.mubr.msk.bf16.mxu1 %vm682_vm0, %v2179_v30 }
  0x4b   : > { %2024 = vmatmul.mubr.msk.bf16.gmra.mrb[28].mxu0 %vm682_vm0, %v2180_v31 }
  0x4c   : > { %2088 = vmatmul.mubr.msk.bf16.gmra.mrb[28].mxu1 %vm682_vm0, %v2181_v32  ;;  %2027 = vmatprep.mubr.msk.bf16.mxu0 %vm682_vm0, %v2182_v33 }
  0x4d   : > { %2091 = vmatprep.mubr.msk.bf16.mxu1 %vm682_vm0, %v2183_v34 }
  0x53   : > { %2028 = vmatmul.mubr.msk.bf16.gmra.mrb[32].mxu0 %vm682_vm0, %v2184_v35 }
  0x54   : > { %2092 = vmatmul.mubr.msk.bf16.gmra.mrb[32].mxu1 %vm682_vm0, %v2185_v36  ;;  %2031 = vmatprep.mubr.msk.bf16.mxu0 %vm682_vm0, %v2186_v37 }
  0x55   : > { %2095 = vmatprep.mubr.msk.bf16.mxu1 %vm682_vm0, %v2187_v38 }
  0x5b   : > { %2032 = vmatmul.mubr.msk.bf16.gmra.mrb[36].mxu0 %vm682_vm0, %v2188_v39 }
  0x5c   : > { %2096 = vmatmul.mubr.msk.bf16.gmra.mrb[36].mxu1 %vm682_vm0, %v2189_v40  ;;  %2035 = vmatprep.mubr.msk.bf16.mxu0 %vm682_vm0, %v2190_v41 }
  0x5d   : > { %2099 = vmatprep.mubr.msk.bf16.mxu1 %vm682_vm0, %v2191_v42 }
  0x63   : > { %2036 = vmatmul.mubr.msk.bf16.gmra.mrb[40].mxu0 %vm682_vm0, %v2192_v43 }
  0x64   : > { %2100 = vmatmul.mubr.msk.bf16.gmra.mrb[40].mxu1 %vm682_vm0, %v2193_v44  ;;  %2039 = vmatprep.mubr.msk.bf16.mxu0 %vm682_vm0, %v2194_v45 }
  0x65   : > { %2103 = vmatprep.mubr.msk.bf16.mxu1 %vm682_vm0, %v2195_v46 }
  0x6b   : > { %2040 = vmatmul.mubr.msk.bf16.gmra.mrb[44].mxu0 %vm682_vm0, %v2196_v47 }
  0x6c   : > { %2104 = vmatmul.mubr.msk.bf16.gmra.mrb[44].mxu1 %vm682_vm0, %v2197_v48  ;;  %2043 = vmatprep.mubr.msk.bf16.mxu0 %vm682_vm0, %v2198_v49 }
  0x6d   : > { %2107 = vmatprep.mubr.msk.bf16.mxu1 %vm682_vm0, %v2199_v50 }
  0x73   : > { %2044 = vmatmul.mubr.msk.bf16.gmra.mrb[48].mxu0 %vm682_vm0, %v2200_v51 }
  0x74   : > { %2108 = vmatmul.mubr.msk.bf16.gmra.mrb[48].mxu1 %vm682_vm0, %v2201_v52  ;;  %2047 = vmatprep.mubr.msk.bf16.mxu0 %vm682_vm0, %v2202_v53 }
  0x75   : > { %2111 = vmatprep.mubr.msk.bf16.mxu1 %vm682_vm0, %v2203_v54 }
  0x7b   : > { %2048 = vmatmul.mubr.msk.bf16.gmra.mrb[52].mxu0 %vm682_vm0, %v2204_v55 }
  0x7c   : > { %2112 = vmatmul.mubr.msk.bf16.gmra.mrb[52].mxu1 %vm682_vm0, %v2205_v56  ;;  %2051 = vmatprep.mubr.msk.bf16.mxu0 %vm682_vm0, %v2206_v57 }
  0x7d   : > { %2115 = vmatprep.mubr.msk.bf16.mxu1 %vm682_vm0, %v2207_v58 }
  0x83   : > { %2052 = vmatmul.mubr.msk.bf16.gmra.mrb[56].mxu0 %vm682_vm0, %v2208_v59 }
  0x84   : > { %2116 = vmatmul.mubr.msk.bf16.gmra.mrb[56].mxu1 %vm682_vm0, %v2209_v60  ;;  %2055 = vmatprep.mubr.msk.bf16.mxu0 %vm682_vm0, %v2210_v61 }
  0x85   : > { %2119 = vmatprep.mubr.msk.bf16.mxu1 %vm682_vm0, %v2211_v62 }
  0x8b   : > { %2056 = vmatmul.mubr.msk.bf16.gmra.mrb[60].mxu0 %vm682_vm0, %v2212_v63 }
  0x8c   : > { %2120 = vmatmul.mubr.msk.bf16.gmra.mrb[60].mxu1 %vm682_vm0, %v2213_v0 }
  0xe6   : > { %v1997_v2 = vpop.f32.mrb[0].mxu0 }
  0xe7   : > { %v1429_v3 = vmul.f32 %v1997_v2, %v2419_v1  ;;  %v2061_v4 = vpop.f32.mrb[0].mxu1  ;;  %v909_v5 = vpop.f32.mrb[1].mxu0 }
  0xe8   : > { %v1493_v6 = vmul.f32 %v2061_v4, %v2419_v1  ;;  %v1427_v7 = vmul.f32 %v2419_v1, %v909_v5  ;;  %v1165_v8 = vpop.f32.mrb[1].mxu1  ;;  %v1998_v9 = vpop.f32.mrb[2].mxu0 }
  0xe9   : > { %1557 = vst [vmem:[%s2424_s28 + $0x10] sm:$0xff] %v1429_v3  ;;  %v1491_v10 = vmul.f32 %v2419_v1, %v1165_v8  ;;  %v1430_v11 = vmul.f32 %v1998_v9, %v2419_v1  ;;  %v2062_v12 = vpop.f32.mrb[2].mxu1  ;;  %v912_v13 = vpop.f32.mrb[3].mxu0 }
  0xea   : > { %1621 = vst [vmem:[%s2424_s28 + $0x210] sm:$0xff] %v1493_v6  ;;  %1555 = vst [vmem:[%s2424_s28] sm:$0xff] %v1427_v7  ;;  %v1494_v14 = vmul.f32 %v2062_v12, %v2419_v1  ;;  %v1428_v15 = vmul.f32 %v2419_v1, %v912_v13  ;;  %v1168_v16 = vpop.f32.mrb[3].mxu1 }
  0xeb   : > { %1619 = vst [vmem:[%s2424_s28 + $0x200] sm:$0xff] %v1491_v10  ;;  %1558 = vst [vmem:[%s2424_s28 + $0x18] sm:$0xff] %v1430_v11  ;;  %v1492_v17 = vmul.f32 %v2419_v1, %v1168_v16 }
  0xec   : > { %1622 = vst [vmem:[%s2424_s28 + $0x218] sm:$0xff] %v1494_v14  ;;  %1556 = vst [vmem:[%s2424_s28 + $0x8] sm:$0xff] %v1428_v15 }
  0xed   : > { %1620 = vst [vmem:[%s2424_s28 + $0x208] sm:$0xff] %v1492_v17 }
  0xee   : > { %v2001_v18 = vpop.f32.mrb[4].mxu0 }
  0xef   : > { %v1433_v19 = vmul.f32 %v2001_v18, %v2419_v1  ;;  %v2065_v20 = vpop.f32.mrb[4].mxu1  ;;  %v925_v21 = vpop.f32.mrb[5].mxu0 }
  0xf0   : > { %v1497_v22 = vmul.f32 %v2065_v20, %v2419_v1  ;;  %v1431_v23 = vmul.f32 %v2419_v1, %v925_v21  ;;  %v1181_v24 = vpop.f32.mrb[5].mxu1  ;;  %v2002_v25 = vpop.f32.mrb[6].mxu0 }
  0xf1   : > { %1561 = vst [vmem:[%s2424_s28 + $0x30] sm:$0xff] %v1433_v19  ;;  %v1495_v26 = vmul.f32 %v2419_v1, %v1181_v24  ;;  %v1434_v27 = vmul.f32 %v2002_v25, %v2419_v1  ;;  %v2066_v28 = vpop.f32.mrb[6].mxu1  ;;  %v928_v29 = vpop.f32.mrb[7].mxu0 }
  0xf2   : > { %1625 = vst [vmem:[%s2424_s28 + $0x230] sm:$0xff] %v1497_v22  ;;  %1559 = vst [vmem:[%s2424_s28 + $0x20] sm:$0xff] %v1431_v23  ;;  %v1498_v30 = vmul.f32 %v2066_v28, %v2419_v1  ;;  %v1432_v31 = vmul.f32 %v2419_v1, %v928_v29  ;;  %v1184_v32 = vpop.f32.mrb[7].mxu1 }
  0xf3   : > { %1623 = vst [vmem:[%s2424_s28 + $0x220] sm:$0xff] %v1495_v26  ;;  %1562 = vst [vmem:[%s2424_s28 + $0x38] sm:$0xff] %v1434_v27  ;;  %v1496_v33 = vmul.f32 %v2419_v1, %v1184_v32 }
  0xf4   : > { %1626 = vst [vmem:[%s2424_s28 + $0x238] sm:$0xff] %v1498_v30  ;;  %1560 = vst [vmem:[%s2424_s28 + $0x28] sm:$0xff] %v1432_v31 }
  0xf5   : > { %1624 = vst [vmem:[%s2424_s28 + $0x228] sm:$0xff] %v1496_v33 }
  0xf6   : > { %v2005_v34 = vpop.f32.mrb[8].mxu0 }
  0xf7   : > { %v1437_v35 = vmul.f32 %v2005_v34, %v2419_v1  ;;  %v2069_v36 = vpop.f32.mrb[8].mxu1  ;;  %v941_v37 = vpop.f32.mrb[9].mxu0 }
  0xf8   : > { %v1501_v38 = vmul.f32 %v2069_v36, %v2419_v1  ;;  %v1435_v39 = vmul.f32 %v2419_v1, %v941_v37  ;;  %v1197_v40 = vpop.f32.mrb[9].mxu1  ;;  %v2006_v41 = vpop.f32.mrb[10].mxu0 }
  0xf9   : > { %1565 = vst [vmem:[%s2424_s28 + $0x50] sm:$0xff] %v1437_v35  ;;  %v1499_v42 = vmul.f32 %v2419_v1, %v1197_v40  ;;  %v1438_v43 = vmul.f32 %v2006_v41, %v2419_v1  ;;  %v2070_v44 = vpop.f32.mrb[10].mxu1  ;;  %v944_v45 = vpop.f32.mrb[11].mxu0 }
  0xfa   : > { %1629 = vst [vmem:[%s2424_s28 + $0x250] sm:$0xff] %v1501_v38  ;;  %1563 = vst [vmem:[%s2424_s28 + $0x40] sm:$0xff] %v1435_v39  ;;  %v1502_v46 = vmul.f32 %v2070_v44, %v2419_v1  ;;  %v1436_v47 = vmul.f32 %v2419_v1, %v944_v45  ;;  %v1200_v48 = vpop.f32.mrb[11].mxu1 }
  0xfb   : > { %1627 = vst [vmem:[%s2424_s28 + $0x240] sm:$0xff] %v1499_v42  ;;  %1566 = vst [vmem:[%s2424_s28 + $0x58] sm:$0xff] %v1438_v43  ;;  %v1500_v49 = vmul.f32 %v2419_v1, %v1200_v48 }
  0xfc   : > { %1630 = vst [vmem:[%s2424_s28 + $0x258] sm:$0xff] %v1502_v46  ;;  %1564 = vst [vmem:[%s2424_s28 + $0x48] sm:$0xff] %v1436_v47 }
  0xfd   : > { %1628 = vst [vmem:[%s2424_s28 + $0x248] sm:$0xff] %v1500_v49 }
  0xfe   : > { %v2009_v50 = vpop.f32.mrb[12].mxu0 }
  0xff   : > { %v1441_v51 = vmul.f32 %v2009_v50, %v2419_v1  ;;  %v2073_v52 = vpop.f32.mrb[12].mxu1  ;;  %v957_v53 = vpop.f32.mrb[13].mxu0 }
 0x100   : > { %v1505_v54 = vmul.f32 %v2073_v52, %v2419_v1  ;;  %v1439_v55 = vmul.f32 %v2419_v1, %v957_v53  ;;  %v1213_v56 = vpop.f32.mrb[13].mxu1  ;;  %v2010_v57 = vpop.f32.mrb[14].mxu0 }
 0x101   : > { %1569 = vst [vmem:[%s2424_s28 + $0x70] sm:$0xff] %v1441_v51  ;;  %v1503_v58 = vmul.f32 %v2419_v1, %v1213_v56  ;;  %v1442_v59 = vmul.f32 %v2010_v57, %v2419_v1  ;;  %v2074_v60 = vpop.f32.mrb[14].mxu1  ;;  %v960_v61 = vpop.f32.mrb[15].mxu0 }
 0x102   : > { %1633 = vst [vmem:[%s2424_s28 + $0x270] sm:$0xff] %v1505_v54  ;;  %1567 = vst [vmem:[%s2424_s28 + $0x60] sm:$0xff] %v1439_v55  ;;  %v1506_v62 = vmul.f32 %v2074_v60, %v2419_v1  ;;  %v1440_v63 = vmul.f32 %v2419_v1, %v960_v61  ;;  %v1216_v0 = vpop.f32.mrb[15].mxu1 }
 0x103   : > { %1631 = vst [vmem:[%s2424_s28 + $0x260] sm:$0xff] %v1503_v58  ;;  %1570 = vst [vmem:[%s2424_s28 + $0x78] sm:$0xff] %v1442_v59  ;;  %v1504_v2 = vmul.f32 %v2419_v1, %v1216_v0 }
 0x104   : > { %1634 = vst [vmem:[%s2424_s28 + $0x278] sm:$0xff] %v1506_v62  ;;  %1568 = vst [vmem:[%s2424_s28 + $0x68] sm:$0xff] %v1440_v63 }
 0x105   : > { %1632 = vst [vmem:[%s2424_s28 + $0x268] sm:$0xff] %v1504_v2 }
 0x106   : > { %v2013_v3 = vpop.f32.mrb[16].mxu0 }
 0x107   : > { %v1445_v4 = vmul.f32 %v2013_v3, %v2419_v1  ;;  %v2077_v5 = vpop.f32.mrb[16].mxu1  ;;  %v973_v6 = vpop.f32.mrb[17].mxu0 }
 0x108   : > { %v1509_v7 = vmul.f32 %v2077_v5, %v2419_v1  ;;  %v1443_v8 = vmul.f32 %v2419_v1, %v973_v6  ;;  %v1229_v9 = vpop.f32.mrb[17].mxu1  ;;  %v2014_v10 = vpop.f32.mrb[18].mxu0 }
 0x109   : > { %1573 = vst [vmem:[%s2424_s28 + $0x90] sm:$0xff] %v1445_v4  ;;  %v1507_v11 = vmul.f32 %v2419_v1, %v1229_v9  ;;  %v1446_v12 = vmul.f32 %v2014_v10, %v2419_v1  ;;  %v2078_v13 = vpop.f32.mrb[18].mxu1  ;;  %v976_v14 = vpop.f32.mrb[19].mxu0 }
 0x10a   : > { %1637 = vst [vmem:[%s2424_s28 + $0x290] sm:$0xff] %v1509_v7  ;;  %1571 = vst [vmem:[%s2424_s28 + $0x80] sm:$0xff] %v1443_v8  ;;  %v1510_v15 = vmul.f32 %v2078_v13, %v2419_v1  ;;  %v1444_v16 = vmul.f32 %v2419_v1, %v976_v14  ;;  %v1232_v17 = vpop.f32.mrb[19].mxu1 }
 0x10b   : > { %1635 = vst [vmem:[%s2424_s28 + $0x280] sm:$0xff] %v1507_v11  ;;  %1574 = vst [vmem:[%s2424_s28 + $0x98] sm:$0xff] %v1446_v12  ;;  %v1508_v18 = vmul.f32 %v2419_v1, %v1232_v17 }
 0x10c   : > { %1638 = vst [vmem:[%s2424_s28 + $0x298] sm:$0xff] %v1510_v15  ;;  %1572 = vst [vmem:[%s2424_s28 + $0x88] sm:$0xff] %v1444_v16 }
 0x10d   : > { %1636 = vst [vmem:[%s2424_s28 + $0x288] sm:$0xff] %v1508_v18 }
 0x10e   : > { %v2017_v19 = vpop.f32.mrb[20].mxu0 }
 0x10f   : > { %v1449_v20 = vmul.f32 %v2017_v19, %v2419_v1  ;;  %v2081_v21 = vpop.f32.mrb[20].mxu1  ;;  %v989_v22 = vpop.f32.mrb[21].mxu0 }
 0x110   : > { %v1513_v23 = vmul.f32 %v2081_v21, %v2419_v1  ;;  %v1447_v24 = vmul.f32 %v2419_v1, %v989_v22  ;;  %v1245_v25 = vpop.f32.mrb[21].mxu1  ;;  %v2018_v26 = vpop.f32.mrb[22].mxu0 }
 0x111   : > { %1577 = vst [vmem:[%s2424_s28 + $0xb0] sm:$0xff] %v1449_v20  ;;  %v1511_v27 = vmul.f32 %v2419_v1, %v1245_v25  ;;  %v1450_v28 = vmul.f32 %v2018_v26, %v2419_v1  ;;  %v2082_v29 = vpop.f32.mrb[22].mxu1  ;;  %v992_v30 = vpop.f32.mrb[23].mxu0 }
 0x112   : > { %1641 = vst [vmem:[%s2424_s28 + $0x2b0] sm:$0xff] %v1513_v23  ;;  %1575 = vst [vmem:[%s2424_s28 + $0xa0] sm:$0xff] %v1447_v24  ;;  %v1514_v31 = vmul.f32 %v2082_v29, %v2419_v1  ;;  %v1448_v32 = vmul.f32 %v2419_v1, %v992_v30  ;;  %v1248_v33 = vpop.f32.mrb[23].mxu1 }
 0x113   : > { %1639 = vst [vmem:[%s2424_s28 + $0x2a0] sm:$0xff] %v1511_v27  ;;  %1578 = vst [vmem:[%s2424_s28 + $0xb8] sm:$0xff] %v1450_v28  ;;  %v1512_v34 = vmul.f32 %v2419_v1, %v1248_v33 }
 0x114   : > { %1642 = vst [vmem:[%s2424_s28 + $0x2b8] sm:$0xff] %v1514_v31  ;;  %1576 = vst [vmem:[%s2424_s28 + $0xa8] sm:$0xff] %v1448_v32 }
 0x115   : > { %1640 = vst [vmem:[%s2424_s28 + $0x2a8] sm:$0xff] %v1512_v34 }
 0x116   : > { %v2021_v35 = vpop.f32.mrb[24].mxu0 }
 0x117   : > { %v1453_v36 = vmul.f32 %v2021_v35, %v2419_v1  ;;  %v2085_v37 = vpop.f32.mrb[24].mxu1  ;;  %v1005_v38 = vpop.f32.mrb[25].mxu0 }
 0x118   : > { %v1517_v39 = vmul.f32 %v2085_v37, %v2419_v1  ;;  %v1451_v40 = vmul.f32 %v2419_v1, %v1005_v38  ;;  %v1261_v41 = vpop.f32.mrb[25].mxu1  ;;  %v2022_v42 = vpop.f32.mrb[26].mxu0 }
 0x119   : > { %1581 = vst [vmem:[%s2424_s28 + $0xd0] sm:$0xff] %v1453_v36  ;;  %v1515_v43 = vmul.f32 %v2419_v1, %v1261_v41  ;;  %v1454_v44 = vmul.f32 %v2022_v42, %v2419_v1  ;;  %v2086_v45 = vpop.f32.mrb[26].mxu1  ;;  %v1008_v46 = vpop.f32.mrb[27].mxu0 }
 0x11a   : > { %1645 = vst [vmem:[%s2424_s28 + $0x2d0] sm:$0xff] %v1517_v39  ;;  %1579 = vst [vmem:[%s2424_s28 + $0xc0] sm:$0xff] %v1451_v40  ;;  %v1518_v47 = vmul.f32 %v2086_v45, %v2419_v1  ;;  %v1452_v48 = vmul.f32 %v2419_v1, %v1008_v46  ;;  %v1264_v49 = vpop.f32.mrb[27].mxu1 }
 0x11b   : > { %1643 = vst [vmem:[%s2424_s28 + $0x2c0] sm:$0xff] %v1515_v43  ;;  %1582 = vst [vmem:[%s2424_s28 + $0xd8] sm:$0xff] %v1454_v44  ;;  %v1516_v50 = vmul.f32 %v2419_v1, %v1264_v49 }
 0x11c   : > { %1646 = vst [vmem:[%s2424_s28 + $0x2d8] sm:$0xff] %v1518_v47  ;;  %1580 = vst [vmem:[%s2424_s28 + $0xc8] sm:$0xff] %v1452_v48 }
 0x11d   : > { %1644 = vst [vmem:[%s2424_s28 + $0x2c8] sm:$0xff] %v1516_v50 }
 0x11e   : > { %v2025_v51 = vpop.f32.mrb[28].mxu0 }
 0x11f   : > { %v1457_v52 = vmul.f32 %v2025_v51, %v2419_v1  ;;  %v2089_v53 = vpop.f32.mrb[28].mxu1  ;;  %v1021_v54 = vpop.f32.mrb[29].mxu0 }
 0x120   : > { %v1521_v55 = vmul.f32 %v2089_v53, %v2419_v1  ;;  %v1455_v56 = vmul.f32 %v2419_v1, %v1021_v54  ;;  %v1277_v57 = vpop.f32.mrb[29].mxu1  ;;  %v2026_v58 = vpop.f32.mrb[30].mxu0 }
 0x121   : > { %1585 = vst [vmem:[%s2424_s28 + $0xf0] sm:$0xff] %v1457_v52  ;;  %v1519_v59 = vmul.f32 %v2419_v1, %v1277_v57  ;;  %v1458_v60 = vmul.f32 %v2026_v58, %v2419_v1  ;;  %v2090_v61 = vpop.f32.mrb[30].mxu1  ;;  %v1024_v62 = vpop.f32.mrb[31].mxu0 }
 0x122   : > { %1649 = vst [vmem:[%s2424_s28 + $0x2f0] sm:$0xff] %v1521_v55  ;;  %1583 = vst [vmem:[%s2424_s28 + $0xe0] sm:$0xff] %v1455_v56  ;;  %v1522_v63 = vmul.f32 %v2090_v61, %v2419_v1  ;;  %v1456_v0 = vmul.f32 %v2419_v1, %v1024_v62  ;;  %v1280_v2 = vpop.f32.mrb[31].mxu1 }
 0x123   : > { %1647 = vst [vmem:[%s2424_s28 + $0x2e0] sm:$0xff] %v1519_v59  ;;  %1586 = vst [vmem:[%s2424_s28 + $0xf8] sm:$0xff] %v1458_v60  ;;  %v1520_v3 = vmul.f32 %v2419_v1, %v1280_v2 }
 0x124   : > { %1650 = vst [vmem:[%s2424_s28 + $0x2f8] sm:$0xff] %v1522_v63  ;;  %1584 = vst [vmem:[%s2424_s28 + $0xe8] sm:$0xff] %v1456_v0 }
 0x125   : > { %1648 = vst [vmem:[%s2424_s28 + $0x2e8] sm:$0xff] %v1520_v3 }
 0x126   : > { %v2029_v4 = vpop.f32.mrb[32].mxu0 }
 0x127   : > { %v1461_v5 = vmul.f32 %v2029_v4, %v2419_v1  ;;  %v2093_v6 = vpop.f32.mrb[32].mxu1  ;;  %v1037_v7 = vpop.f32.mrb[33].mxu0 }
 0x128   : > { %v1525_v8 = vmul.f32 %v2093_v6, %v2419_v1  ;;  %v1459_v9 = vmul.f32 %v2419_v1, %v1037_v7  ;;  %v1293_v10 = vpop.f32.mrb[33].mxu1  ;;  %v2030_v11 = vpop.f32.mrb[34].mxu0 }
 0x129   : > { %1589 = vst [vmem:[%s2424_s28 + $0x110] sm:$0xff] %v1461_v5  ;;  %v1523_v12 = vmul.f32 %v2419_v1, %v1293_v10  ;;  %v1462_v13 = vmul.f32 %v2030_v11, %v2419_v1  ;;  %v2094_v14 = vpop.f32.mrb[34].mxu1  ;;  %v1040_v15 = vpop.f32.mrb[35].mxu0 }
 0x12a   : > { %1653 = vst [vmem:[%s2424_s28 + $0x310] sm:$0xff] %v1525_v8  ;;  %1587 = vst [vmem:[%s2424_s28 + $0x100] sm:$0xff] %v1459_v9  ;;  %v1526_v16 = vmul.f32 %v2094_v14, %v2419_v1  ;;  %v1460_v17 = vmul.f32 %v2419_v1, %v1040_v15  ;;  %v1296_v18 = vpop.f32.mrb[35].mxu1 }
 0x12b   : > { %1651 = vst [vmem:[%s2424_s28 + $0x300] sm:$0xff] %v1523_v12  ;;  %1590 = vst [vmem:[%s2424_s28 + $0x118] sm:$0xff] %v1462_v13  ;;  %v1524_v19 = vmul.f32 %v2419_v1, %v1296_v18 }
 0x12c   : > { %1654 = vst [vmem:[%s2424_s28 + $0x318] sm:$0xff] %v1526_v16  ;;  %1588 = vst [vmem:[%s2424_s28 + $0x108] sm:$0xff] %v1460_v17 }
 0x12d   : > { %1652 = vst [vmem:[%s2424_s28 + $0x308] sm:$0xff] %v1524_v19 }
 0x12e   : > { %v2033_v20 = vpop.f32.mrb[36].mxu0 }
 0x12f   : > { %v1465_v21 = vmul.f32 %v2033_v20, %v2419_v1  ;;  %v2097_v22 = vpop.f32.mrb[36].mxu1  ;;  %v1053_v23 = vpop.f32.mrb[37].mxu0 }
 0x130   : > { %v1529_v24 = vmul.f32 %v2097_v22, %v2419_v1  ;;  %v1463_v25 = vmul.f32 %v2419_v1, %v1053_v23  ;;  %v1309_v26 = vpop.f32.mrb[37].mxu1  ;;  %v2034_v27 = vpop.f32.mrb[38].mxu0 }
 0x131   : > { %1593 = vst [vmem:[%s2424_s28 + $0x130] sm:$0xff] %v1465_v21  ;;  %v1527_v28 = vmul.f32 %v2419_v1, %v1309_v26  ;;  %v1466_v29 = vmul.f32 %v2034_v27, %v2419_v1  ;;  %v2098_v30 = vpop.f32.mrb[38].mxu1  ;;  %v1056_v31 = vpop.f32.mrb[39].mxu0 }
 0x132   : > { %1657 = vst [vmem:[%s2424_s28 + $0x330] sm:$0xff] %v1529_v24  ;;  %1591 = vst [vmem:[%s2424_s28 + $0x120] sm:$0xff] %v1463_v25  ;;  %v1530_v32 = vmul.f32 %v2098_v30, %v2419_v1  ;;  %v1464_v33 = vmul.f32 %v2419_v1, %v1056_v31  ;;  %v1312_v34 = vpop.f32.mrb[39].mxu1 }
 0x133   : > { %1655 = vst [vmem:[%s2424_s28 + $0x320] sm:$0xff] %v1527_v28  ;;  %1594 = vst [vmem:[%s2424_s28 + $0x138] sm:$0xff] %v1466_v29  ;;  %v1528_v35 = vmul.f32 %v2419_v1, %v1312_v34 }
 0x134   : > { %1658 = vst [vmem:[%s2424_s28 + $0x338] sm:$0xff] %v1530_v32  ;;  %1592 = vst [vmem:[%s2424_s28 + $0x128] sm:$0xff] %v1464_v33 }
 0x135   : > { %1656 = vst [vmem:[%s2424_s28 + $0x328] sm:$0xff] %v1528_v35 }
 0x136   : > { %v2037_v36 = vpop.f32.mrb[40].mxu0 }
 0x137   : > { %v1469_v37 = vmul.f32 %v2037_v36, %v2419_v1  ;;  %v2101_v38 = vpop.f32.mrb[40].mxu1  ;;  %v1069_v39 = vpop.f32.mrb[41].mxu0 }
 0x138   : > { %v1533_v40 = vmul.f32 %v2101_v38, %v2419_v1  ;;  %v1467_v41 = vmul.f32 %v2419_v1, %v1069_v39  ;;  %v1325_v42 = vpop.f32.mrb[41].mxu1  ;;  %v2038_v43 = vpop.f32.mrb[42].mxu0 }
 0x139   : > { %1597 = vst [vmem:[%s2424_s28 + $0x150] sm:$0xff] %v1469_v37  ;;  %v1531_v44 = vmul.f32 %v2419_v1, %v1325_v42  ;;  %v1470_v45 = vmul.f32 %v2038_v43, %v2419_v1  ;;  %v2102_v46 = vpop.f32.mrb[42].mxu1  ;;  %v1072_v47 = vpop.f32.mrb[43].mxu0 }
 0x13a   : > { %1661 = vst [vmem:[%s2424_s28 + $0x350] sm:$0xff] %v1533_v40  ;;  %1595 = vst [vmem:[%s2424_s28 + $0x140] sm:$0xff] %v1467_v41  ;;  %v1534_v48 = vmul.f32 %v2102_v46, %v2419_v1  ;;  %v1468_v49 = vmul.f32 %v2419_v1, %v1072_v47  ;;  %v1328_v50 = vpop.f32.mrb[43].mxu1 }
 0x13b   : > { %1659 = vst [vmem:[%s2424_s28 + $0x340] sm:$0xff] %v1531_v44  ;;  %1598 = vst [vmem:[%s2424_s28 + $0x158] sm:$0xff] %v1470_v45  ;;  %v1532_v51 = vmul.f32 %v2419_v1, %v1328_v50 }
 0x13c   : > { %1662 = vst [vmem:[%s2424_s28 + $0x358] sm:$0xff] %v1534_v48  ;;  %1596 = vst [vmem:[%s2424_s28 + $0x148] sm:$0xff] %v1468_v49 }
 0x13d   : > { %1660 = vst [vmem:[%s2424_s28 + $0x348] sm:$0xff] %v1532_v51 }
 0x13e   : > { %v2041_v52 = vpop.f32.mrb[44].mxu0 }
 0x13f   : > { %v1473_v53 = vmul.f32 %v2041_v52, %v2419_v1  ;;  %v2105_v54 = vpop.f32.mrb[44].mxu1  ;;  %v1085_v55 = vpop.f32.mrb[45].mxu0 }
 0x140   : > { %v1537_v56 = vmul.f32 %v2105_v54, %v2419_v1  ;;  %v1471_v57 = vmul.f32 %v2419_v1, %v1085_v55  ;;  %v1341_v58 = vpop.f32.mrb[45].mxu1  ;;  %v2042_v59 = vpop.f32.mrb[46].mxu0 }
 0x141   : > { %1601 = vst [vmem:[%s2424_s28 + $0x170] sm:$0xff] %v1473_v53  ;;  %v1535_v60 = vmul.f32 %v2419_v1, %v1341_v58  ;;  %v1474_v61 = vmul.f32 %v2042_v59, %v2419_v1  ;;  %v2106_v62 = vpop.f32.mrb[46].mxu1  ;;  %v1088_v63 = vpop.f32.mrb[47].mxu0 }
 0x142   : > { %1665 = vst [vmem:[%s2424_s28 + $0x370] sm:$0xff] %v1537_v56  ;;  %1599 = vst [vmem:[%s2424_s28 + $0x160] sm:$0xff] %v1471_v57  ;;  %v1538_v0 = vmul.f32 %v2106_v62, %v2419_v1  ;;  %v1472_v2 = vmul.f32 %v2419_v1, %v1088_v63  ;;  %v1344_v3 = vpop.f32.mrb[47].mxu1 }
 0x143   : > { %1663 = vst [vmem:[%s2424_s28 + $0x360] sm:$0xff] %v1535_v60  ;;  %1602 = vst [vmem:[%s2424_s28 + $0x178] sm:$0xff] %v1474_v61  ;;  %v1536_v4 = vmul.f32 %v2419_v1, %v1344_v3 }
 0x144   : > { %1666 = vst [vmem:[%s2424_s28 + $0x378] sm:$0xff] %v1538_v0  ;;  %1600 = vst [vmem:[%s2424_s28 + $0x168] sm:$0xff] %v1472_v2 }
 0x145   : > { %1664 = vst [vmem:[%s2424_s28 + $0x368] sm:$0xff] %v1536_v4 }
 0x146   : > { %v2045_v5 = vpop.f32.mrb[48].mxu0 }
 0x147   : > { %v1477_v6 = vmul.f32 %v2045_v5, %v2419_v1  ;;  %v2109_v7 = vpop.f32.mrb[48].mxu1  ;;  %v1101_v8 = vpop.f32.mrb[49].mxu0 }
 0x148   : > { %v1541_v9 = vmul.f32 %v2109_v7, %v2419_v1  ;;  %v1475_v10 = vmul.f32 %v2419_v1, %v1101_v8  ;;  %v1357_v11 = vpop.f32.mrb[49].mxu1  ;;  %v2046_v12 = vpop.f32.mrb[50].mxu0 }
 0x149   : > { %1605 = vst [vmem:[%s2424_s28 + $0x190] sm:$0xff] %v1477_v6  ;;  %v1539_v13 = vmul.f32 %v2419_v1, %v1357_v11  ;;  %v1478_v14 = vmul.f32 %v2046_v12, %v2419_v1  ;;  %v2110_v15 = vpop.f32.mrb[50].mxu1  ;;  %v1104_v16 = vpop.f32.mrb[51].mxu0 }
 0x14a   : > { %1669 = vst [vmem:[%s2424_s28 + $0x390] sm:$0xff] %v1541_v9  ;;  %1603 = vst [vmem:[%s2424_s28 + $0x180] sm:$0xff] %v1475_v10  ;;  %v1542_v17 = vmul.f32 %v2110_v15, %v2419_v1  ;;  %v1476_v18 = vmul.f32 %v2419_v1, %v1104_v16  ;;  %v1360_v19 = vpop.f32.mrb[51].mxu1 }
 0x14b   : > { %1667 = vst [vmem:[%s2424_s28 + $0x380] sm:$0xff] %v1539_v13  ;;  %1606 = vst [vmem:[%s2424_s28 + $0x198] sm:$0xff] %v1478_v14  ;;  %v1540_v20 = vmul.f32 %v2419_v1, %v1360_v19 }
 0x14c   : > { %1670 = vst [vmem:[%s2424_s28 + $0x398] sm:$0xff] %v1542_v17  ;;  %1604 = vst [vmem:[%s2424_s28 + $0x188] sm:$0xff] %v1476_v18 }
 0x14d   : > { %1668 = vst [vmem:[%s2424_s28 + $0x388] sm:$0xff] %v1540_v20 }
 0x14e   : > { %v2049_v21 = vpop.f32.mrb[52].mxu0 }
 0x14f   : > { %v1481_v22 = vmul.f32 %v2049_v21, %v2419_v1  ;;  %v2113_v23 = vpop.f32.mrb[52].mxu1  ;;  %v1117_v24 = vpop.f32.mrb[53].mxu0 }
 0x150   : > { %v1545_v25 = vmul.f32 %v2113_v23, %v2419_v1  ;;  %v1479_v26 = vmul.f32 %v2419_v1, %v1117_v24  ;;  %v1373_v27 = vpop.f32.mrb[53].mxu1  ;;  %v2050_v28 = vpop.f32.mrb[54].mxu0 }
 0x151   : > { %1609 = vst [vmem:[%s2424_s28 + $0x1b0] sm:$0xff] %v1481_v22  ;;  %v1543_v29 = vmul.f32 %v2419_v1, %v1373_v27  ;;  %v1482_v30 = vmul.f32 %v2050_v28, %v2419_v1  ;;  %v2114_v31 = vpop.f32.mrb[54].mxu1  ;;  %v1120_v32 = vpop.f32.mrb[55].mxu0 }
 0x152   : > { %1673 = vst [vmem:[%s2424_s28 + $0x3b0] sm:$0xff] %v1545_v25  ;;  %1607 = vst [vmem:[%s2424_s28 + $0x1a0] sm:$0xff] %v1479_v26  ;;  %v1546_v33 = vmul.f32 %v2114_v31, %v2419_v1  ;;  %v1480_v34 = vmul.f32 %v2419_v1, %v1120_v32  ;;  %v1376_v35 = vpop.f32.mrb[55].mxu1 }
 0x153   : > { %1671 = vst [vmem:[%s2424_s28 + $0x3a0] sm:$0xff] %v1543_v29  ;;  %1610 = vst [vmem:[%s2424_s28 + $0x1b8] sm:$0xff] %v1482_v30  ;;  %v1544_v36 = vmul.f32 %v2419_v1, %v1376_v35 }
 0x154   : > { %1674 = vst [vmem:[%s2424_s28 + $0x3b8] sm:$0xff] %v1546_v33  ;;  %1608 = vst [vmem:[%s2424_s28 + $0x1a8] sm:$0xff] %v1480_v34 }
 0x155   : > { %1672 = vst [vmem:[%s2424_s28 + $0x3a8] sm:$0xff] %v1544_v36 }
 0x156   : > { %v2053_v37 = vpop.f32.mrb[56].mxu0 }
 0x157   : > { %v1485_v38 = vmul.f32 %v2053_v37, %v2419_v1  ;;  %v2117_v39 = vpop.f32.mrb[56].mxu1  ;;  %v1133_v40 = vpop.f32.mrb[57].mxu0 }
 0x158   : > { %v1549_v41 = vmul.f32 %v2117_v39, %v2419_v1  ;;  %v1483_v42 = vmul.f32 %v2419_v1, %v1133_v40  ;;  %v1389_v43 = vpop.f32.mrb[57].mxu1  ;;  %v2054_v44 = vpop.f32.mrb[58].mxu0 }
 0x159   : > { %1613 = vst [vmem:[%s2424_s28 + $0x1d0] sm:$0xff] %v1485_v38  ;;  %v1547_v45 = vmul.f32 %v2419_v1, %v1389_v43  ;;  %v1486_v46 = vmul.f32 %v2054_v44, %v2419_v1  ;;  %v2118_v47 = vpop.f32.mrb[58].mxu1  ;;  %v1136_v48 = vpop.f32.mrb[59].mxu0 }
 0x15a   : > { %1677 = vst [vmem:[%s2424_s28 + $0x3d0] sm:$0xff] %v1549_v41  ;;  %1611 = vst [vmem:[%s2424_s28 + $0x1c0] sm:$0xff] %v1483_v42  ;;  %v1550_v49 = vmul.f32 %v2118_v47, %v2419_v1  ;;  %v1484_v50 = vmul.f32 %v2419_v1, %v1136_v48  ;;  %v1392_v51 = vpop.f32.mrb[59].mxu1 }
 0x15b   : > { %1675 = vst [vmem:[%s2424_s28 + $0x3c0] sm:$0xff] %v1547_v45  ;;  %1614 = vst [vmem:[%s2424_s28 + $0x1d8] sm:$0xff] %v1486_v46  ;;  %v1548_v52 = vmul.f32 %v2419_v1, %v1392_v51 }
 0x15c   : > { %1678 = vst [vmem:[%s2424_s28 + $0x3d8] sm:$0xff] %v1550_v49  ;;  %1612 = vst [vmem:[%s2424_s28 + $0x1c8] sm:$0xff] %v1484_v50 }
 0x15d   : > { %1676 = vst [vmem:[%s2424_s28 + $0x3c8] sm:$0xff] %v1548_v52 }
 0x15e   : > { %v2057_v53 = vpop.f32.mrb[60].mxu0 }
 0x15f   : > { %v1489_v54 = vmul.f32 %v2057_v53, %v2419_v1  ;;  %v2121_v55 = vpop.f32.mrb[60].mxu1  ;;  %v1149_v56 = vpop.f32.mrb[61].mxu0 }
 0x160   : > { %v1553_v57 = vmul.f32 %v2121_v55, %v2419_v1  ;;  %v1487_v58 = vmul.f32 %v2419_v1, %v1149_v56  ;;  %v1405_v59 = vpop.f32.mrb[61].mxu1  ;;  %v2058_v60 = vpop.f32.mrb[62].mxu0 }
 0x161   : > { %1617 = vst [vmem:[%s2424_s28 + $0x1f0] sm:$0xff] %v1489_v54  ;;  %v1551_v61 = vmul.f32 %v2419_v1, %v1405_v59  ;;  %v1490_v62 = vmul.f32 %v2058_v60, %v2419_v1  ;;  %v2122_v63 = vpop.f32.mrb[62].mxu1  ;;  %v1152_v0 = vpop.f32.mrb[63].mxu0 }
 0x162   : > { %1681 = vst [vmem:[%s2424_s28 + $0x3f0] sm:$0xff] %v1553_v57  ;;  %1615 = vst [vmem:[%s2424_s28 + $0x1e0] sm:$0xff] %v1487_v58  ;;  %v1554_v2 = vmul.f32 %v2122_v63, %v2419_v1  ;;  %v1488_v3 = vmul.f32 %v2419_v1, %v1152_v0  ;;  %v1408_v4 = vpop.f32.mrb[63].mxu1 }
 0x163   : > { %1679 = vst [vmem:[%s2424_s28 + $0x3e0] sm:$0xff] %v1551_v61  ;;  %1618 = vst [vmem:[%s2424_s28 + $0x1f8] sm:$0xff] %v1490_v62  ;;  %v1552_v5 = vmul.f32 %v2419_v1, %v1408_v4 }
 0x164   : > { %1682 = vst [vmem:[%s2424_s28 + $0x3f8] sm:$0xff] %v1554_v2  ;;  %1616 = vst [vmem:[%s2424_s28 + $0x1e8] sm:$0xff] %v1488_v3 }
 0x165   : > { %1680 = vst [vmem:[%s2424_s28 + $0x3e8] sm:$0xff] %v1552_v5 }
 0x166 PF: > { %s13_s14 = sadd.s32 1, %s2236_s14   ;;  %s2695_s12 = smov %s2232_s13 }
 0x167   : > { %p10_p5 = scmp.ge.s32.totalorder %s13_s14, 4   ;;  %s2696_s13 = smov %s2698_s15 }
 0x169   :  { %12 = sbr.rel (!%p10_p5) target bundleno = 2 (0x2), region = 68 }

</bundles_post_ra>
